<compile_context>
chip_gen: v7x
topology: tpu7x:2x2x1
jax: 0.10.0
libtpu: 0.0.40
codegen_flags: <defaults>
</compile_context>

<pallas_src>
import functools
import math

import jax
import jax.numpy as jnp
from jax import lax
from jax.experimental import pallas as pl
from jax.experimental.pallas import tpu as pltpu

NEG_SLOPE = 0.2
LEFT_PAD = 2          # interior store starts at an even column (packed bf16 pair aligned)


def _round_up(x, m):
    return (x + m - 1) // m * m


def _vmem_limit_bytes():
    """Generation-aware scoped-VMEM limit (v5e/v6e: 128 MiB physical, v7x: 64 MiB)."""
    cap = None
    try:
        cap = getattr(pltpu.get_tpu_info(), "vmem_capacity_bytes", None)
    except Exception:
        cap = None
    if not cap:
        cap = 64 * 1024 * 1024                # conservative fallback (v7x per-TC VMEM)
    cap = max(int(cap), 64 * 1024 * 1024)
    return min(100 * 1024 * 1024, (cap * 7) // 8)


VMEM_LIMIT = _vmem_limit_bytes()


def _conv_footprint(H, W, Cin, TH, tco, wp):
    """Per-grid-step VMEM footprint (bytes): pipeline double-buffers, pad scratch,
    f32 accumulators, and epilogue temporaries (shifted slices + combined output)."""
    bf, f32 = 2, 4
    x_buf = 2 * H * W * Cin * bf           # full-image input block, double buffered
    w_buf = 2 * 9 * Cin * tco * bf
    o_buf = 2 * TH * W * tco * bf
    pad = (H + 2) * wp * Cin * bf
    acc = 3 * TH * wp * tco * f32
    epi = 3 * TH * W * tco * f32
    slack = 2 * 1024 * 1024                # compiler internal scratch / misc temporaries
    return x_buf + w_buf + o_buf + pad + acc + epi + slack


def _pick_tiles(H, W, Cin, Cout, wp, weight_stationary):
    """Prefer tco=256 (full MXU width) and the largest H tile (<=32) that fits VMEM."""
    budget = int(VMEM_LIMIT * 0.75)
    if weight_stationary:
        th_cands = (H,)
    else:
        th_cands = tuple(t for t in (32, 16, 8) if t <= H and H % t == 0) or (H,)
    for tco in (256, 128):
        if Cout % tco != 0:
            continue
        for th in th_cands:
            if _conv_footprint(H, W, Cin, th, tco, wp) <= budget:
                return tco, th
    return (128 if Cout % 128 == 0 else Cout), th_cands[-1]


# ----------------------------------------------------------------------------- kernels
def _conv3x3_kernel(x_ref, w_ref, b_ref, o_ref, pad_ref, *, apply_act, weight_stationary):
    # x_ref: (H, W, Cin)   bf16 full (unpadded) input for one batch element
    # w_ref: (9*Cin, TCo)  bf16 flattened 3x3 weights for one Cout tile
    # b_ref: (1, TCo)      f32
    # o_ref: (TH, W, TCo)  bf16 output rows [h*TH, h*TH+TH) of one Cout tile
    # pad_ref: VMEM scratch (H+2, wp, Cin) bf16, zero-haloed input (whole image)
    H, W, Cin = x_ref.shape
    TH = o_ref.shape[0]
    tco = o_ref.shape[-1]
    wp = pad_ref.shape[1]
    right = wp - LEFT_PAD - W                      # right halo band width (static)

    def fill_pad():
        # Halo-only zeroing (review item): top/bottom rows + left/right column bands;
        # the interior is overwritten with the real data right after.
        zrow = jnp.zeros((wp, Cin), jnp.bfloat16)
        pad_ref[0] = zrow
        pad_ref[H + 1] = zrow
        pad_ref[pl.ds(1, H), pl.ds(0, LEFT_PAD), :] = jnp.zeros(
            (H, LEFT_PAD, Cin), jnp.bfloat16)
        if right > 0:
            pad_ref[pl.ds(1, H), pl.ds(LEFT_PAD + W, right), :] = jnp.zeros(
                (H, right, Cin), jnp.bfloat16)
        pad_ref[pl.ds(1, H), pl.ds(LEFT_PAD, W), :] = x_ref[...]

    if weight_stationary:
        # grid = (c_out, b): the batch element changes every step -> always refill.
        fill_pad()
        row0 = 0
    else:
        # grid = (b, c_out, h): fill once per batch element, at the first (c, h) step.
        # Both c and h axes are "arbitrary" so this sequencing holds per core.
        @pl.when((pl.program_id(1) == 0) & (pl.program_id(2) == 0))
        def _():
            fill_pad()
        row0 = pl.program_id(2) * TH

    # 9 taps -> 9 bf16 MXU matmuls with f32 accumulation, one accumulator per kx.
    # wp % 16 == 0 keeps the slab reshape layout-preserving for packed bf16.
    # TODO(synk): on v7x the 3 ky partial sums per kx could accumulate in the MRB via
    # pltpu.matmul_push_rhs / matmul_acc_lhs / matmul_pop instead of VMEM f32 adds.
    nflat = TH * wp
    accs = [None, None, None]
    for ky in range(3):
        slab = pad_ref[pl.ds(row0 + ky, TH), :, :].reshape(nflat, Cin)
        for kx in range(3):
            wk = w_ref[pl.ds((ky * 3 + kx) * Cin, Cin), :]
            d = jnp.dot(slab, wk, preferred_element_type=jnp.float32)
            accs[kx] = d if ky == 0 else accs[kx] + d

    # Shifted combine: out[y, x] = sum_kx acc_kx[y, x + kx + LEFT_PAD - 1] + bias.
    a0 = accs[0].reshape(TH, wp, tco)
    a1 = accs[1].reshape(TH, wp, tco)
    a2 = accs[2].reshape(TH, wp, tco)
    out = (a0[:, LEFT_PAD - 1:LEFT_PAD - 1 + W, :]
           + a1[:, LEFT_PAD:LEFT_PAD + W, :]
           + a2[:, LEFT_PAD + 1:LEFT_PAD + 1 + W, :]
           + b_ref[...])
    if apply_act:
        out = jnp.where(out >= 0, out, NEG_SLOPE * out)
    o_ref[...] = out.astype(o_ref.dtype)


def conv3x3(x, w_mat, bias, apply_act=True):
    """3x3 conv, padding=1, optional fused LeakyReLU(0.2). x: (B,H,W,Cin) bf16 NHWC."""
    B, H, W, Cin = x.shape
    Cout = w_mat.shape[1]
    wp = _round_up(W + LEFT_PAD + 1, 16)            # bf16 sublane tile -> free reshapes
    weight_stationary = (H <= 16) and (B > 1)       # small maps are weight-DMA-bound
    tco, TH = _pick_tiles(H, W, Cin, Cout, wp, weight_stationary)
    n_c = Cout // tco
    kernel = functools.partial(_conv3x3_kernel, apply_act=apply_act,
                               weight_stationary=weight_stationary)

    if weight_stationary:
        grid = (n_c, B)
        in_specs = [
            pl.BlockSpec((None, H, W, Cin), lambda c, b: (b, 0, 0, 0)),
            pl.BlockSpec((9 * Cin, tco), lambda c, b: (0, c)),
            pl.BlockSpec((1, tco), lambda c, b: (0, c)),
        ]
        out_specs = pl.BlockSpec((None, H, W, tco), lambda c, b: (b, 0, 0, c))
        dims = ("parallel", "arbitrary")
    else:
        n_h = H // TH
        grid = (B, n_c, n_h)
        in_specs = [
            pl.BlockSpec((None, H, W, Cin), lambda b, c, h: (b, 0, 0, 0)),
            pl.BlockSpec((9 * Cin, tco), lambda b, c, h: (0, c)),
            pl.BlockSpec((1, tco), lambda b, c, h: (0, c)),
        ]
        out_specs = pl.BlockSpec((None, TH, W, tco), lambda b, c, h: (b, h, 0, c))
        # batch axis parallel (v7x megacore); cout/h axes arbitrary so the per-batch
        # pad-scratch fill at (c==0, h==0) stays sequential on each core.
        dims = ("parallel", "arbitrary", "arbitrary")

    return pl.pallas_call(
        kernel,
        out_shape=jax.ShapeDtypeStruct((B, H, W, Cout), jnp.bfloat16),
        grid=grid,
        in_specs=in_specs,
        out_specs=out_specs,
        scratch_shapes=[pltpu.VMEM((H + 2, wp, Cin), jnp.bfloat16)],
        compiler_params=pltpu.CompilerParams(
            dimension_semantics=dims, vmem_limit_bytes=VMEM_LIMIT),
    )(x, w_mat, bias)


def _pool2_kernel(x_ref, o_ref, *, use_avg):
    # x_ref: (H, W, C) -> o_ref: (H//2, W//2, C), 2x2 window, stride 2 (f32 math).
    H, W, C = x_ref.shape
    x = x_ref[...].astype(jnp.float32).reshape(H // 2, 2, W, C)
    if use_avg:
        rows = 0.5 * (x[:, 0, :, :] + x[:, 1, :, :])
        y = rows.reshape(H // 2, W // 2, 2 * C)
        o_ref[...] = (0.5 * (y[:, :, :C] + y[:, :, C:])).astype(o_ref.dtype)
    else:
        rows = jnp.maximum(x[:, 0, :, :], x[:, 1, :, :])
        y = rows.reshape(H // 2, W // 2, 2 * C)
        o_ref[...] = jnp.maximum(y[:, :, :C], y[:, :, C:]).astype(o_ref.dtype)


def pool2(x, use_avg=False):
    # TODO(synk): could be fused into the preceding conv's epilogue to skip one HBM read.
    B, H, W, C = x.shape
    kernel = functools.partial(_pool2_kernel, use_avg=use_avg)
    return pl.pallas_call(
        kernel,
        out_shape=jax.ShapeDtypeStruct((B, H // 2, W // 2, C), x.dtype),
        grid=(B,),
        in_specs=[pl.BlockSpec((None, H, W, C), lambda b: (b, 0, 0, 0))],
        out_specs=pl.BlockSpec((None, H // 2, W // 2, C), lambda b: (b, 0, 0, 0)),
        compiler_params=pltpu.CompilerParams(
            dimension_semantics=("parallel",),
            vmem_limit_bytes=VMEM_LIMIT),
    )(x)


# ----------------------------------------------------------------------- JAX glue ops
def _upsample2x_axis(v, axis):
    # Exact PyTorch F.interpolate(scale_factor=2, mode='bilinear', align_corners=False)
    # along one spatial axis (separable).  Math stays in the input dtype (bf16) to
    # halve the HBM traffic of the intermediates.
    n = v.shape[axis]
    first = lax.slice_in_dim(v, 0, 1, axis=axis)
    last = lax.slice_in_dim(v, n - 1, n, axis=axis)
    prev = jnp.concatenate([first, lax.slice_in_dim(v, 0, n - 1, axis=axis)], axis=axis)
    nxt = jnp.concatenate([lax.slice_in_dim(v, 1, n, axis=axis), last], axis=axis)
    even = 0.25 * prev + 0.75 * v
    odd = 0.75 * v + 0.25 * nxt
    out = jnp.stack([even, odd], axis=axis + 1)
    shape = list(v.shape)
    shape[axis] = 2 * n
    return out.reshape(shape)


def upsample2x_bilinear(x):  # (B, H, W, C) bf16 in/out
    return _upsample2x_axis(_upsample2x_axis(x, 1), 2)


def conv1_1_jax(img, w9, bias):
    """conv1_1 (1 -> 256 channels) as a 9-tap im2col matmul in XLA (tiny; avoids
    wasting 127/128 of the MXU K dim on zero channels).  img: (B, 64, 64) f32."""
    B, H, W = img.shape
    p = jnp.pad(img, ((0, 0), (1, 1), (1, 1)))
    taps = [p[:, ky:ky + H, kx:kx + W] for ky in range(3) for kx in range(3)]
    stack = jnp.stack(taps, axis=-1)                        # (B, H, W, 9)
    out = jnp.einsum("bhwk,kc->bhwc", stack, w9) + bias
    out = jnp.where(out >= 0, out, NEG_SLOPE * out)
    return out.astype(jnp.bfloat16)


# --------------------------------------------------------------------------- parameters
_CONV3_DEFS = [                       # Pallas conv layers (conv1_1 / conv8 handled apart)
    ("conv1_2", 256, 256),
    ("conv2_1", 256, 512), ("conv2_2", 512, 512),
    ("conv3_1", 512, 512), ("conv3_2", 512, 512),
    ("conv4_1", 512, 512), ("conv4_2", 512, 512),
    ("deconv4", 512, 512),
    ("conv5_1", 1024, 512), ("conv5_2", 512, 512),
    ("deconv5", 512, 512),
    ("conv6_1", 1024, 512), ("conv6_2", 512, 512),
    ("deconv6", 512, 256),
    ("conv7_1", 512, 256), ("conv7_2", 256, 256),
]


def _uniform_init(key, w_shape, b_shape, fan_in):
    bound = 1.0 / math.sqrt(fan_in)
    kw, kb = jax.random.split(key)
    w = jax.random.uniform(kw, w_shape, jnp.float32, -bound, bound)
    b = jax.random.uniform(kb, b_shape, jnp.float32, -bound, bound)
    return w, b


def init_params(key, spec_width):
    keys = jax.random.split(key, len(_CONV3_DEFS) + 4)
    p = {}
    ki = 0

    # Linear1: spec_width -> 4096 (PyTorch weight shape (4096, spec_width))
    w, b = _uniform_init(keys[ki], (4096, spec_width), (4096,), spec_width); ki += 1
    p["lin1_w"], p["lin1_b"] = w.T, b

    # conv1_1: 1 -> 256, stored as a (9, 256) im2col weight (f32, used in XLA).
    w, b = _uniform_init(keys[ki], (256, 1, 3, 3), (256,), 9); ki += 1
    p["conv1_1_w"] = jnp.transpose(w, (2, 3, 1, 0)).reshape(9, 256)
    p["conv1_1_b"] = b

    # 3x3 convolutions: bf16 weights in (9*Cin, Cout) matmul form, f32 biases.
    for name, cin, cout in _CONV3_DEFS:
        w, b = _uniform_init(keys[ki], (cout, cin, 3, 3), (cout,), cin * 9); ki += 1
        wm = jnp.transpose(w, (2, 3, 1, 0))            # (3, 3, cin, cout)
        p[name + "_w"] = wm.reshape(9 * cin, cout).astype(jnp.bfloat16)
        p[name + "_b"] = b[None, :]

    # conv8: 1x1 conv, 256 -> 1 (channel reduction, done in plain jnp)
    w, b = _uniform_init(keys[ki], (1, 256, 1, 1), (1,), 256); ki += 1
    p["conv8_w"] = w.reshape(256)
    p["conv8_b"] = b

    # Linear2: 4096 -> spec_width
    w, b = _uniform_init(keys[ki], (spec_width, 4096), (spec_width,), 4096); ki += 1
    p["lin2_w"], p["lin2_b"] = w.T, b
    return p


# ------------------------------------------------------------------------------ forward
SKIP = True
SKIP_WEIGHT = 0.8
USE_AVGPOOL = False   # opt.use_avgpool == 0 -> MaxPool2d(2)


def unet_forward(x, p):
    b, c, sw = x.shape
    if c != 1:
        raise ValueError("conv1_1 has a single input channel; expected c == 1")
    # Linear1 (tiny; left to XLA) -> (b, 64, 64) single-channel image
    h = x.reshape(b * c, sw) @ p["lin1_w"] + p["lin1_b"]
    img = h.reshape(b, 64, 64)

    x1 = conv1_1_jax(img, p["conv1_1_w"], p["conv1_1_b"])
    conv1 = conv3x3(x1, p["conv1_2_w"], p["conv1_2_b"])
    x2 = pool2(conv1, USE_AVGPOOL)
    x2 = conv3x3(x2, p["conv2_1_w"], p["conv2_1_b"])
    conv2 = conv3x3(x2, p["conv2_2_w"], p["conv2_2_b"])
    x3 = pool2(conv2, USE_AVGPOOL)
    x3 = conv3x3(x3, p["conv3_1_w"], p["conv3_1_b"])
    conv3 = conv3x3(x3, p["conv3_2_w"], p["conv3_2_b"])
    x4 = pool2(conv3, USE_AVGPOOL)
    x4 = conv3x3(x4, p["conv4_1_w"], p["conv4_1_b"])
    conv4 = conv3x3(x4, p["conv4_2_w"], p["conv4_2_b"])

    # TODO(synk): the bilinear upsample + skip concat could be fused into deconvN /
    # convN_1 (split-K over the two concat halves) to avoid materializing the
    # (B,H,W,1024) concats; here they run in XLA in bf16.
    conv4 = upsample2x_bilinear(conv4)
    up5 = jnp.concatenate(
        [conv3x3(conv4, p["deconv4_w"], p["deconv4_b"], apply_act=False), conv3], axis=-1)
    x5 = conv3x3(up5, p["conv5_1_w"], p["conv5_1_b"])
    conv5 = conv3x3(x5, p["conv5_2_w"], p["conv5_2_b"])

    conv5 = upsample2x_bilinear(conv5)
    up6 = jnp.concatenate(
        [conv3x3(conv5, p["deconv5_w"], p["deconv5_b"], apply_act=False), conv2], axis=-1)
    x6 = conv3x3(up6, p["conv6_1_w"], p["conv6_1_b"])
    conv6 = conv3x3(x6, p["conv6_2_w"], p["conv6_2_b"])

    conv6 = upsample2x_bilinear(conv6)
    up7 = jnp.concatenate(
        [conv3x3(conv6, p["deconv6_w"], p["deconv6_b"], apply_act=False), conv1], axis=-1)
    x7 = conv3x3(up7, p["conv7_1_w"], p["conv7_1_b"])
    conv7 = conv3x3(x7, p["conv7_2_w"], p["conv7_2_b"])

    # conv8 (1x1, 256 -> 1) as a channel reduction + Linear2: tiny, left to XLA.
    B, H, W, C = conv7.shape
    lat = jnp.einsum("bhwc,c->bhw", conv7.astype(jnp.float32), p["conv8_w"])
    lat = lat + p["conv8_b"][0]
    latent = lat.reshape(b * c, H * W)                   # (b*c, 4096), H-major like NCHW
    latent = (latent @ p["lin2_w"] + p["lin2_b"]).reshape(b, c, sw)

    if SKIP:
        latent = jnp.tanh(latent)
        output = latent + x * SKIP_WEIGHT
        # Global min/max normalization over the whole tensor (matches torch.min/max).
        output = (output - jnp.min(output)) / (jnp.max(output) - jnp.min(output))
        return output, latent
    else:
        return jax.nn.sigmoid(latent)


# ----------------------------------------------------------------------- self checking
def _check_conv_against_xla(key, B, H, W, Cin, Cout):
    """Tolerance check of the Pallas conv3x3 (bf16 x bf16 -> f32) against XLA's conv."""
    kx, kw, kb = jax.random.split(key, 3)
    x = jax.random.normal(kx, (B, H, W, Cin), jnp.float32).astype(jnp.bfloat16)
    w = (jax.random.normal(kw, (3, 3, Cin, Cout), jnp.float32)
         / math.sqrt(9 * Cin)).astype(jnp.bfloat16)
    b = jax.random.normal(kb, (Cout,), jnp.float32) * 0.1

    out = conv3x3(x, w.reshape(9 * Cin, Cout), b[None, :], apply_act=True)
    ref = lax.conv_general_dilated(
        x.astype(jnp.float32), w.astype(jnp.float32), (1, 1), "SAME",
        dimension_numbers=("NHWC", "HWIO", "NHWC"),
        precision=lax.Precision.HIGHEST) + b
    ref = jnp.where(ref >= 0, ref, NEG_SLOPE * ref)

    err = float(jnp.max(jnp.abs(out.astype(jnp.float32) - ref)))
    scale = float(jnp.max(jnp.abs(ref))) + 1e-6
    assert err <= 0.05 * scale + 0.05, (err, scale)


# --------------------------------------------------------------------------------- main
if __name__ == "__main__":
    spec_width = 32
    key = jax.random.PRNGKey(0)
    kp, kx, kc1, kc2 = jax.random.split(key, 4)

    # Small-shape checks: weight-stationary path (H<=16) and batch-major H-tiled path.
    _check_conv_against_xla(kc1, B=2, H=16, W=16, Cin=128, Cout=256)
    _check_conv_against_xla(kc2, B=1, H=64, W=64, Cin=128, Cout=256)

    params = init_params(kp, spec_width)
    x = jax.random.uniform(kx, (2, 1, spec_width), jnp.float32)  # (batch, channels=1, spec_width)

    fwd = jax.jit(unet_forward)
    out, latent = fwd(x, params)
    jax.block_until_ready((out, latent))

    assert out.shape == (2, 1, spec_width)
    assert latent.shape == (2, 1, spec_width)
    assert bool(jnp.all(jnp.isfinite(out))) and bool(jnp.all(jnp.isfinite(latent)))
    print("KERNEL_OK")
</pallas_src>

<mosaic_0001>
module attributes {stable_mosaic.version = 11 : i64} {
  func.func @_conv3x3_kernel(%arg0: i32, %arg1: i32, %arg2: memref<1x16x16x128xbf16, #tpu.memory_space<vmem>>, %arg3: memref<1152x256xbf16, #tpu.memory_space<vmem>>, %arg4: memref<1x256xf32, #tpu.memory_space<vmem>>, %arg5: memref<1x16x16x256xbf16, #tpu.memory_space<vmem>>, %arg6: memref<18x32x128xbf16, #tpu.memory_space<vmem>>) attributes {dimension_semantics = [#tpu.dimension_semantics<parallel>, #tpu.dimension_semantics<arbitrary>], iteration_bounds = array<i64: 1, 2>, scalar_prefetch = 0 : i64, scratch_operands = 1 : i64, tpu.core_type = #tpu.core_type<tc>, window_params = [{transform_indices = @transform_0, window_bounds = array<i64: 1, 16, 16, 128>}, {transform_indices = @transform_1, window_bounds = array<i64: 1152, 256>}, {transform_indices = @transform_2, window_bounds = array<i64: 1, 256>}, {transform_indices = @transform_3, window_bounds = array<i64: 1, 16, 16, 256>}]} {
    %cst = arith.constant 0.000000e+00 : bf16
    %0 = vector.broadcast %cst : bf16 to vector<32x128xbf16>
    %c0 = arith.constant 0 : index
    %c0_0 = arith.constant 0 : index
    %c0_1 = arith.constant 0 : index
    %1 = vector.load %arg6[%c0, %c0_0, %c0_1] : memref<18x32x128xbf16, #tpu.memory_space<vmem>>, vector<1x32x128xbf16>
    %2 = vector.shape_cast %1 : vector<1x32x128xbf16> to vector<32x128xbf16>
    %3 = vector.shape_cast %0 : vector<32x128xbf16> to vector<1x32x128xbf16>
    tpu.vector_store %arg6[%c0, %c0_0, %c0_1], %3 {strides = array<i32>} : memref<18x32x128xbf16, #tpu.memory_space<vmem>>, vector<1x32x128xbf16>,
    %c17 = arith.constant 17 : index
    %c0_2 = arith.constant 0 : index
    %c0_3 = arith.constant 0 : index
    %4 = vector.load %arg6[%c17, %c0_2, %c0_3] : memref<18x32x128xbf16, #tpu.memory_space<vmem>>, vector<1x32x128xbf16>
    %5 = vector.shape_cast %4 : vector<1x32x128xbf16> to vector<32x128xbf16>
    %6 = vector.shape_cast %0 : vector<32x128xbf16> to vector<1x32x128xbf16>
    tpu.vector_store %arg6[%c17, %c0_2, %c0_3], %6 {strides = array<i32>} : memref<18x32x128xbf16, #tpu.memory_space<vmem>>, vector<1x32x128xbf16>,
    %cst_4 = arith.constant 0.000000e+00 : bf16
    %7 = vector.broadcast %cst_4 : bf16 to vector<16x2x128xbf16>
    %c1 = arith.constant 1 : index
    %c0_5 = arith.constant 0 : index
    %c0_6 = arith.constant 0 : index
    %8 = vector.load %arg6[%c1, %c0_5, %c0_6] : memref<18x32x128xbf16, #tpu.memory_space<vmem>>, vector<16x2x128xbf16>
    tpu.vector_store %arg6[%c1, %c0_5, %c0_6], %7 {strides = array<i32>} : memref<18x32x128xbf16, #tpu.memory_space<vmem>>, vector<16x2x128xbf16>,
    %cst_7 = arith.constant 0.000000e+00 : bf16
    %9 = vector.broadcast %cst_7 : bf16 to vector<16x14x128xbf16>
    %c1_8 = arith.constant 1 : index
    %c18 = arith.constant 18 : index
    %c0_9 = arith.constant 0 : index
    %10 = vector.load %arg6[%c1_8, %c18, %c0_9] : memref<18x32x128xbf16, #tpu.memory_space<vmem>>, vector<16x14x128xbf16>
    tpu.vector_store %arg6[%c1_8, %c18, %c0_9], %9 {strides = array<i32>} : memref<18x32x128xbf16, #tpu.memory_space<vmem>>, vector<16x14x128xbf16>,
    %c0_10 = arith.constant 0 : index
    %c0_11 = arith.constant 0 : index
    %c0_12 = arith.constant 0 : index
    %c0_13 = arith.constant 0 : index
    %11 = vector.load %arg2[%c0_10, %c0_11, %c0_12, %c0_13] : memref<1x16x16x128xbf16, #tpu.memory_space<vmem>>, vector<1x16x16x128xbf16>
    %12 = vector.shape_cast %11 : vector<1x16x16x128xbf16> to vector<16x16x128xbf16>
    %c1_14 = arith.constant 1 : index
    %c2 = arith.constant 2 : index
    %c0_15 = arith.constant 0 : index
    %13 = vector.load %arg6[%c1_14, %c2, %c0_15] : memref<18x32x128xbf16, #tpu.memory_space<vmem>>, vector<16x16x128xbf16>
    tpu.vector_store %arg6[%c1_14, %c2, %c0_15], %12 {strides = array<i32>} : memref<18x32x128xbf16, #tpu.memory_space<vmem>>, vector<16x16x128xbf16>,
    %c0_16 = arith.constant 0 : index
    %c0_17 = arith.constant 0 : index
    %c0_18 = arith.constant 0 : index
    %14 = vector.load %arg6[%c0_16, %c0_17, %c0_18] : memref<18x32x128xbf16, #tpu.memory_space<vmem>>, vector<16x32x128xbf16>
    %15 = vector.shape_cast %14 : vector<16x32x128xbf16> to vector<512x128xbf16>
    %c0_19 = arith.constant 0 : index
    %c0_20 = arith.constant 0 : index
    %16 = vector.load %arg3[%c0_19, %c0_20] : memref<1152x256xbf16, #tpu.memory_space<vmem>>, vector<128x256xbf16>
    %cst_21 = arith.constant dense<0.000000e+00> : vector<512x256xf32>
    %17 = tpu.matmul %15, %16, %cst_21 {dimension_numbers = #tpu.dot_dimension_numbers<[1], [0], [0], [1], [0, 0, 1, 1], [], []>} : vector<512x128xbf16>, vector<128x256xbf16>, vector<512x256xf32> -> vector<512x256xf32>
    %c128 = arith.constant 128 : index
    %c0_22 = arith.constant 0 : index
    %18 = vector.load %arg3[%c128, %c0_22] : memref<1152x256xbf16, #tpu.memory_space<vmem>>, vector<128x256xbf16>
    %cst_23 = arith.constant dense<0.000000e+00> : vector<512x256xf32>
    %19 = tpu.matmul %15, %18, %cst_23 {dimension_numbers = #tpu.dot_dimension_numbers<[1], [0], [0], [1], [0, 0, 1, 1], [], []>} : vector<512x128xbf16>, vector<128x256xbf16>, vector<512x256xf32> -> vector<512x256xf32>
    %c256 = arith.constant 256 : index
    %c0_24 = arith.constant 0 : index
    %20 = vector.load %arg3[%c256, %c0_24] : memref<1152x256xbf16, #tpu.memory_space<vmem>>, vector<128x256xbf16>
    %cst_25 = arith.constant dense<0.000000e+00> : vector<512x256xf32>
    %21 = tpu.matmul %15, %20, %cst_25 {dimension_numbers = #tpu.dot_dimension_numbers<[1], [0], [0], [1], [0, 0, 1, 1], [], []>} : vector<512x128xbf16>, vector<128x256xbf16>, vector<512x256xf32> -> vector<512x256xf32>
    %c1_26 = arith.constant 1 : index
    %c0_27 = arith.constant 0 : index
    %c0_28 = arith.constant 0 : index
    %22 = vector.load %arg6[%c1_26, %c0_27, %c0_28] : memref<18x32x128xbf16, #tpu.memory_space<vmem>>, vector<16x32x128xbf16>
    %23 = vector.shape_cast %22 : vector<16x32x128xbf16> to vector<512x128xbf16>
    %c384 = arith.constant 384 : index
    %c0_29 = arith.constant 0 : index
    %24 = vector.load %arg3[%c384, %c0_29] : memref<1152x256xbf16, #tpu.memory_space<vmem>>, vector<128x256xbf16>
    %cst_30 = arith.constant dense<0.000000e+00> : vector<512x256xf32>
    %25 = tpu.matmul %23, %24, %cst_30 {dimension_numbers = #tpu.dot_dimension_numbers<[1], [0], [0], [1], [0, 0, 1, 1], [], []>} : vector<512x128xbf16>, vector<128x256xbf16>, vector<512x256xf32> -> vector<512x256xf32>
    %26 = arith.addf %17, %25 : vector<512x256xf32>
    %c512 = arith.constant 512 : index
    %c0_31 = arith.constant 0 : index
    %27 = vector.load %arg3[%c512, %c0_31] : memref<1152x256xbf16, #tpu.memory_space<vmem>>, vector<128x256xbf16>
    %cst_32 = arith.constant dense<0.000000e+00> : vector<512x256xf32>
    %28 = tpu.matmul %23, %27, %cst_32 {dimension_numbers = #tpu.dot_dimension_numbers<[1], [0], [0], [1], [0, 0, 1, 1], [], []>} : vector<512x128xbf16>, vector<128x256xbf16>, vector<512x256xf32> -> vector<512x256xf32>
    %29 = arith.addf %19, %28 : vector<512x256xf32>
    %c640 = arith.constant 640 : index
    %c0_33 = arith.constant 0 : index
    %30 = vector.load %arg3[%c640, %c0_33] : memref<1152x256xbf16, #tpu.memory_space<vmem>>, vector<128x256xbf16>
    %cst_34 = arith.constant dense<0.000000e+00> : vector<512x256xf32>
    %31 = tpu.matmul %23, %30, %cst_34 {dimension_numbers = #tpu.dot_dimension_numbers<[1], [0], [0], [1], [0, 0, 1, 1], [], []>} : vector<512x128xbf16>, vector<128x256xbf16>, vector<512x256xf32> -> vector<512x256xf32>
    %32 = arith.addf %21, %31 : vector<512x256xf32>
    %c2_35 = arith.constant 2 : index
    %c0_36 = arith.constant 0 : index
    %c0_37 = arith.constant 0 : index
    %33 = vector.load %arg6[%c2_35, %c0_36, %c0_37] : memref<18x32x128xbf16, #tpu.memory_space<vmem>>, vector<16x32x128xbf16>
    %34 = vector.shape_cast %33 : vector<16x32x128xbf16> to vector<512x128xbf16>
    %c768 = arith.constant 768 : index
    %c0_38 = arith.constant 0 : index
    %35 = vector.load %arg3[%c768, %c0_38] : memref<1152x256xbf16, #tpu.memory_space<vmem>>, vector<128x256xbf16>
    %cst_39 = arith.constant dense<0.000000e+00> : vector<512x256xf32>
    %36 = tpu.matmul %34, %35, %cst_39 {dimension_numbers = #tpu.dot_dimension_numbers<[1], [0], [0], [1], [0, 0, 1, 1], [], []>} : vector<512x128xbf16>, vector<128x256xbf16>, vector<512x256xf32> -> vector<512x256xf32>
    %37 = arith.addf %26, %36 : vector<512x256xf32>
    %c896 = arith.constant 896 : index
    %c0_40 = arith.constant 0 : index
    %38 = vector.load %arg3[%c896, %c0_40] : memref<1152x256xbf16, #tpu.memory_space<vmem>>, vector<128x256xbf16>
    %cst_41 = arith.constant dense<0.000000e+00> : vector<512x256xf32>
    %39 = tpu.matmul %34, %38, %cst_41 {dimension_numbers = #tpu.dot_dimension_numbers<[1], [0], [0], [1], [0, 0, 1, 1], [], []>} : vector<512x128xbf16>, vector<128x256xbf16>, vector<512x256xf32> -> vector<512x256xf32>
    %40 = arith.addf %29, %39 : vector<512x256xf32>
    %c1024 = arith.constant 1024 : index
    %c0_42 = arith.constant 0 : index
    %41 = vector.load %arg3[%c1024, %c0_42] : memref<1152x256xbf16, #tpu.memory_space<vmem>>, vector<128x256xbf16>
    %cst_43 = arith.constant dense<0.000000e+00> : vector<512x256xf32>
    %42 = tpu.matmul %34, %41, %cst_43 {dimension_numbers = #tpu.dot_dimension_numbers<[1], [0], [0], [1], [0, 0, 1, 1], [], []>} : vector<512x128xbf16>, vector<128x256xbf16>, vector<512x256xf32> -> vector<512x256xf32>
    %43 = arith.addf %32, %42 : vector<512x256xf32>
    %44 = vector.shape_cast %37 : vector<512x256xf32> to vector<16x32x256xf32>
    %45 = vector.shape_cast %40 : vector<512x256xf32> to vector<16x32x256xf32>
    %46 = vector.shape_cast %43 : vector<512x256xf32> to vector<16x32x256xf32>
    %47 = vector.extract_strided_slice %44 {offsets = [0, 1, 0], sizes = [16, 16, 256], strides = [1, 1, 1]} : vector<16x32x256xf32> to vector<16x16x256xf32>
    %48 = vector.extract_strided_slice %45 {offsets = [0, 2, 0], sizes = [16, 16, 256], strides = [1, 1, 1]} : vector<16x32x256xf32> to vector<16x16x256xf32>
    %49 = arith.addf %47, %48 : vector<16x16x256xf32>
    %50 = vector.extract_strided_slice %46 {offsets = [0, 3, 0], sizes = [16, 16, 256], strides = [1, 1, 1]} : vector<16x32x256xf32> to vector<16x16x256xf32>
    %51 = arith.addf %49, %50 : vector<16x16x256xf32>
    %c0_44 = arith.constant 0 : index
    %c0_45 = arith.constant 0 : index
    %52 = vector.load %arg4[%c0_44, %c0_45] : memref<1x256xf32, #tpu.memory_space<vmem>>, vector<1x256xf32>
    %53 = vector.shape_cast %52 : vector<1x256xf32> to vector<1x1x256xf32>
    %54 = vector.broadcast %53 : vector<1x1x256xf32> to vector<16x16x256xf32>
    %55 = arith.addf %51, %54 : vector<16x16x256xf32>
    %cst_46 = arith.constant 0.000000e+00 : f32
    %56 = vector.broadcast %cst_46 : f32 to vector<16x16x256xf32>
    %57 = arith.cmpf oge, %55, %56 : vector<16x16x256xf32>
    %cst_47 = arith.constant 2.000000e-01 : f32
    %58 = vector.broadcast %cst_47 : f32 to vector<16x16x256xf32>
    %59 = arith.mulf %58, %55 : vector<16x16x256xf32>
    %60 = arith.select %57, %55, %59 : vector<16x16x256xi1>, vector<16x16x256xf32>
    %61 = arith.truncf %60 : vector<16x16x256xf32> to vector<16x16x256xbf16>
    %c0_48 = arith.constant 0 : index
    %c0_49 = arith.constant 0 : index
    %c0_50 = arith.constant 0 : index
    %c0_51 = arith.constant 0 : index
    %62 = vector.load %arg5[%c0_48, %c0_49, %c0_50, %c0_51] : memref<1x16x16x256xbf16, #tpu.memory_space<vmem>>, vector<1x16x16x256xbf16>
    %63 = vector.shape_cast %62 : vector<1x16x16x256xbf16> to vector<16x16x256xbf16>
    %64 = vector.shape_cast %61 : vector<16x16x256xbf16> to vector<1x16x16x256xbf16>
    tpu.vector_store %arg5[%c0_48, %c0_49, %c0_50, %c0_51], %64 {strides = array<i32>} : memref<1x16x16x256xbf16, #tpu.memory_space<vmem>>, vector<1x16x16x256xbf16>,
    return
  }
  func.func @transform_0(%arg0: i32, %arg1: i32) -> (i32, i32, i32, i32) {
    %c0_i32 = arith.constant 0 : i32
    %c0_i32_0 = arith.constant 0 : i32
    %c0_i32_1 = arith.constant 0 : i32
    %c0_i32_2 = arith.constant 0 : i32
    return %arg1, %c0_i32, %c0_i32_0, %c0_i32_1 : i32, i32, i32, i32
  }
  func.func @transform_1(%arg0: i32, %arg1: i32) -> (i32, i32) {
    %c0_i32 = arith.constant 0 : i32
    %c0_i32_0 = arith.constant 0 : i32
    return %c0_i32, %arg0 : i32, i32
  }
  func.func @transform_2(%arg0: i32, %arg1: i32) -> (i32, i32) {
    %c0_i32 = arith.constant 0 : i32
    %c0_i32_0 = arith.constant 0 : i32
    return %c0_i32, %arg0 : i32, i32
  }
  func.func @transform_3(%arg0: i32, %arg1: i32) -> (i32, i32, i32, i32) {
    %c0_i32 = arith.constant 0 : i32
    %c0_i32_0 = arith.constant 0 : i32
    %c0_i32_1 = arith.constant 0 : i32
    return %arg1, %c0_i32, %c0_i32_0, %arg0 : i32, i32, i32, i32
  }
}

</mosaic_0001>

<bundles_post_ra>
// kernel: tpu_custom_call.1
= control target key start
LH: loop header
LB: loop body
LE: loop exit
PB: predicated region body
PF: predicated region fallthrough
CT: control target
= control target key end

     0   :  { %8 = vsyncpa [#allocation4], 0  ;;  %s10779_s0 = inlined_call_operand.hbm [shape: bf16[2,16,16,128], index: 0, kind: input, shape index: {}]   ;;  %s10780_s1 = inlined_call_operand.hbm [shape: bf16[1152,256], index: 1, kind: input, shape index: {}]   ;;  %s10781_s2 = inlined_call_operand.vmem [shape: f32[1,256], index: 2, kind: input, shape index: {}]   ;;  %s10782_s3 = inlined_call_operand.hbm [shape: bf16[2,16,16,256], index: 3, kind: output, shape index: {}]  }
   0x1   :  { %10 = vsyncpa [#allocation4 + $0x1], 0 }
   0x2   :  { %11 = vsyncpa [#allocation7], 0 }
   0x3   :  { %12 = vsyncpa [#allocation5], 0 }
   0x4   :  { %14 = vsyncpa [#allocation5 + $0x1], 0  ;;  %s8194_s12 = smov 0   ;;  %s8196_s13 = smov 0  }
   0x5   :  { %s8198_s14 = smov 0   ;;  %s8200_s15 = smov 0  }
   0x6   :  { %s8202_s16 = smov 0   ;;  %s8204_s17 = smov 0  }
   0x7 LB: > { %s6741_s18 = sadd.s32 4294967295, %s8162_s17   ;;  %s6742_s19 = sadd.s32 4294967294, %s8162_s17   ;;  %s8162_s17 = sphi %s8204_s17, %s20_s17   ;;  %s8158_s16 = sphi %s8202_s16, %s11082_s16   ;;  %s8154_s15 = sphi %s8200_s15, %s11081_s15   ;;  %s8150_s14 = sphi %s8198_s14, %s11080_s14   ;;  %s8146_s13 = sphi %s8196_s13, %s11079_s13   ;;  %s8142_s12 = sphi %s8194_s12, %s11078_s12  }
   0x8   : > { %p52_p0 = scmp.ne.s32.totalorder %s8146_s13, %s8142_s12  ;;  %p8228_p1 = scmp.eq.s32.totalorder %s6741_s18, 0 }
   0x9   : > { %p8232_p2 = scmp.eq.s32.totalorder %s6741_s18, 1  ;;  %p136_p3 = scmp.eq.s32.totalorder %s6742_s19, 1 }
   0xa   : > { %s10792_s20 = scalar_select %p8228_p1, 1, 0 }
   0xb   : > { %s10793_s21 = scalar_select %p8232_p2, 1, 0 }
   0xc   : > { %p8238_p4 = por %p8228_p1, %p52_p0  ;;  %p6743_p5 = scmp.ge.s32.totalorder %s8162_s17, 1 }
   0xd   : > { %p8243_p6 = por %p136_p3, %p52_p0  ;;  %p143_p7 = scmp.lt.s32.totalorder %s8162_s17, 3 }
   0xe   : > { %s10794_s22 = scalar_select %p8238_p4, 1, 0 }
   0xf   : > { %s10795_s23 = scalar_select %p8243_p6, 1, 0 }
  0x10   : > { %p8248_p8 = pnand %p6743_p5, %p143_p7  ;;  %s8164_s25 = smov [#allocation6]  }
  0x11   : > { %s158_s26 = sshll.u32 %s8164_s25, 4  ;;  %s29_s28 = sadd.s32 1, %s8158_s16  ;;  %s159_s26 = int_to_ptr.vmem [resolvable:$true] %s158_s26 }
  0x12   : > { %s10796_s24 = scalar_select %p8248_p8, 1, 0 }
  0x13   : > { %p7681_p9 = pneg %p8248_p8  ;;  %s8018_s4 = scalar_lea.hbm %s10780_s1, 18432 }
  0x14   : > { %p8019_p12 = scmp.ne.s32.totalorder %s10780_s1, %s8018_s4  ;;  %p8025_p5 = scmp.lt.u32.totalorder %s8018_s4, %s10780_s1 }
  0x15   : > { %p8257_p11 = pnand %p7681_p9, %p8228_p1 }
  0x17   : > { %p8020_p13 = pneg %p8257_p11 }
  0x19   : > { %p8021_p0 = pnand %p8020_p13, %p8019_p12 }
  0x1b   : > { %p8022_p3 = pneg %p8021_p0 }
  0x1d   : > { %p8027_p7 = pnand %p8025_p5, %p8022_p3 }
  0x1f   : > { %8030 = shalt.err (!%p8027_p7)
}
  0x20   : > { %s8031_s9 = scalar_lea.vmem %s159_s26, 18432  ;;  %p8039_p1 = scmp.lt.s32.totalorder %s159_s26, %s159_s26 }
  0x21   : > { %p8032_p9 = scmp.ne.s32.totalorder %s159_s26, %s8031_s9  ;;  %p8040_p4 = scmp.lt.s32.totalorder %s8031_s9, %s8031_s9 }
  0x23   : > { %p8034_p10 = pnand %p8032_p9, %p8020_p13  ;;  %p8041_p8 = por %p8040_p4, %p8039_p1 }
  0x25   : > { %p8035_p6 = pneg %p8034_p10 }
  0x27   : > { %p8042_p2 = pnand %p8041_p8, %p8035_p6 }
  0x29   : > { %8045 = shalt.err (!%p8042_p2)
}
  0x2a   : > { %s8165_s10 = smov 128   ;;  %s8166_s11 = smov 8  }
  0x2b   : > { %7684 = dma.hbm_to_vmem [thread:$0]  (!%p8257_p11), %s10780_s1, 18432, %s159_s26, [#allocation7], %s8165_s10, %s8165_s10, %s8166_s11  }
  0x2c   : > { %p30_p1 = scmp.ge.s32.totalorder %s29_s28, 2  ;;  %s39_s25 = sadd.s32 1, %s8150_s14 }
  0x2d   : > { %p46_p2 = scmp.ne.s32.totalorder %s8150_s14, %s8146_s13  ;;  %p47_p4 = scmp.eq.s32.totalorder %s8162_s17, 0 }
  0x2e   : > { %s11084_s28 = smov (%p30_p1, %s29_s28), 0  ;;  %p10799_p8 = scmp.ne.s32.totalorder %s10793_s21, 0 }
  0x2f   : > { %p8284_p6 = por %p47_p4, %p46_p2  ;;  %s36_s27 = ssub.s32 %s8158_s16, %s11084_s28 }
  0x30   : > { %p8290_p10 = por %p10799_p8, %p46_p2  ;;  %p7694_p12 = scmp.lt.s32.totalorder %s8162_s17, 2 }
  0x31   : > { %p37_p11 = scmp.eq.s32.totalorder %s36_s27, 0  ;;  %s180_s26 = sand.u32 1, %s8150_s14  }
  0x32   : > { %s6747_s4 = sshll.u32 %s180_s26, 7  ;;  %s6967_s6 = sshll.u32 %s8158_s16, 11 }
  0x33   : > { %s8299_s5 = scalar_select %p37_p11, %s8150_s14, %s39_s25  }
  0x34   : > { %s8305_s9 = scalar_lea.hbm %s10779_s0, %s6967_s6  ;;  %s184_s21 = scalar_lea.vmem [#allocation3], %s6747_s4 }
  0x35   : > { %s191_s10 = sshll.u32 %s184_s21, 4  ;;  %p8311_p13 = pnand %p7694_p12, %p8284_p6  ;;  %s8307_s10 = int_to_ptr.vmem [resolvable:$true] %s191_s10 }
  0x36   : > { %s8315_s18 = scalar_lea.sflag [#allocation4], %s180_s26  ;;  %s8046_s19 = scalar_lea.hbm %s8305_s9, 2048 }
  0x37   : > { %p8047_p0 = scmp.ne.s32.totalorder %s8305_s9, %s8046_s19  ;;  %p8048_p3 = pneg %p8311_p13 }
  0x38   : > { %s8051_s29 = scalar_lea.hbm %s10779_s0, 4096  ;;  %p8052_p9 = scmp.lt.u32.totalorder %s8305_s9, %s10779_s0 }
  0x39   : > { %p8049_p5 = pnand %p8048_p3, %p8047_p0  ;;  %p8053_p1 = scmp.lt.u32.totalorder %s8051_s29, %s8046_s19 }
  0x3a   : > { %p8055_p4 = scmp.lt.u32.totalorder %s8046_s19, %s8305_s9 }
  0x3b   : > { %p8050_p7 = pneg %p8049_p5  ;;  %p8054_p2 = por %p8053_p1, %p8052_p9 }
  0x3d   : > { %p8056_p6 = por %p8055_p4, %p8054_p2 }
  0x3f   : > { %p8057_p8 = pnand %p8056_p6, %p8050_p7 }
  0x41   : > { %8060 = shalt.err (!%p8057_p8)
}
  0x42   : > { %s8061_s26 = scalar_lea.vmem %s8307_s10, 2048  ;;  %s8167_s7 = smov [#allocation3]  }
  0x43   : > { %p8062_p12 = scmp.ne.s32.totalorder %s8307_s10, %s8061_s26  ;;  %s8066_s8 = sshll.u32 %s8167_s7, 4  ;;  %s8067_s8 = int_to_ptr.vmem [resolvable:$false] %s8066_s8 }
  0x44   : > { %s8068_s21 = scalar_lea.vmem %s8067_s8, 4096  ;;  %p8069_p5 = scmp.lt.s32.totalorder %s8307_s10, %s8067_s8 }
  0x45   : > { %p8064_p11 = pnand %p8062_p12, %p8048_p3  ;;  %p8070_p9 = scmp.lt.s32.totalorder %s8068_s21, %s8061_s26 }
  0x47   : > { %p8065_p0 = pneg %p8064_p11  ;;  %p8071_p1 = por %p8070_p9, %p8069_p5 }
  0x49   : > { %p8072_p2 = pnand %p8071_p1, %p8065_p0 }
  0x4b   : > { %8075 = shalt.err (!%p8072_p2)
}
  0x4c   : > { %s8168_s19 = smov 64   ;;  %s8169_s25 = smov 4  }
  0x4d   : > { %7688 = dma.hbm_to_vmem [thread:$0]  (!%p8311_p13), %s8305_s9, 2048, %s8307_s10, %s8315_s18, %s8168_s19, %s8168_s19, %s8169_s25  }
  0x4e   : > { %p10802_p3 = scmp.ne.s32.totalorder %s10796_s24, 0 }
  0x50   : > { %203 = sbr.rel (%p10802_p3) target bundleno = 1568 (0x620), region = 32 }
  0x57   : > { %s8346_s27 = sand.u32 1, %s8146_s13   ;;  %p10803_p7 = scmp.ne.s32.totalorder %s10794_s22, 0 }
  0x58   : > { %s6751_s29 = sshll.u32 %s8346_s27, 7  ;;  %s206_s4 = scalar_lea.sflag [#allocation4], %s8346_s27 }
  0x59   : > { %s8350_s6 = scalar_lea.vmem [#allocation3], %s6751_s29 }
  0x5a   : > { %8129 = dma.done.wait (%p10803_p7), %s206_s4, 2048  }
  0x5b   : > { %8131 = vsyncadd (%p10803_p7), %s206_s4, 4294965248  ;;  %p10804_p13 = scmp.ne.s32.totalorder %s10792_s20, 0 }
  0x5d   : > { %8133 = dma.done.wait (%p10804_p13), [#allocation7], 18432  }
  0x5e   : > { %8135 = vsyncadd (%p10804_p13), [#allocation7], 4294948864  ;;  %v8170_v0 = vmov 0   ;;  %v7753_v1 = vld [vmem:[#allocation6 + $0x184] ss:$8 sps:$4 sm:$0xff]   ;;  %v7809_v36 = vld [vmem:[%s8350_s6 + $0x10] sm:$0xff]  }
  0x5f   : > { %702 = vmatprep.mubr.bf16.mxu1 %v8170_v0  ;;  %248 = vst [vmem:[#allocation2] sm:$0xff] %v8170_v0  ;;  %254 = vst [vmem:[#allocation2 + $0x10] sm:$0x1] %v8170_v0  ;;  %1103 = vmatprep.mubr.bf16.mxu0 %v8170_v0  ;;  %v8395_v2 = vld [vmem:[#allocation6 + $0x4] ss:$8 sps:$4 sm:$0xff]   ;;  %v400_v39 = vrot.slane %v7809_v36, 7 }
  0x60   : > { %255 = vst [vmem:[#allocation2 + $0x20] sm:$0x1] %v8170_v0  ;;  %256 = vst [vmem:[#allocation2 + $0x30] sm:$0x1] %v8170_v0  ;;  %670 = vmatprep.subr.bf16.mxu1 %v7753_v1  ;;  %v7757_v3 = vld [vmem:[#allocation6 + $0x180] ss:$8 sps:$4 sm:$0xff]   ;;  %1071 = vmatprep.subr.bf16.mxu0 %v8395_v2 }
  0x61   : > { %257 = vst [vmem:[#allocation2 + $0x40] sm:$0x1] %v8170_v0  ;;  %258 = vst [vmem:[#allocation2 + $0x50] sm:$0x1] %v8170_v0  ;;  %v8397_v4 = vld [vmem:[#allocation6] ss:$8 sps:$4 sm:$0xff]   ;;  %671 = vmatpush1.bf16.msra.mxu1 %v7757_v3 }
  0x62   : > { %259 = vst [vmem:[#allocation2 + $0x60] sm:$0x1] %v8170_v0  ;;  %260 = vst [vmem:[#allocation2 + $0x70] sm:$0x1] %v8170_v0  ;;  %v7759_v5 = vld [vmem:[#allocation6 + $0x194] ss:$8 sps:$4 sm:$0xff]   ;;  %1072 = vmatpush1.bf16.msra.mxu0 %v8397_v4 }
  0x63   : > { %261 = vst [vmem:[#allocation2 + $0x80] sm:$0x1] %v8170_v0  ;;  %262 = vst [vmem:[#allocation2 + $0x90] sm:$0x1] %v8170_v0  ;;  %v8401_v6 = vld [vmem:[#allocation6 + $0x14] ss:$8 sps:$4 sm:$0xff]   ;;  %672 = vmatprep.subr.bf16.mxu1 %v7759_v5 }
  0x64   : > { %263 = vst [vmem:[#allocation2 + $0xa0] sm:$0x1] %v8170_v0  ;;  %264 = vst [vmem:[#allocation2 + $0xb0] sm:$0x1] %v8170_v0  ;;  %v7763_v7 = vld [vmem:[#allocation6 + $0x190] ss:$8 sps:$4 sm:$0xff]   ;;  %1073 = vmatprep.subr.bf16.mxu0 %v8401_v6 }
  0x65   : > { %265 = vst [vmem:[#allocation2 + $0xc0] sm:$0x1] %v8170_v0  ;;  %266 = vst [vmem:[#allocation2 + $0xd0] sm:$0x1] %v8170_v0  ;;  %v8403_v8 = vld [vmem:[#allocation6 + $0x10] ss:$8 sps:$4 sm:$0xff]   ;;  %673 = vmatpush1.bf16.msra.mxu1 %v7763_v7 }
  0x66   : > { %267 = vst [vmem:[#allocation2 + $0xe0] sm:$0x1] %v8170_v0  ;;  %268 = vst [vmem:[#allocation2 + $0xf0] sm:$0x1] %v8170_v0  ;;  %v7765_v9 = vld [vmem:[#allocation6 + $0x1a4] ss:$8 sps:$4 sm:$0xff]   ;;  %1074 = vmatpush1.bf16.msra.mxu0 %v8403_v8 }
  0x67   : > { %269 = vst [vmem:[#allocation2 + $0x100] sm:$0x1] %v8170_v0  ;;  %270 = vst [vmem:[#allocation2 + $0x18] sm:$0xfe] %v8170_v0  ;;  %v8406_v10 = vld [vmem:[#allocation6 + $0x24] ss:$8 sps:$4 sm:$0xff]   ;;  %674 = vmatprep.subr.bf16.mxu1 %v7765_v9 }
  0x68   : > { %271 = vst [vmem:[#allocation2 + $0x28] sm:$0xfe] %v8170_v0  ;;  %272 = vst [vmem:[#allocation2 + $0x38] sm:$0xfe] %v8170_v0  ;;  %v7769_v11 = vld [vmem:[#allocation6 + $0x1a0] ss:$8 sps:$4 sm:$0xff]   ;;  %1075 = vmatprep.subr.bf16.mxu0 %v8406_v10 }
  0x69   : > { %273 = vst [vmem:[#allocation2 + $0x48] sm:$0xfe] %v8170_v0  ;;  %274 = vst [vmem:[#allocation2 + $0x58] sm:$0xfe] %v8170_v0  ;;  %v8408_v12 = vld [vmem:[#allocation6 + $0x20] ss:$8 sps:$4 sm:$0xff]   ;;  %675 = vmatpush1.bf16.msra.mxu1 %v7769_v11 }
  0x6a   : > { %275 = vst [vmem:[#allocation2 + $0x68] sm:$0xfe] %v8170_v0  ;;  %276 = vst [vmem:[#allocation2 + $0x78] sm:$0xfe] %v8170_v0  ;;  %v7771_v13 = vld [vmem:[#allocation6 + $0x1b4] ss:$8 sps:$4 sm:$0xff]   ;;  %1076 = vmatpush1.bf16.msra.mxu0 %v8408_v12 }
  0x6b   : > { %277 = vst [vmem:[#allocation2 + $0x88] sm:$0xfe] %v8170_v0  ;;  %278 = vst [vmem:[#allocation2 + $0x98] sm:$0xfe] %v8170_v0  ;;  %v8412_v14 = vld [vmem:[#allocation6 + $0x34] ss:$8 sps:$4 sm:$0xff]   ;;  %676 = vmatprep.subr.bf16.mxu1 %v7771_v13 }
  0x6c   : > { %279 = vst [vmem:[#allocation2 + $0xa8] sm:$0xfe] %v8170_v0  ;;  %280 = vst [vmem:[#allocation2 + $0xb8] sm:$0xfe] %v8170_v0  ;;  %v7775_v15 = vld [vmem:[#allocation6 + $0x1b0] ss:$8 sps:$4 sm:$0xff]   ;;  %1077 = vmatprep.subr.bf16.mxu0 %v8412_v14 }
  0x6d   : > { %281 = vst [vmem:[#allocation2 + $0xc8] sm:$0xfe] %v8170_v0  ;;  %282 = vst [vmem:[#allocation2 + $0xd8] sm:$0xfe] %v8170_v0  ;;  %v8415_v16 = vld [vmem:[#allocation6 + $0x30] ss:$8 sps:$4 sm:$0xff]   ;;  %677 = vmatpush1.bf16.msra.mxu1 %v7775_v15 }
  0x6e   : > { %283 = vst [vmem:[#allocation2 + $0xe8] sm:$0xfe] %v8170_v0  ;;  %284 = vst [vmem:[#allocation2 + $0xf8] sm:$0xfe] %v8170_v0  ;;  %v7777_v17 = vld [vmem:[#allocation6 + $0x1c4] ss:$8 sps:$4 sm:$0xff]   ;;  %1078 = vmatpush1.bf16.msra.mxu0 %v8415_v16 }
  0x6f   : > { %285 = vst [vmem:[#allocation2 + $0x108] sm:$0xfe] %v8170_v0  ;;  %v8418_v18 = vld [vmem:[#allocation6 + $0x44] ss:$8 sps:$4 sm:$0xff]   ;;  %v7781_v19 = vld [vmem:[#allocation6 + $0x1c0] ss:$8 sps:$4 sm:$0xff]   ;;  %678 = vmatprep.subr.bf16.mxu1 %v7777_v17 }
  0x70   : > { %v8420_v20 = vld [vmem:[#allocation6 + $0x40] ss:$8 sps:$4 sm:$0xff]   ;;  %v7783_v21 = vld [vmem:[#allocation6 + $0x1d4] ss:$8 sps:$4 sm:$0xff]   ;;  %1079 = vmatprep.subr.bf16.mxu0 %v8418_v18  ;;  %v7787_v23 = vld [vmem:[#allocation6 + $0x1d0] ss:$8 sps:$4 sm:$0xff]  }
  0x71   : > { %v8424_v22 = vld [vmem:[#allocation6 + $0x54] ss:$8 sps:$4 sm:$0xff]   ;;  %679 = vmatpush1.bf16.msra.mxu1 %v7781_v19  ;;  %v8427_v24 = vld [vmem:[#allocation6 + $0x50] ss:$8 sps:$4 sm:$0xff]   ;;  %v7789_v25 = vld [vmem:[#allocation6 + $0x1e4] ss:$8 sps:$4 sm:$0xff]  }
  0x72   : > { %1080 = vmatpush1.bf16.msra.mxu0 %v8420_v20  ;;  %680 = vmatprep.subr.bf16.mxu1 %v7783_v21  ;;  %v8430_v26 = vld [vmem:[#allocation6 + $0x64] ss:$8 sps:$4 sm:$0xff]   ;;  %v7793_v28 = vld [vmem:[#allocation6 + $0x1e0] ss:$8 sps:$4 sm:$0xff]   ;;  %v7795_v32 = vld [vmem:[#allocation6 + $0x1f4] ss:$8 sps:$4 sm:$0xff]  }
  0x73   : > { %1081 = vmatprep.subr.bf16.mxu0 %v8424_v22  ;;  %v7801_v27 = vld [vmem:[%s8350_s6] sm:$0xff]   ;;  %v7805_v31 = vld [vmem:[%s8350_s6 + $0x8] sm:$0xff]   ;;  %v8438_v33 = vld [vmem:[#allocation6 + $0x74] ss:$8 sps:$4 sm:$0xff]   ;;  %434 = vst [vmem:[#allocation2 + $0x30] sm:$0xfe] %v400_v39 }
  0x74   : > { %v8433_v29 = vld [vmem:[#allocation6 + $0x60] ss:$8 sps:$4 sm:$0xff]   ;;  %v398_v30 = vrot.slane %v7801_v27, 7  ;;  %v7799_v34 = vld [vmem:[#allocation6 + $0x1f0] ss:$8 sps:$4 sm:$0xff]   ;;  %v399_v35 = vrot.slane %v7805_v31, 7 }
  0x75   : > { %681 = vmatpush1.bf16.msra.mxu1 %v7787_v23  ;;  %v8441_v37 = vld [vmem:[#allocation6 + $0x70] ss:$8 sps:$4 sm:$0xff]   ;;  %v7804_v38 = vld [vmem:[#allocation6 + $0x284] ss:$8 sps:$4 sm:$0xff]   ;;  %435 = vst [vmem:[#allocation2 + $0x38] sm:$0x1] %v400_v39 }
  0x76   : > { %1082 = vmatpush1.bf16.msra.mxu0 %v8427_v24  ;;  %682 = vmatprep.subr.bf16.mxu1 %v7789_v25  ;;  %430 = vst [vmem:[#allocation2 + $0x10] sm:$0xfe] %v398_v30  ;;  %431 = vst [vmem:[#allocation2 + $0x18] sm:$0x1] %v398_v30  ;;  %v7813_v40 = vld [vmem:[%s8350_s6 + $0x18] sm:$0xff]   ;;  %v7817_v42 = vld [vmem:[%s8350_s6 + $0x20] sm:$0xff]  }
  0x77   : > { %1083 = vmatprep.subr.bf16.mxu0 %v8430_v26  ;;  %432 = vst [vmem:[#allocation2 + $0x20] sm:$0xfe] %v399_v35  ;;  %433 = vst [vmem:[#allocation2 + $0x28] sm:$0x1] %v399_v35  ;;  %v401_v41 = vrot.slane %v7813_v40, 7  ;;  %v402_v44 = vrot.slane %v7817_v42, 7 }
  0x78   : > { %v7802_v43 = vld [vmem:[#allocation6 + $0x280] ss:$8 sps:$4 sm:$0xff]   ;;  %v7808_v46 = vld [vmem:[#allocation6 + $0x294] ss:$8 sps:$4 sm:$0xff]   ;;  %v7806_v48 = vld [vmem:[#allocation6 + $0x290] ss:$8 sps:$4 sm:$0xff]  }
  0x79   : > { %683 = vmatpush1.bf16.msra.mxu1 %v7793_v28  ;;  %436 = vst [vmem:[#allocation2 + $0x40] sm:$0xfe] %v401_v41  ;;  %437 = vst [vmem:[#allocation2 + $0x48] sm:$0x1] %v401_v41  ;;  %v7821_v47 = vld [vmem:[%s8350_s6 + $0x28] sm:$0xff]   ;;  %v7825_v50 = vld [vmem:[%s8350_s6 + $0x30] sm:$0xff]  }
  0x7a   : > { %1084 = vmatpush1.bf16.msra.mxu0 %v8433_v29  ;;  %684 = vmatprep.subr.bf16.mxu1 %v7795_v32  ;;  %438 = vst [vmem:[#allocation2 + $0x50] sm:$0xfe] %v402_v44  ;;  %439 = vst [vmem:[#allocation2 + $0x58] sm:$0x1] %v402_v44  ;;  %v403_v49 = vrot.slane %v7821_v47, 7  ;;  %v404_v52 = vrot.slane %v7825_v50, 7 }
  0x7b   : > { %1085 = vmatprep.subr.bf16.mxu0 %v8438_v33  ;;  %v7812_v51 = vld [vmem:[#allocation6 + $0x2a4] ss:$8 sps:$4 sm:$0xff]   ;;  %v7810_v54 = vld [vmem:[#allocation6 + $0x2a0] ss:$8 sps:$4 sm:$0xff]   ;;  %v7829_v55 = vld [vmem:[%s8350_s6 + $0x38] sm:$0xff]   ;;  %vm4696_vm0 = vcmask 1046528  }
  0x7c   : > { %440 = vst [vmem:[#allocation2 + $0x60] sm:$0xfe] %v403_v49  ;;  %441 = vst [vmem:[#allocation2 + $0x68] sm:$0x1] %v403_v49  ;;  %v7816_v56 = vld [vmem:[#allocation6 + $0x2b4] ss:$8 sps:$4 sm:$0xff]  }
  0x7d   : > { %685 = vmatpush1.bf16.msra.mxu1 %v7799_v34  ;;  %v8448_v45 = vld [vmem:[#allocation2 + $0x10] sm:$0xff]  ;;  %v8459_v53 = vld [vmem:[#allocation2 + $0x18] sm:$0xff]  ;;  %442 = vst [vmem:[#allocation2 + $0x70] sm:$0xfe] %v404_v52  ;;  %443 = vst [vmem:[#allocation2 + $0x78] sm:$0x1] %v404_v52 }
  0x7e   : > { %1086 = vmatpush1.bf16.msra.mxu0 %v8441_v37  ;;  %7017 = vmatprep.subr.bf16.mxu1 %v8395_v2  ;;  %v405_v57 = vrot.slane %v7829_v55, 7  ;;  %v7833_v58 = vld [vmem:[%s8350_s6 + $0x40] sm:$0xff]   ;;  %v7814_v59 = vld [vmem:[#allocation6 + $0x2b0] ss:$8 sps:$4 sm:$0xff]   ;;  %v7837_v1 = vld [vmem:[%s8350_s6 + $0x48] sm:$0xff]   ;;  %vm5145_vm1 = vcmask 1045504  }
  0x7f   : > { %2306 = vmatprep.subr.bf16.mxu0 %v7804_v38  ;;  %v406_v60 = vrot.slane %v7833_v58, 7  ;;  %v7820_v61 = vld [vmem:[#allocation6 + $0x2c4] ss:$8 sps:$4 sm:$0xff]   ;;  %v7818_v63 = vld [vmem:[#allocation6 + $0x2c0] ss:$8 sps:$4 sm:$0xff]   ;;  %v407_v3 = vrot.slane %v7837_v1, 7 }
  0x80   : > { %703 = vmatmul.mubr.bf16.vlgmr.msra.gmra.mrb[0].mxu1 %v8448_v45  ;;  %444 = vst [vmem:[#allocation2 + $0x80] sm:$0xfe] %v405_v57  ;;  %445 = vst [vmem:[#allocation2 + $0x88] sm:$0x1] %v405_v57  ;;  %v8471_v62 = vld [vmem:[#allocation2 + $0x20] sm:$0xff]  ;;  %v8481_v5 = vld [vmem:[#allocation2 + $0x28] sm:$0xff] }
  0x81   : > { %1104 = vmatmul.mubr.bf16.vlgmr.msra.gmra.mrb[0].mxu0 %v8170_v0  ;;  %7025 = vmatpush1.bf16.msra.mxu1 %v8397_v4  ;;  %446 = vst [vmem:[#allocation2 + $0x90] sm:$0xfe] %v406_v60  ;;  %447 = vst [vmem:[#allocation2 + $0x98] sm:$0x1] %v406_v60  ;;  %v7824_v2 = vld [vmem:[#allocation6 + $0x2d4] ss:$8 sps:$4 sm:$0xff]  }
  0x82   : > { %2307 = vmatpush1.bf16.msra.mxu0 %v7802_v43  ;;  %712 = vmatprep.mubr.bf16.mxu1 %v8170_v0  ;;  %448 = vst [vmem:[#allocation2 + $0xa0] sm:$0xfe] %v407_v3  ;;  %449 = vst [vmem:[#allocation2 + $0xa8] sm:$0x1] %v407_v3  ;;  %v7822_v4 = vld [vmem:[#allocation6 + $0x2d0] ss:$8 sps:$4 sm:$0xff]  }
  0x83   : > { %1113 = vmatprep.mubr.bf16.mxu0 %v8170_v0  ;;  %2308 = vmatprep.subr.bf16.mxu0 %v7808_v46  ;;  %v7826_v7 = vld [vmem:[#allocation6 + $0x2e0] ss:$8 sps:$4 sm:$0xff]   ;;  %v7830_v11 = vld [vmem:[#allocation6 + $0x2f0] ss:$8 sps:$4 sm:$0xff]   ;;  %v7855_v38 = vld [vmem:[#allocation6 + $0x204] ss:$8 sps:$4 sm:$0xff]  }
  0x84   : > { %7018 = vmatprep.subr.bf16.mxu1 %v8401_v6  ;;  %v7828_v6 = vld [vmem:[#allocation6 + $0x2e4] ss:$8 sps:$4 sm:$0xff]   ;;  %v8492_v13 = vld [vmem:[#allocation2 + $0x30] sm:$0xff]  ;;  %v7842_v15 = vld [vmem:[%s8350_s6 + $0x58] sm:$0xff]   ;;  %vm6166_vm4 = vsmask.f32 3328 }
  0x85   : > { %7026 = vmatpush1.bf16.msra.mxu1 %v8403_v8  ;;  %v7838_v8 = vld [vmem:[%s8350_s6 + $0x50] sm:$0xff]   ;;  %v8507_v17 = vld [vmem:[#allocation2 + $0x40] sm:$0xff]  ;;  %v8514_v19 = vld [vmem:[#allocation2 + $0x48] sm:$0xff]  ;;  %vm6167_vm5 = vsmask.f32 7440  ;;  %s6753_s24 = sshll.u32 %s8346_s27, 8 }
  0x86   : > { %2309 = vmatpush1.bf16.msra.mxu0 %v7806_v48  ;;  %7019 = vmatprep.subr.bf16.mxu1 %v8406_v10  ;;  %v408_v9 = vrot.slane %v7838_v8, 7  ;;  %v7832_v10 = vld [vmem:[#allocation6 + $0x2f4] ss:$8 sps:$4 sm:$0xff]   ;;  %v8533_v25 = vld [vmem:[#allocation2 + $0x60] sm:$0xff]  ;;  %v8540_v27 = vld [vmem:[#allocation2 + $0x68] sm:$0xff]  ;;  %s9803_s9 = scalar_lea.vmem [#allocation8], %s6753_s24 }
  0x87   : > { %2310 = vmatprep.subr.bf16.mxu0 %v7812_v51  ;;  %v8520_v21 = vld [vmem:[#allocation2 + $0x50] sm:$0xff]  ;;  %v8527_v23 = vld [vmem:[#allocation2 + $0x58] sm:$0xff]  ;;  %v8565_v34 = vld [vmem:[#allocation2 + $0x88] sm:$0xff]  ;;  %s7016_s10 = sshll.u32 %s8154_s15, 12  ;;  %s6633_s11 = sshll.u32 %s9803_s9, 4  ;;  %s10727_s11 = int_to_ptr.vmem [resolvable:$true] %s6633_s11 }
  0x88   : > { %713 = vmatmul.mubr.bf16.gmra.mrb[4].mxu1 %v8459_v53  ;;  %450 = vst [vmem:[#allocation2 + $0xb0] sm:$0xfe] %v408_v9  ;;  %451 = vst [vmem:[#allocation2 + $0xb8] sm:$0x1] %v408_v9  ;;  %v7852_v30 = vld [vmem:[%s8350_s6 + $0x78] sm:$0xff]   ;;  %v8571_v35 = vld [vmem:[#allocation2 + $0x90] sm:$0xff]  ;;  %s10725_s7 = scalar_lea.hbm %s10782_s3, %s7016_s10 }
  0x89   : > { %1114 = vmatmul.mubr.bf16.gmra.mrb[4].mxu0 %v8170_v0  ;;  %720 = vmatprep.mubr.bf16.mxu1 %v8170_v0  ;;  %v8553_v31 = vld [vmem:[#allocation2 + $0x78] sm:$0xff]  ;;  %v413_v32 = vrot.slane %v7852_v30, 7  ;;  %v7834_v36 = vld [vmem:[#allocation6 + $0x100] ss:$8 sps:$4 sm:$0xff]   ;;  %v7846_v40 = vld [vmem:[#allocation6 + $0x124] ss:$8 sps:$4 sm:$0xff]  }
  0x8a   : > { %1121 = vmatprep.mubr.bf16.mxu0 %v8170_v0  ;;  %2311 = vmatpush1.bf16.msra.mxu0 %v7810_v54  ;;  %v7839_v39 = vld [vmem:[#allocation6 + $0x110] ss:$8 sps:$4 sm:$0xff]   ;;  %v7844_v42 = vld [vmem:[#allocation6 + $0x120] ss:$8 sps:$4 sm:$0xff]   ;;  %v7851_v43 = vld [vmem:[#allocation6 + $0x134] ss:$8 sps:$4 sm:$0xff]  }
  0x8b   : > { %7027 = vmatpush1.bf16.msra.mxu1 %v8408_v12  ;;  %2312 = vmatprep.subr.bf16.mxu0 %v7816_v56  ;;  %v7836_v12 = vld [vmem:[#allocation6 + $0x104] ss:$8 sps:$4 sm:$0xff]   ;;  %460 = vst [vmem:[#allocation2 + $0x100] sm:$0xfe] %v413_v32  ;;  %461 = vst [vmem:[#allocation2 + $0x108] sm:$0x1] %v413_v32 }
  0x8c   : > { %7020 = vmatprep.subr.bf16.mxu1 %v8412_v14  ;;  %v8500_v14 = vld [vmem:[#allocation2 + $0x38] sm:$0xff]  ;;  %v8583_v46 = vld [vmem:[#allocation2 + $0xa0] sm:$0xff]  ;;  %v8589_v48 = vld [vmem:[#allocation2 + $0xa8] sm:$0xff]  ;;  %s6618_s15 = scalar_lea.sflag [#allocation5], %s8346_s27  ;;  %s8076_s8 = scalar_lea.vmem %s10727_s11, 4096 }
  0x8d   : > { %v8577_v41 = vld [vmem:[#allocation2 + $0x98] sm:$0xff]  ;;  %v7856_v47 = vld [vmem:[#allocation6 + $0x140] ss:$8 sps:$4 sm:$0xff]   ;;  %v7876_v57 = vld [vmem:[#allocation6 + $0x164] ss:$8 sps:$4 sm:$0xff]   ;;  %p8077_p4 = scmp.ne.s32.totalorder %s10727_s11, %s8076_s8  ;;  %s8171_s21 = smov [#allocation8]  }
  0x8e   : > { %2313 = vmatpush1.bf16.msra.mxu0 %v7814_v59  ;;  %v7849_v44 = vld [vmem:[#allocation6 + $0x130] ss:$8 sps:$4 sm:$0xff]   ;;  %v8599_v51 = vld [vmem:[#allocation2] sm:$0xff]  ;;  %v7867_v52 = vld [vmem:[#allocation6 + $0x154] ss:$8 sps:$4 sm:$0xff]   ;;  %s8080_s19 = sshll.u32 %s8171_s21, 4  ;;  %s8081_s19 = int_to_ptr.vmem [resolvable:$false] %s8080_s19 }
  0x8f   : > { %7028 = vmatpush1.bf16.msra.mxu1 %v8415_v16  ;;  %2314 = vmatprep.subr.bf16.mxu0 %v7820_v61  ;;  %v409_v16 = vrot.slane %v7842_v15, 7  ;;  %v8595_v49 = vld [vmem:[#allocation2 + $0xb0] sm:$0xff]  ;;  %v7874_v56 = vld [vmem:[#allocation6 + $0x160] ss:$8 sps:$4 sm:$0xff]   ;;  %vm9785_vm10 = vmor %vm6166_vm4, %vm6167_vm5  ;;  %p8078_p6 = pnand %p8077_p4, %p8290_p10  ;;  %s8082_s25 = scalar_lea.vmem %s8081_s19, 8192 }
  0x90   : > { %7021 = vmatprep.subr.bf16.mxu1 %v8418_v18  ;;  %721 = vmatmul.mubr.bf16.gmra.mrb[8].mxu1 %v8471_v62  ;;  %v7843_v18 = vld [vmem:[%s8350_s6 + $0x60] sm:$0xff]   ;;  %v7865_v50 = vld [vmem:[#allocation6 + $0x150] ss:$8 sps:$4 sm:$0xff]   ;;  %p8083_p12 = scmp.lt.s32.totalorder %s10727_s11, %s8081_s19  ;;  %p8084_p11 = scmp.lt.s32.totalorder %s8082_s25, %s8076_s8 }
  0x91   : > { %1122 = vmatmul.mubr.bf16.gmra.mrb[8].mxu0 %v8448_v45  ;;  %730 = vmatprep.mubr.bf16.mxu1 %v8170_v0  ;;  %452 = vst [vmem:[#allocation2 + $0xc0] sm:$0xfe] %v409_v16  ;;  %453 = vst [vmem:[#allocation2 + $0xc8] sm:$0x1] %v409_v16  ;;  %p8079_p8 = pneg %p8078_p6 }
  0x92   : > { %1131 = vmatprep.mubr.bf16.mxu0 %v8170_v0  ;;  %2315 = vmatpush1.bf16.msra.mxu0 %v7818_v63  ;;  %p8085_p0 = por %p8084_p11, %p8083_p12 }
  0x93   : > { %7029 = vmatpush1.bf16.msra.mxu1 %v8420_v20  ;;  %2316 = vmatprep.subr.bf16.mxu0 %v7824_v2  ;;  %v410_v20 = vrot.slane %v7843_v18, 7 }
  0x94   : > { %7022 = vmatprep.subr.bf16.mxu1 %v8424_v22  ;;  %v7847_v22 = vld [vmem:[%s8350_s6 + $0x68] sm:$0xff]   ;;  %p8086_p5 = pnand %p8085_p0, %p8079_p8 }
  0x95   : > { %454 = vst [vmem:[#allocation2 + $0xd0] sm:$0xfe] %v410_v20  ;;  %455 = vst [vmem:[#allocation2 + $0xd8] sm:$0x1] %v410_v20 }
  0x96   : > { %2317 = vmatpush1.bf16.msra.mxu0 %v7822_v4 }
  0x97   : > { %7030 = vmatpush1.bf16.msra.mxu1 %v8427_v24  ;;  %2318 = vmatprep.subr.bf16.mxu0 %v7828_v6  ;;  %v411_v24 = vrot.slane %v7847_v22, 7 }
  0x98   : > { %7023 = vmatprep.subr.bf16.mxu1 %v8430_v26  ;;  %731 = vmatmul.mubr.bf16.gmra.mrb[12].mxu1 %v8481_v5  ;;  %v7848_v26 = vld [vmem:[%s8350_s6 + $0x70] sm:$0xff]   ;;  %v8615_v54 = vld [vmem:[#allocation2 + $0xc8] sm:$0xff] }
  0x99   : > { %1132 = vmatmul.mubr.bf16.gmra.mrb[12].mxu0 %v8459_v53  ;;  %738 = vmatprep.mubr.bf16.mxu1 %v8170_v0  ;;  %456 = vst [vmem:[#allocation2 + $0xe0] sm:$0xfe] %v411_v24  ;;  %457 = vst [vmem:[#allocation2 + $0xe8] sm:$0x1] %v411_v24  ;;  %v412_v28 = vrot.slane %v7848_v26, 7 }
  0x9a   : > { %1139 = vmatprep.mubr.bf16.mxu0 %v8170_v0  ;;  %2319 = vmatpush1.bf16.msra.mxu0 %v7826_v7 }
  0x9b   : > { %7031 = vmatpush1.bf16.msra.mxu1 %v8433_v29  ;;  %2320 = vmatprep.subr.bf16.mxu0 %v7832_v10  ;;  %458 = vst [vmem:[#allocation2 + $0xf0] sm:$0xfe] %v412_v28  ;;  %459 = vst [vmem:[#allocation2 + $0xf8] sm:$0x1] %v412_v28  ;;  %v8546_v29 = vld [vmem:[#allocation2 + $0x70] sm:$0xff] }
  0x9c   : > { %7024 = vmatprep.subr.bf16.mxu1 %v8438_v33  ;;  %v8559_v33 = vld [vmem:[#allocation2 + $0x80] sm:$0xff]  ;;  %v8621_v55 = vld [vmem:[#allocation2 + $0xd0] sm:$0xff]  ;;  %v8627_v58 = vld [vmem:[#allocation2 + $0xd8] sm:$0xff] }
  0x9e   : > { %2321 = vmatpush1.bf16.msra.mxu0 %v7830_v11 }
  0x9f   : > { %7032 = vmatpush1.bf16.msra.mxu1 %v8441_v37  ;;  %2707 = vmatprep.subr.bf16.mxu0 %v7836_v12  ;;  %v7841_v37 = vld [vmem:[#allocation6 + $0x114] ss:$8 sps:$4 sm:$0xff]  }
  0xa0   : > { %739 = vmatmul.mubr.bf16.gmra.mrb[16].mxu1 %v8492_v13  ;;  %1488 = vmatprep.subr.bf16.mxu1 %v7855_v38  ;;  %v8633_v59 = vld [vmem:[#allocation2 + $0xe0] sm:$0xff]  ;;  %v8645_v63 = vld [vmem:[#allocation2 + $0xe8] sm:$0xff] }
  0xa1   : > { %1140 = vmatmul.mubr.bf16.gmra.mrb[16].mxu0 %v8471_v62  ;;  %748 = vmatprep.mubr.bf16.mxu1 %v8170_v0  ;;  %v8679_v38 = vld [vmem:[#allocation2 + $0x100] sm:$0xff] }
  0xa2   : > { %1149 = vmatprep.mubr.bf16.mxu0 %v8170_v0  ;;  %v8655_v9 = vld [vmem:[#allocation2 + $0xf0] sm:$0xff]  ;;  %v8669_v20 = vld [vmem:[#allocation2 + $0xf8] sm:$0xff] }
  0xa8   : > { %749 = vmatmul.mubr.bf16.gmra.mrb[20].mxu1 %v8500_v14 }
  0xa9   : > { %1150 = vmatmul.mubr.bf16.gmra.mrb[20].mxu0 %v8481_v5  ;;  %756 = vmatprep.mubr.bf16.mxu1 %v8170_v0 }
  0xaa   : > { %1157 = vmatprep.mubr.bf16.mxu0 %v8170_v0 }
  0xb0   : > { %757 = vmatmul.mubr.bf16.gmra.mrb[24].mxu1 %v8507_v17 }
  0xb1   : > { %1158 = vmatmul.mubr.bf16.gmra.mrb[24].mxu0 %v8492_v13  ;;  %766 = vmatprep.mubr.bf16.mxu1 %v8170_v0 }
  0xb2   : > { %1167 = vmatprep.mubr.bf16.mxu0 %v8170_v0 }
  0xb8   : > { %767 = vmatmul.mubr.bf16.gmra.mrb[28].mxu1 %v8514_v19 }
  0xb9   : > { %1168 = vmatmul.mubr.bf16.gmra.mrb[28].mxu0 %v8500_v14  ;;  %774 = vmatprep.mubr.bf16.mxu1 %v8170_v0 }
  0xba   : > { %1175 = vmatprep.mubr.bf16.mxu0 %v8170_v0 }
  0xc0   : > { %775 = vmatmul.mubr.bf16.gmra.mrb[32].mxu1 %v8520_v21 }
  0xc1   : > { %1176 = vmatmul.mubr.bf16.gmra.mrb[32].mxu0 %v8507_v17  ;;  %784 = vmatprep.mubr.bf16.mxu1 %v8170_v0 }
  0xc2   : > { %1185 = vmatprep.mubr.bf16.mxu0 %v8170_v0 }
  0xc8   : > { %785 = vmatmul.mubr.bf16.gmra.mrb[36].mxu1 %v8527_v23 }
  0xc9   : > { %1186 = vmatmul.mubr.bf16.gmra.mrb[36].mxu0 %v8514_v19  ;;  %792 = vmatprep.mubr.bf16.mxu1 %v8170_v0 }
  0xca   : > { %1193 = vmatprep.mubr.bf16.mxu0 %v8170_v0 }
  0xd0   : > { %793 = vmatmul.mubr.bf16.gmra.mrb[40].mxu1 %v8533_v25 }
  0xd1   : > { %1194 = vmatmul.mubr.bf16.gmra.mrb[40].mxu0 %v8520_v21  ;;  %802 = vmatprep.mubr.bf16.mxu1 %v8170_v0 }
  0xd2   : > { %1203 = vmatprep.mubr.bf16.mxu0 %v8170_v0 }
  0xd8   : > { %803 = vmatmul.mubr.bf16.gmra.mrb[44].mxu1 %v8540_v27 }
  0xd9   : > { %1204 = vmatmul.mubr.bf16.gmra.mrb[44].mxu0 %v8527_v23  ;;  %810 = vmatprep.mubr.bf16.mxu1 %v8170_v0 }
  0xda   : > { %1211 = vmatprep.mubr.bf16.mxu0 %v8170_v0 }
  0xe0   : > { %811 = vmatmul.mubr.bf16.gmra.mrb[48].mxu1 %v8546_v29 }
  0xe1   : > { %1212 = vmatmul.mubr.bf16.gmra.mrb[48].mxu0 %v8533_v25  ;;  %820 = vmatprep.mubr.bf16.mxu1 %v8170_v0 }
  0xe2   : > { %1221 = vmatprep.mubr.bf16.mxu0 %v8170_v0 }
  0xe8   : > { %821 = vmatmul.mubr.bf16.gmra.mrb[52].mxu1 %v8553_v31 }
  0xe9   : > { %1222 = vmatmul.mubr.bf16.gmra.mrb[52].mxu0 %v8540_v27  ;;  %828 = vmatprep.mubr.bf16.mxu1 %v8170_v0 }
  0xea   : > { %1229 = vmatprep.mubr.bf16.mxu0 %v8170_v0 }
  0xf0   : > { %829 = vmatmul.mubr.bf16.gmra.mrb[56].mxu1 %v8559_v33 }
  0xf1   : > { %1230 = vmatmul.mubr.bf16.gmra.mrb[56].mxu0 %v8546_v29  ;;  %838 = vmatprep.mubr.bf16.mxu1 %v8170_v0 }
  0xf2   : > { %1239 = vmatprep.mubr.bf16.mxu0 %v8170_v0 }
  0xf8   : > { %839 = vmatmul.mubr.bf16.gmra.mrb[60].mxu1 %v8565_v34 }
  0xf9   : > { %1240 = vmatmul.mubr.bf16.gmra.mrb[60].mxu0 %v8553_v31  ;;  %846 = vmatprep.mubr.bf16.mxu1 %v8170_v0 }
  0xfa   : > { %2338 = vmatprep.mubr.bf16.mxu0 %v8170_v0 }
 0x100   : > { %847 = vmatmul.mubr.bf16.gmra.mrb[64].mxu1 %v8571_v35 }
 0x101   : > { %2339 = vmatmul.mubr.bf16.vlgmr.msra.gmra.mrb[64].mxu0 %v8448_v45  ;;  %856 = vmatprep.mubr.bf16.mxu1 %v8170_v0  ;;  %v7858_v45 = vld [vmem:[#allocation6 + $0x144] ss:$8 sps:$4 sm:$0xff]  }
 0x102   : > { %2708 = vmatpush1.bf16.msra.mxu0 %v7834_v36  ;;  %2348 = vmatprep.mubr.bf16.mxu0 %v8170_v0 }
 0x103   : > { %2709 = vmatprep.subr.bf16.mxu0 %v7841_v37 }
 0x106   : > { %2710 = vmatpush1.bf16.msra.mxu0 %v7839_v39 }
 0x107   : > { %2711 = vmatprep.subr.bf16.mxu0 %v7846_v40 }
 0x108   : > { %857 = vmatmul.mubr.bf16.gmra.mrb[68].mxu1 %v8577_v41 }
 0x109   : > { %2349 = vmatmul.mubr.bf16.gmra.mrb[68].mxu0 %v8459_v53  ;;  %864 = vmatprep.mubr.bf16.mxu1 %v8170_v0  ;;  %v8603_v53 = vld [vmem:[#allocation2 + $0xb8] sm:$0xff] }
 0x10a   : > { %2356 = vmatprep.mubr.bf16.mxu0 %v8170_v0  ;;  %2712 = vmatpush1.bf16.msra.mxu0 %v7844_v42 }
 0x10b   : > { %2713 = vmatprep.subr.bf16.mxu0 %v7851_v43 }
 0x10e   : > { %2714 = vmatpush1.bf16.msra.mxu0 %v7849_v44 }
 0x10f   : > { %2715 = vmatprep.subr.bf16.mxu0 %v7858_v45 }
 0x110   : > { %865 = vmatmul.mubr.bf16.gmra.mrb[72].mxu1 %v8583_v46 }
 0x111   : > { %2357 = vmatmul.mubr.bf16.gmra.mrb[72].mxu0 %v8471_v62  ;;  %874 = vmatprep.mubr.bf16.mxu1 %v8170_v0 }
 0x112   : > { %2366 = vmatprep.mubr.bf16.mxu0 %v8170_v0  ;;  %2716 = vmatpush1.bf16.msra.mxu0 %v7856_v47  ;;  %v8693_v47 = vld [vmem:[#allocation2 + $0x108] sm:$0xff] }
 0x113   : > { %2717 = vmatprep.subr.bf16.mxu0 %v7867_v52 }
 0x116   : > { %2718 = vmatpush1.bf16.msra.mxu0 %v7865_v50 }
 0x117   : > { %2719 = vmatprep.subr.bf16.mxu0 %v7876_v57 }
 0x118   : > { %875 = vmatmul.mubr.bf16.gmra.mrb[76].mxu1 %v8589_v48 }
 0x119   : > { %2367 = vmatmul.mubr.bf16.gmra.mrb[76].mxu0 %v8481_v5  ;;  %882 = vmatprep.mubr.bf16.mxu1 %v8170_v0 }
 0x11a   : > { %2374 = vmatprep.mubr.bf16.mxu0 %v8170_v0  ;;  %v8609_v0 = vld [vmem:[#allocation2 + $0xc0] sm:$0xff]  ;;  %2720 = vmatpush1.bf16.msra.mxu0 %v7874_v56 }
 0x120   : > { %883 = vmatmul.mubr.bf16.gmra.mrb[80].mxu1 %v8595_v49 }
 0x121   : > { %2375 = vmatmul.mubr.bf16.gmra.mrb[80].mxu0 %v8492_v13  ;;  %892 = vmatprep.mubr.bf16.mxu1 %v8599_v51  ;;  %v7883_v13 = vld [vmem:[#allocation6 + $0x170] ss:$8 sps:$4 sm:$0xff]  }
 0x122   : > { %2384 = vmatprep.mubr.bf16.mxu0 %v8599_v51 }
 0x128   : > { %893 = vmatmul.mubr.bf16.gmra.mrb[84].mxu1 %v8603_v53 }
 0x129   : > { %2385 = vmatmul.mubr.bf16.gmra.mrb[84].mxu0 %v8500_v14  ;;  %900 = vmatprep.mubr.bf16.mxu1 %v8599_v51  ;;  %v7885_v14 = vld [vmem:[#allocation6 + $0x174] ss:$8 sps:$4 sm:$0xff]  }
 0x12a   : > { %2392 = vmatprep.mubr.bf16.mxu0 %v8599_v51  ;;  %2721 = vmatprep.subr.bf16.mxu0 %v7885_v14  ;;  %v7859_v14 = vld [vmem:[#allocation6 + $0x210] ss:$8 sps:$4 sm:$0xff]  }
 0x12b   : > { %2722 = vmatpush1.bf16.msra.mxu0 %v7883_v13  ;;  %v7861_v13 = vld [vmem:[#allocation6 + $0x214] ss:$8 sps:$4 sm:$0xff]  }
 0x130   : > { %901 = vmatmul.mubr.bf16.gmra.mrb[88].mxu1 %v8609_v0 }
 0x131   : > { %2393 = vmatmul.mubr.bf16.gmra.mrb[88].mxu0 %v8507_v17  ;;  %910 = vmatprep.mubr.bf16.mxu1 %v8599_v51 }
 0x132   : > { %2402 = vmatprep.mubr.bf16.mxu0 %v8599_v51 }
 0x138   : > { %911 = vmatmul.mubr.bf16.gmra.mrb[92].mxu1 %v8615_v54 }
 0x139   : > { %2403 = vmatmul.mubr.bf16.gmra.mrb[92].mxu0 %v8514_v19  ;;  %918 = vmatprep.mubr.bf16.mxu1 %v8599_v51 }
 0x13a   : > { %2410 = vmatprep.mubr.bf16.mxu0 %v8599_v51 }
 0x140   : > { %919 = vmatmul.mubr.bf16.gmra.mrb[96].mxu1 %v8621_v55 }
 0x141   : > { %2411 = vmatmul.mubr.bf16.gmra.mrb[96].mxu0 %v8520_v21  ;;  %928 = vmatprep.mubr.bf16.mxu1 %v8599_v51 }
 0x142   : > { %2420 = vmatprep.mubr.bf16.mxu0 %v8599_v51 }
 0x148   : > { %929 = vmatmul.mubr.bf16.gmra.mrb[100].mxu1 %v8627_v58 }
 0x149   : > { %2421 = vmatmul.mubr.bf16.gmra.mrb[100].mxu0 %v8527_v23  ;;  %936 = vmatprep.mubr.bf16.mxu1 %v8599_v51 }
 0x14a   : > { %2428 = vmatprep.mubr.bf16.mxu0 %v8599_v51 }
 0x150   : > { %937 = vmatmul.mubr.bf16.gmra.mrb[104].mxu1 %v8633_v59 }
 0x151   : > { %2429 = vmatmul.mubr.bf16.gmra.mrb[104].mxu0 %v8533_v25  ;;  %946 = vmatprep.mubr.bf16.mxu1 %v8599_v51 }
 0x152   : > { %2438 = vmatprep.mubr.bf16.mxu0 %v8599_v51 }
 0x153   : > { %v8639_v60 = vpop.f32.mrb[0].mxu1 }
 0x154   : > { %v8641_v61 = vpop.f32.mrb[1].mxu1 }
 0x155   : > { %v8643_v62 = vpop.f32.mrb[2].mxu1 }
 0x156   : > { %v8647_v1 = vpop.f32.mrb[3].mxu1 }
 0x158   : > { %947 = vmatmul.mubr.bf16.gmra.mrb[108].mxu1 %v8645_v63 }
 0x159   : > { %2439 = vmatmul.mubr.bf16.gmra.mrb[108].mxu0 %v8540_v27  ;;  %954 = vmatprep.mubr.bf16.mxu1 %v8599_v51 }
 0x15a   : > { %2446 = vmatprep.mubr.bf16.mxu0 %v8599_v51 }
 0x15b   : > { %v714_v2 = vpop.f32.mrb[4].mxu1 }
 0x15c   : > { %v1115_v3 = vpop.f32.mrb[4].mxu0  ;;  %v716_v4 = vpop.f32.mrb[5].mxu1 }
 0x15d   : > { %v1117_v5 = vpop.f32.mrb[5].mxu0  ;;  %v8653_v6 = vadd.f32 %v1115_v3, %v714_v2  ;;  %v718_v7 = vpop.f32.mrb[6].mxu1 }
 0x15e   : > { %v1119_v8 = vpop.f32.mrb[6].mxu0  ;;  %v8657_v10 = vadd.f32 %v1117_v5, %v716_v4  ;;  %v719_v11 = vpop.f32.mrb[7].mxu1  ;;  %v7853_v7 = vld [vmem:[#allocation6 + $0x200] ss:$8 sps:$4 sm:$0xff]  }
 0x15f   : > { %v1120_v12 = vpop.f32.mrb[7].mxu0 }
 0x160   : > { %955 = vmatmul.mubr.bf16.gmra.mrb[112].mxu1 %v8655_v9 }
 0x161   : > { %2447 = vmatmul.mubr.bf16.gmra.mrb[112].mxu0 %v8546_v29  ;;  %964 = vmatprep.mubr.bf16.mxu1 %v8599_v51 }
 0x162   : > { %2456 = vmatprep.mubr.bf16.mxu0 %v8599_v51 }
 0x163   : > { %v8663_v15 = vpop.f32.mrb[8].mxu1 }
 0x164   : > { %v8665_v16 = vpop.f32.mrb[9].mxu1 }
 0x165   : > { %v8667_v18 = vpop.f32.mrb[10].mxu1 }
 0x166   : > { %v8671_v22 = vpop.f32.mrb[11].mxu1 }
 0x168   : > { %965 = vmatmul.mubr.bf16.gmra.mrb[116].mxu1 %v8669_v20 }
 0x169   : > { %2457 = vmatmul.mubr.bf16.gmra.mrb[116].mxu0 %v8553_v31  ;;  %972 = vmatprep.mubr.bf16.mxu1 %v8599_v51 }
 0x16a   : > { %2464 = vmatprep.mubr.bf16.mxu0 %v8599_v51 }
 0x16b   : > { %v732_v24 = vpop.f32.mrb[12].mxu1 }
 0x16c   : > { %v1133_v26 = vpop.f32.mrb[12].mxu0  ;;  %v734_v28 = vpop.f32.mrb[13].mxu1 }
 0x16d   : > { %v1135_v30 = vpop.f32.mrb[13].mxu0  ;;  %v8677_v32 = vadd.f32 %v1133_v26, %v732_v24  ;;  %v736_v36 = vpop.f32.mrb[14].mxu1  ;;  %v7894_v24 = vld [vmem:[#allocation6 + $0x304] ss:$8 sps:$4 sm:$0xff]  }
 0x16e   : > { %v1137_v37 = vpop.f32.mrb[14].mxu0  ;;  %v8681_v39 = vadd.f32 %v1135_v30, %v734_v28  ;;  %v737_v40 = vpop.f32.mrb[15].mxu1  ;;  %v7864_v26 = vld [vmem:[#allocation6 + $0x224] ss:$8 sps:$4 sm:$0xff]   ;;  %3157 = vmatprep.subr.bf16.mxu0 %v7894_v24 }
 0x16f   : > { %v1138_v42 = vpop.f32.mrb[15].mxu0  ;;  %v7862_v40 = vld [vmem:[#allocation6 + $0x220] ss:$8 sps:$4 sm:$0xff]  }
 0x170   : > { %973 = vmatmul.mubr.bf16.gmra.mrb[120].mxu1 %v8679_v38  ;;  %v7870_v42 = vld [vmem:[#allocation6 + $0x234] ss:$8 sps:$4 sm:$0xff]  }
 0x171   : > { %2465 = vmatmul.mubr.bf16.gmra.mrb[120].mxu0 %v8559_v33  ;;  %982 = vmatprep.mubr.bf16.mxu1 %v8599_v51 }
 0x172   : > { %2474 = vmatprep.mubr.bf16.mxu0 %v8599_v51 }
 0x173   : > { %v8687_v43 = vpop.f32.mrb[16].mxu1 }
 0x174   : > { %v8689_v44 = vpop.f32.mrb[17].mxu1 }
 0x175   : > { %v8691_v45 = vpop.f32.mrb[18].mxu1 }
 0x176   : > { %v8695_v50 = vpop.f32.mrb[19].mxu1 }
 0x177   : > { %10805 = vst [vmem:[#allocation12_spill] sm:$0xff] %v8695_v50 }
 0x178   : > { %983 = vmatmul.mubr.bf16.gmra.mrb[124].mxu1 %v8693_v47 }
 0x179   : > { %2475 = vmatmul.mubr.bf16.gmra.mrb[124].mxu0 %v8565_v34  ;;  %1247 = vmatprep.mubr.bf16.mxu1 %v8599_v51 }
 0x17a   : > { %2482 = vmatprep.mubr.bf16.mxu0 %v8599_v51 }
 0x17b   : > { %v750_v52 = vpop.f32.mrb[20].mxu1 }
 0x17c   : > { %v1151_v56 = vpop.f32.mrb[20].mxu0  ;;  %v752_v57 = vpop.f32.mrb[21].mxu1 }
 0x17d   : > { %v1153_v2 = vpop.f32.mrb[21].mxu0  ;;  %v8701_v3 = vadd.f32 %v1151_v56, %v750_v52  ;;  %v754_v4 = vpop.f32.mrb[22].mxu1  ;;  %v7868_v52 = vld [vmem:[#allocation6 + $0x230] ss:$8 sps:$4 sm:$0xff]  }
 0x17e   : > { %v1155_v5 = vpop.f32.mrb[22].mxu0  ;;  %v8703_v8 = vadd.f32 %v1153_v2, %v752_v57  ;;  %v755_v11 = vpop.f32.mrb[23].mxu1  ;;  %v7873_v2 = vld [vmem:[#allocation6 + $0x244] ss:$8 sps:$4 sm:$0xff]  }
 0x17f   : > { %10806 = vst [vmem:[#allocation13_spill] sm:$0xff] %v8701_v3  ;;  %v1156_v12 = vpop.f32.mrb[23].mxu0 }
 0x180   : > { %10807 = vst [vmem:[#allocation14_spill] sm:$0xff] %v8703_v8  ;;  %1248 = vmatmul.mubr.bf16.vlgmr.msra.gmra.mrb[64].mxu1 %v8559_v33  ;;  %v7930_v8 = vld [vmem:[#allocation6 + $0x364] ss:$8 sps:$4 sm:$0xff]  }
 0x181   : > { %2483 = vmatmul.mubr.bf16.gmra.mrb[128].mxu0 %v8571_v35  ;;  %1489 = vmatpush1.bf16.msra.mxu1 %v7853_v7 }
 0x182   : > { %1257 = vmatprep.mubr.bf16.mxu1 %v8599_v51  ;;  %2492 = vmatprep.mubr.bf16.mxu0 %v8599_v51 }
 0x183   : > { %1490 = vmatprep.subr.bf16.mxu1 %v7861_v13  ;;  %v8709_v28 = vpop.f32.mrb[24].mxu1 }
 0x184   : > { %10808 = vst [vmem:[#allocation15_spill] sm:$0xff] %v8709_v28  ;;  %v8711_v30 = vpop.f32.mrb[25].mxu1  ;;  %v7928_v28 = vld [vmem:[#allocation6 + $0x360] ss:$8 sps:$4 sm:$0xff]  }
 0x185   : > { %10809 = vst [vmem:[#allocation16_spill] sm:$0xff] %v8711_v30  ;;  %v8713_v36 = vpop.f32.mrb[26].mxu1  ;;  %1491 = vmatpush1.bf16.msra.mxu1 %v7859_v14 }
 0x186   : > { %10810 = vst [vmem:[#allocation17_spill] sm:$0xff] %v8713_v36  ;;  %v8715_v37 = vpop.f32.mrb[27].mxu1  ;;  %1492 = vmatprep.subr.bf16.mxu1 %v7864_v26  ;;  %v7871_v26 = vld [vmem:[#allocation6 + $0x240] ss:$8 sps:$4 sm:$0xff]  }
 0x187   : > { %10811 = vst [vmem:[#allocation18_spill] sm:$0xff] %v8715_v37  ;;  %v7879_v37 = vld [vmem:[#allocation6 + $0x254] ss:$8 sps:$4 sm:$0xff]  }
 0x188   : > { %1258 = vmatmul.mubr.bf16.gmra.mrb[128].mxu1 %v8565_v34 }
 0x189   : > { %2493 = vmatmul.mubr.bf16.gmra.mrb[132].mxu0 %v8577_v41  ;;  %1265 = vmatprep.mubr.bf16.mxu1 %v8599_v51 }
 0x18a   : > { %2500 = vmatprep.mubr.bf16.mxu0 %v8599_v51  ;;  %1493 = vmatpush1.bf16.msra.mxu1 %v7862_v40  ;;  %v7877_v40 = vld [vmem:[#allocation6 + $0x250] ss:$8 sps:$4 sm:$0xff]  }
 0x18b   : > { %v768_v56 = vpop.f32.mrb[28].mxu1  ;;  %1494 = vmatprep.subr.bf16.mxu1 %v7870_v42 }
 0x18c   : > { %v1169_v57 = vpop.f32.mrb[28].mxu0  ;;  %v770_v4 = vpop.f32.mrb[29].mxu1 }
 0x18d   : > { %v1171_v5 = vpop.f32.mrb[29].mxu0  ;;  %v8721_v7 = vadd.f32 %v1169_v57, %v768_v56  ;;  %v772_v11 = vpop.f32.mrb[30].mxu1  ;;  %v7882_v56 = vld [vmem:[#allocation6 + $0x264] ss:$8 sps:$4 sm:$0xff]  }
 0x18e   : > { %v1173_v12 = vpop.f32.mrb[30].mxu0  ;;  %v8723_v13 = vadd.f32 %v1171_v5, %v770_v4  ;;  %v773_v14 = vpop.f32.mrb[31].mxu1  ;;  %1495 = vmatpush1.bf16.msra.mxu1 %v7868_v52  ;;  %v7880_v4 = vld [vmem:[#allocation6 + $0x260] ss:$8 sps:$4 sm:$0xff]   ;;  %v7888_v5 = vld [vmem:[#allocation6 + $0x274] ss:$8 sps:$4 sm:$0xff]  }
 0x18f   : > { %10812 = vst [vmem:[#allocation19_spill] sm:$0xff] %v8721_v7  ;;  %v1174_v24 = vpop.f32.mrb[31].mxu0  ;;  %1496 = vmatprep.subr.bf16.mxu1 %v7873_v2  ;;  %v7891_v14 = vld [vmem:[#allocation6 + $0x84] ss:$8 sps:$4 sm:$0xff]   ;;  %v7916_v7 = vld [vmem:[#allocation6 + $0x340] ss:$8 sps:$4 sm:$0xff]  }
 0x190   : > { %10813 = vst [vmem:[#allocation20_spill] sm:$0xff] %v8723_v13  ;;  %1266 = vmatmul.mubr.bf16.gmra.mrb[72].mxu1 %v8571_v35  ;;  %v7913_v13 = vld [vmem:[#allocation6 + $0xc0] ss:$8 sps:$4 sm:$0xff]  }
 0x191   : > { %2501 = vmatmul.mubr.bf16.gmra.mrb[136].mxu0 %v8583_v46  ;;  %1275 = vmatprep.mubr.bf16.mxu1 %v8599_v51 }
 0x192   : > { %2510 = vmatprep.mubr.bf16.mxu0 %v8599_v51  ;;  %1497 = vmatpush1.bf16.msra.mxu1 %v7871_v26 }
 0x193   : > { %v8729_v42 = vpop.f32.mrb[32].mxu1  ;;  %1498 = vmatprep.subr.bf16.mxu1 %v7879_v37  ;;  %v7886_v37 = vld [vmem:[#allocation6 + $0x270] ss:$8 sps:$4 sm:$0xff]  }
 0x194   : > { %10814 = vst [vmem:[#allocation21_spill] sm:$0xff] %v8729_v42  ;;  %v8731_v57 = vpop.f32.mrb[33].mxu1 }
 0x195   : > { %10815 = vst [vmem:[#allocation22_spill] sm:$0xff] %v8731_v57  ;;  %v8733_v52 = vpop.f32.mrb[34].mxu1 }
 0x196   : > { %10816 = vst [vmem:[#allocation23_spill] sm:$0xff] %v8733_v52  ;;  %v8735_v2 = vpop.f32.mrb[35].mxu1  ;;  %1499 = vmatpush1.bf16.msra.mxu1 %v7877_v40 }
 0x197   : > { %10817 = vst [vmem:[#allocation24_spill] sm:$0xff] %v8735_v2  ;;  %1500 = vmatprep.subr.bf16.mxu1 %v7882_v56 }
 0x198   : > { %1276 = vmatmul.mubr.bf16.gmra.mrb[132].mxu1 %v8577_v41 }
 0x199   : > { %2511 = vmatmul.mubr.bf16.gmra.mrb[140].mxu0 %v8589_v48  ;;  %1283 = vmatprep.mubr.bf16.mxu1 %v8599_v51 }
 0x19a   : > { %2518 = vmatprep.mubr.bf16.mxu0 %v8599_v51  ;;  %1501 = vmatpush1.bf16.msra.mxu1 %v7880_v4 }
 0x19b   : > { %v786_v11 = vpop.f32.mrb[36].mxu1  ;;  %1502 = vmatprep.subr.bf16.mxu1 %v7888_v5 }
 0x19c   : > { %v1187_v12 = vpop.f32.mrb[36].mxu0  ;;  %v788_v24 = vpop.f32.mrb[37].mxu1 }
 0x19d   : > { %v1189_v26 = vpop.f32.mrb[37].mxu0  ;;  %v8741_v40 = vadd.f32 %v1187_v12, %v786_v11  ;;  %v790_v56 = vpop.f32.mrb[38].mxu1 }
 0x19e   : > { %v1191_v2 = vpop.f32.mrb[38].mxu0  ;;  %v8743_v52 = vadd.f32 %v1189_v26, %v788_v24  ;;  %v791_v57 = vpop.f32.mrb[39].mxu1  ;;  %1503 = vmatpush1.bf16.msra.mxu1 %v7886_v37 }
 0x19f   : > { %10818 = vst [vmem:[#allocation25_spill] sm:$0xff] %v8741_v40  ;;  %v1192_v42 = vpop.f32.mrb[39].mxu0  ;;  %1889 = vmatprep.subr.bf16.mxu1 %v7891_v14 }
 0x1a0   : > { %10819 = vst [vmem:[#allocation26_spill] sm:$0xff] %v8743_v52  ;;  %1284 = vmatmul.mubr.bf16.gmra.mrb[80].mxu1 %v8583_v46  ;;  %v7912_v52 = vld [vmem:[#allocation6 + $0x334] ss:$8 sps:$4 sm:$0xff]  }
 0x1a1   : > { %2519 = vmatmul.mubr.bf16.gmra.mrb[144].mxu0 %v8595_v49  ;;  %1293 = vmatprep.mubr.bf16.mxu1 %v8599_v51 }
 0x1a2   : > { %2528 = vmatprep.mubr.bf16.mxu0 %v8599_v51 }
 0x1a3   : > { %v8749_v4 = vpop.f32.mrb[40].mxu1 }
 0x1a4   : > { %10820 = vst [vmem:[#allocation27_spill] sm:$0xff] %v8749_v4  ;;  %v8751_v5 = vpop.f32.mrb[41].mxu1 }
 0x1a5   : > { %10821 = vst [vmem:[#allocation28_spill] sm:$0xff] %v8751_v5  ;;  %v8753_v11 = vpop.f32.mrb[42].mxu1 }
 0x1a6   : > { %10822 = vst [vmem:[#allocation29_spill] sm:$0xff] %v8753_v11  ;;  %v8755_v2 = vpop.f32.mrb[43].mxu1 }
 0x1a7   : > { %10823 = vst [vmem:[#allocation30_spill] sm:$0xff] %v8755_v2 }
 0x1a8   : > { %1294 = vmatmul.mubr.bf16.gmra.mrb[136].mxu1 %v8589_v48 }
 0x1a9   : > { %2529 = vmatmul.mubr.bf16.gmra.mrb[148].mxu0 %v8603_v53  ;;  %1301 = vmatprep.mubr.bf16.mxu1 %v8599_v51 }
 0x1aa   : > { %2536 = vmatprep.mubr.bf16.mxu0 %v8599_v51 }
 0x1ab   : > { %v804_v42 = vpop.f32.mrb[44].mxu1 }
 0x1ac   : > { %v1205_v57 = vpop.f32.mrb[44].mxu0  ;;  %v806_v37 = vpop.f32.mrb[45].mxu1 }
 0x1ad   : > { %v1207_v12 = vpop.f32.mrb[45].mxu0  ;;  %v8761_v14 = vadd.f32 %v1205_v57, %v804_v42  ;;  %v808_v24 = vpop.f32.mrb[46].mxu1 }
 0x1ae   : > { %v1209_v26 = vpop.f32.mrb[46].mxu0  ;;  %v8763_v56 = vadd.f32 %v1207_v12, %v806_v37  ;;  %v809_v11 = vpop.f32.mrb[47].mxu1 }
 0x1af   : > { %10824 = vst [vmem:[#allocation31_spill] sm:$0xff] %v8761_v14  ;;  %v1210_v2 = vpop.f32.mrb[47].mxu0 }
 0x1b0   : > { %10825 = vst [vmem:[#allocation32_spill] sm:$0xff] %v8763_v56  ;;  %1302 = vmatmul.mubr.bf16.gmra.mrb[88].mxu1 %v8595_v49 }
 0x1b1   : > { %2537 = vmatmul.mubr.bf16.gmra.mrb[152].mxu0 %v8609_v0  ;;  %1311 = vmatprep.mubr.bf16.mxu1 %v8599_v51 }
 0x1b2   : > { %2546 = vmatprep.mubr.bf16.mxu0 %v8599_v51 }
 0x1b3   : > { %v8769_v5 = vpop.f32.mrb[48].mxu1 }
 0x1b4   : > { %10826 = vst [vmem:[#allocation33_spill] sm:$0xff] %v8769_v5  ;;  %v8771_v4 = vpop.f32.mrb[49].mxu1 }
 0x1b5   : > { %10827 = vst [vmem:[#allocation34_spill] sm:$0xff] %v8771_v4  ;;  %v8773_v42 = vpop.f32.mrb[50].mxu1 }
 0x1b6   : > { %10828 = vst [vmem:[#allocation35_spill] sm:$0xff] %v8773_v42  ;;  %v8775_v57 = vpop.f32.mrb[51].mxu1 }
 0x1b7   : > { %10829 = vst [vmem:[#allocation36_spill] sm:$0xff] %v8775_v57 }
 0x1b8   : > { %1312 = vmatmul.mubr.bf16.gmra.mrb[140].mxu1 %v8603_v53 }
 0x1b9   : > { %2547 = vmatmul.mubr.bf16.gmra.mrb[156].mxu0 %v8615_v54  ;;  %1319 = vmatprep.mubr.bf16.mxu1 %v8599_v51 }
 0x1ba   : > { %2554 = vmatprep.mubr.bf16.mxu0 %v8599_v51 }
 0x1bb   : > { %v822_v11 = vpop.f32.mrb[52].mxu1 }
 0x1bc   : > { %v1223_v2 = vpop.f32.mrb[52].mxu0  ;;  %v824_v37 = vpop.f32.mrb[53].mxu1 }
 0x1bd   : > { %v1225_v12 = vpop.f32.mrb[53].mxu0  ;;  %v8781_v24 = vadd.f32 %v1223_v2, %v822_v11  ;;  %v826_v26 = vpop.f32.mrb[54].mxu1 }
 0x1be   : > { %v1227_v4 = vpop.f32.mrb[54].mxu0  ;;  %v8783_v5 = vadd.f32 %v1225_v12, %v824_v37  ;;  %v827_v42 = vpop.f32.mrb[55].mxu1 }
 0x1bf   : > { %10830 = vst [vmem:[#allocation37_spill] sm:$0xff] %v8781_v24  ;;  %v1228_v57 = vpop.f32.mrb[55].mxu0  ;;  %v7909_v24 = vld [vmem:[#allocation6 + $0xb4] ss:$8 sps:$4 sm:$0xff]  }
 0x1c0   : > { %10831 = vst [vmem:[#allocation38_spill] sm:$0xff] %v8783_v5  ;;  %1320 = vmatmul.mubr.bf16.gmra.mrb[96].mxu1 %v8609_v0  ;;  %v7904_v5 = vld [vmem:[#allocation6 + $0x320] ss:$8 sps:$4 sm:$0xff]  }
 0x1c1   : > { %2555 = vmatmul.mubr.bf16.gmra.mrb[160].mxu0 %v8621_v55  ;;  %1329 = vmatprep.mubr.bf16.mxu1 %v8599_v51 }
 0x1c2   : > { %2564 = vmatprep.mubr.bf16.mxu0 %v8599_v51 }
 0x1c3   : > { %v8789_v56 = vpop.f32.mrb[56].mxu1 }
 0x1c4   : > { %10832 = vst [vmem:[#allocation39_spill] sm:$0xff] %v8789_v56  ;;  %v8791_v14 = vpop.f32.mrb[57].mxu1  ;;  %v7906_v56 = vld [vmem:[#allocation6 + $0x324] ss:$8 sps:$4 sm:$0xff]  }
 0x1c5   : > { %10833 = vst [vmem:[#allocation40_spill] sm:$0xff] %v8791_v14  ;;  %v8793_v11 = vpop.f32.mrb[58].mxu1 }
 0x1c6   : > { %10834 = vst [vmem:[#allocation41_spill] sm:$0xff] %v8793_v11  ;;  %v8795_v2 = vpop.f32.mrb[59].mxu1 }
 0x1c7   : > { %10835 = vst [vmem:[#allocation42_spill] sm:$0xff] %v8795_v2 }
 0x1c8   : > { %1330 = vmatmul.mubr.bf16.gmra.mrb[144].mxu1 %v8615_v54 }
 0x1c9   : > { %2565 = vmatmul.mubr.bf16.gmra.mrb[164].mxu0 %v8627_v58  ;;  %1337 = vmatprep.mubr.bf16.mxu1 %v8599_v51 }
 0x1ca   : > { %2572 = vmatprep.mubr.bf16.mxu0 %v8599_v51 }
 0x1cb   : > { %v840_v0 = vpop.f32.mrb[60].mxu1 }
 0x1cc   : > { %v1241_v4 = vpop.f32.mrb[60].mxu0  ;;  %v842_v42 = vpop.f32.mrb[61].mxu1 }
 0x1cd   : > { %v1243_v57 = vpop.f32.mrb[61].mxu0  ;;  %v8801_v37 = vadd.f32 %v1241_v4, %v840_v0  ;;  %v844_v12 = vpop.f32.mrb[62].mxu1 }
 0x1ce   : > { %v1245_v26 = vpop.f32.mrb[62].mxu0  ;;  %v8803_v14 = vadd.f32 %v1243_v57, %v842_v42  ;;  %v845_v11 = vpop.f32.mrb[63].mxu1  ;;  %v7889_v12 = vld [vmem:[#allocation6 + $0x80] ss:$8 sps:$4 sm:$0xff]  }
 0x1cf   : > { %10836 = vst [vmem:[#allocation43_spill] sm:$0xff] %v8801_v37  ;;  %v1246_v2 = vpop.f32.mrb[63].mxu0  ;;  %v7892_v26 = vld [vmem:[#allocation6 + $0x300] ss:$8 sps:$4 sm:$0xff]   ;;  %v7898_v37 = vld [vmem:[#allocation6 + $0x310] ss:$8 sps:$4 sm:$0xff]  }
 0x1d0   : > { %10837 = vst [vmem:[#allocation44_spill] sm:$0xff] %v8803_v14  ;;  %1338 = vmatmul.mubr.bf16.gmra.mrb[104].mxu1 %v8621_v55  ;;  %v7895_v14 = vld [vmem:[#allocation6 + $0x90] ss:$8 sps:$4 sm:$0xff]  }
 0x1d1   : > { %2573 = vmatmul.mubr.bf16.gmra.mrb[168].mxu0 %v8633_v59  ;;  %1347 = vmatprep.mubr.bf16.mxu1 %v8599_v51 }
 0x1d2   : > { %2582 = vmatprep.mubr.bf16.mxu0 %v8599_v51 }
 0x1d8   : > { %1348 = vmatmul.mubr.bf16.gmra.mrb[148].mxu1 %v8627_v58 }
 0x1d9   : > { %2583 = vmatmul.mubr.bf16.gmra.mrb[172].mxu0 %v8645_v63  ;;  %1355 = vmatprep.mubr.bf16.mxu1 %v8599_v51 }
 0x1da   : > { %2590 = vmatprep.mubr.bf16.mxu0 %v8599_v51 }
 0x1db   : > { %v8813_v54 = vpop.f32.mrb[68].mxu1 }
 0x1dc   : > { %v8815_v11 = vpop.f32.mrb[69].mxu1 }
 0x1dd   : > { %v862_v2 = vpop.f32.mrb[70].mxu1 }
 0x1de   : > { %v863_v55 = vpop.f32.mrb[71].mxu1 }
 0x1df   : > { %v7897_v55 = vld [vmem:[#allocation6 + $0x94] ss:$8 sps:$4 sm:$0xff]  }
 0x1e0   : > { %1356 = vmatmul.mubr.bf16.gmra.mrb[112].mxu1 %v8633_v59 }
 0x1e1   : > { %2591 = vmatmul.mubr.bf16.gmra.mrb[176].mxu0 %v8655_v9  ;;  %1365 = vmatprep.mubr.bf16.mxu1 %v8599_v51 }
 0x1e2   : > { %2600 = vmatprep.mubr.bf16.mxu0 %v8599_v51 }
 0x1e8   : > { %1366 = vmatmul.mubr.bf16.gmra.mrb[152].mxu1 %v8645_v63 }
 0x1e9   : > { %2601 = vmatmul.mubr.bf16.gmra.mrb[180].mxu0 %v8669_v20  ;;  %1373 = vmatprep.mubr.bf16.mxu1 %v8599_v51 }
 0x1ea   : > { %2608 = vmatprep.mubr.bf16.mxu0 %v8599_v51 }
 0x1eb   : > { %v8825_v58 = vpop.f32.mrb[76].mxu1 }
 0x1ec   : > { %v8827_v0 = vpop.f32.mrb[77].mxu1 }
 0x1ed   : > { %v880_v4 = vpop.f32.mrb[78].mxu1 }
 0x1ee   : > { %v881_v59 = vpop.f32.mrb[79].mxu1  ;;  %v7900_v4 = vld [vmem:[#allocation6 + $0x314] ss:$8 sps:$4 sm:$0xff]  }
 0x1ef   : > { %v8841_v59 = vld [vmem:[#allocation2 + $0x10] sm:$0xff] }
 0x1f0   : > { %1374 = vmatmul.mubr.bf16.gmra.mrb[120].mxu1 %v8655_v9 }
 0x1f1   : > { %2609 = vmatmul.mubr.bf16.gmra.mrb[184].mxu0 %v8679_v38  ;;  %1383 = vmatprep.mubr.bf16.mxu1 %v8599_v51 }
 0x1f2   : > { %2618 = vmatprep.mubr.bf16.mxu0 %v8599_v51 }
 0x1f8   : > { %1384 = vmatmul.mubr.bf16.gmra.mrb[156].mxu1 %v8669_v20 }
 0x1f9   : > { %2619 = vmatmul.mubr.bf16.gmra.mrb[188].mxu0 %v8693_v47  ;;  %1520 = vmatprep.mubr.bf16.mxu1 %v8599_v51 }
 0x1fa   : > { %2739 = vmatprep.mubr.bf16.mxu0 %v8599_v51 }
 0x1fb   : > { %v8837_v63 = vpop.f32.mrb[84].mxu1 }
 0x1fc   : > { %v8839_v42 = vpop.f32.mrb[85].mxu1 }
 0x1fd   : > { %v898_v57 = vpop.f32.mrb[86].mxu1 }
 0x1fe   : > { %v899_v2 = vpop.f32.mrb[87].mxu1  ;;  %v7903_v57 = vld [vmem:[#allocation6 + $0xa4] ss:$8 sps:$4 sm:$0xff]  }
 0x1ff   : > { %v7901_v2 = vld [vmem:[#allocation6 + $0xa0] ss:$8 sps:$4 sm:$0xff]  }
 0x200   : > { %1521 = vmatmul.mubr.bf16.vlgmr.msra.gmra.mrb[160].mxu1 %v8841_v59 }
 0x201   : > { %2740 = vmatmul.mubr.bf16.vlgmr.msra.gmra.mrb[64].mxu0 %v8599_v51  ;;  %1890 = vmatpush1.bf16.msra.mxu1 %v7889_v12  ;;  %v8847_v12 = vld [vmem:[#allocation2 + $0x18] sm:$0xff] }
 0x202   : > { %3158 = vmatpush1.bf16.msra.mxu0 %v7892_v26  ;;  %1530 = vmatprep.mubr.bf16.mxu1 %v8599_v51 }
 0x203   : > { %2749 = vmatprep.mubr.bf16.mxu0 %v8599_v51  ;;  %1891 = vmatprep.subr.bf16.mxu1 %v7897_v55  ;;  %v7918_v55 = vld [vmem:[#allocation6 + $0x344] ss:$8 sps:$4 sm:$0xff]  }
 0x204   : > { %3159 = vmatprep.subr.bf16.mxu0 %v7900_v4 }
 0x205   : > { %1892 = vmatpush1.bf16.msra.mxu1 %v7895_v14  ;;  %v7907_v14 = vld [vmem:[#allocation6 + $0xb0] ss:$8 sps:$4 sm:$0xff]  }
 0x206   : > { %3160 = vmatpush1.bf16.msra.mxu0 %v7898_v37  ;;  %1893 = vmatprep.subr.bf16.mxu1 %v7903_v57  ;;  %v7910_v37 = vld [vmem:[#allocation6 + $0x330] ss:$8 sps:$4 sm:$0xff]  }
 0x207   : > { %3161 = vmatprep.subr.bf16.mxu0 %v7906_v56  ;;  %v7915_v56 = vld [vmem:[#allocation6 + $0xc4] ss:$8 sps:$4 sm:$0xff]  }
 0x208   : > { %1531 = vmatmul.mubr.bf16.gmra.mrb[164].mxu1 %v8847_v12 }
 0x209   : > { %2750 = vmatmul.mubr.bf16.gmra.mrb[68].mxu0 %v8599_v51  ;;  %1538 = vmatprep.mubr.bf16.mxu1 %v8599_v51 }
 0x20a   : > { %2757 = vmatprep.mubr.bf16.mxu0 %v8599_v51  ;;  %1894 = vmatpush1.bf16.msra.mxu1 %v7901_v2  ;;  %v8857_v2 = vld [vmem:[#allocation2 + $0x20] sm:$0xff] }
 0x20b   : > { %3162 = vmatpush1.bf16.msra.mxu0 %v7904_v5  ;;  %v8853_v26 = vpop.f32.mrb[92].mxu1  ;;  %1895 = vmatprep.subr.bf16.mxu1 %v7909_v24 }
 0x20c   : > { %3163 = vmatprep.subr.bf16.mxu0 %v7912_v52  ;;  %v8855_v4 = vpop.f32.mrb[93].mxu1  ;;  %v8863_v52 = vld [vmem:[#allocation2 + $0x28] sm:$0xff] }
 0x20d   : > { %v916_v57 = vpop.f32.mrb[94].mxu1 }
 0x20e   : > { %v917_v40 = vpop.f32.mrb[95].mxu1  ;;  %1896 = vmatpush1.bf16.msra.mxu1 %v7907_v14  ;;  %v8879_v57 = vld [vmem:[#allocation2 + $0x38] sm:$0xff] }
 0x20f   : > { %3164 = vmatpush1.bf16.msra.mxu0 %v7910_v37  ;;  %1897 = vmatprep.subr.bf16.mxu1 %v7915_v56  ;;  %v8873_v37 = vld [vmem:[#allocation2 + $0x30] sm:$0xff] }
 0x210   : > { %3165 = vmatprep.subr.bf16.mxu0 %v7918_v55  ;;  %1539 = vmatmul.mubr.bf16.gmra.mrb[168].mxu1 %v8857_v2  ;;  %v7922_v56 = vld [vmem:[#allocation6 + $0x350] ss:$8 sps:$4 sm:$0xff]   ;;  %v7924_v55 = vld [vmem:[#allocation6 + $0x354] ss:$8 sps:$4 sm:$0xff]  }
 0x211   : > { %2758 = vmatmul.mubr.bf16.gmra.mrb[72].mxu0 %v8841_v59  ;;  %1548 = vmatprep.mubr.bf16.mxu1 %v8599_v51 }
 0x212   : > { %2767 = vmatprep.mubr.bf16.mxu0 %v8599_v51  ;;  %1898 = vmatpush1.bf16.msra.mxu1 %v7913_v13  ;;  %v7921_v13 = vld [vmem:[#allocation6 + $0xd4] ss:$8 sps:$4 sm:$0xff]  }
 0x213   : > { %3166 = vmatpush1.bf16.msra.mxu0 %v7916_v7  ;;  %v7919_v7 = vld [vmem:[#allocation6 + $0xd0] ss:$8 sps:$4 sm:$0xff]   ;;  %1899 = vmatprep.subr.bf16.mxu1 %v7921_v13  ;;  %v8902_v13 = vld [vmem:[#allocation2 + $0x40] sm:$0xff] }
 0x214   : > { %3167 = vmatprep.subr.bf16.mxu0 %v7924_v55  ;;  %v7927_v55 = vld [vmem:[#allocation6 + $0xe4] ss:$8 sps:$4 sm:$0xff]  }
 0x216   : > { %1900 = vmatpush1.bf16.msra.mxu1 %v7919_v7 }
 0x217   : > { %3168 = vmatpush1.bf16.msra.mxu0 %v7922_v56  ;;  %v7925_v56 = vld [vmem:[#allocation6 + $0xe0] ss:$8 sps:$4 sm:$0xff]   ;;  %1901 = vmatprep.subr.bf16.mxu1 %v7927_v55 }
 0x218   : > { %1549 = vmatmul.mubr.bf16.gmra.mrb[172].mxu1 %v8863_v52  ;;  %3169 = vmatprep.subr.bf16.mxu0 %v7930_v8 }
 0x219   : > { %2768 = vmatmul.mubr.bf16.gmra.mrb[76].mxu0 %v8847_v12  ;;  %1556 = vmatprep.mubr.bf16.mxu1 %v8599_v51 }
 0x21a   : > { %2775 = vmatprep.mubr.bf16.mxu0 %v8599_v51  ;;  %1902 = vmatpush1.bf16.msra.mxu1 %v7925_v56 }
 0x21b   : > { %v8869_v40 = vpop.f32.mrb[100].mxu1  ;;  %3170 = vmatpush1.bf16.msra.mxu0 %v7928_v28 }
 0x21c   : > { %v8871_v5 = vpop.f32.mrb[101].mxu1 }
 0x21d   : > { %v934_v24 = vpop.f32.mrb[102].mxu1 }
 0x21e   : > { %v935_v14 = vpop.f32.mrb[103].mxu1 }
 0x220   : > { %1557 = vmatmul.mubr.bf16.gmra.mrb[176].mxu1 %v8873_v37 }
 0x221   : > { %2776 = vmatmul.mubr.bf16.gmra.mrb[80].mxu0 %v8857_v2  ;;  %1566 = vmatprep.mubr.bf16.mxu1 %v8599_v51 }
 0x222   : > { %2785 = vmatprep.mubr.bf16.mxu0 %v8599_v51 }
 0x228   : > { %1567 = vmatmul.mubr.bf16.gmra.mrb[180].mxu1 %v8879_v57 }
 0x229   : > { %2786 = vmatmul.mubr.bf16.gmra.mrb[84].mxu0 %v8863_v52  ;;  %1574 = vmatprep.mubr.bf16.mxu1 %v8599_v51 }
 0x22a   : > { %2793 = vmatprep.mubr.bf16.mxu0 %v8599_v51 }
 0x22b   : > { %v8885_v24 = vpop.f32.mrb[108].mxu1 }
 0x22c   : > { %v8887_v14 = vpop.f32.mrb[109].mxu1 }
 0x22d   : > { %v952_v36 = vpop.f32.mrb[110].mxu1 }
 0x22e   : > { %v953_v30 = vpop.f32.mrb[111].mxu1 }
 0x230   : > { %1575 = vmatmul.mubr.bf16.gmra.mrb[184].mxu1 %v8507_v17 }
 0x231   : > { %2794 = vmatmul.mubr.bf16.gmra.mrb[88].mxu0 %v8873_v37  ;;  %1584 = vmatprep.mubr.bf16.mxu1 %v8599_v51 }
 0x232   : > { %2803 = vmatprep.mubr.bf16.mxu0 %v8599_v51 }
 0x238   : > { %1585 = vmatmul.mubr.bf16.gmra.mrb[188].mxu1 %v8514_v19 }
 0x239   : > { %2804 = vmatmul.mubr.bf16.gmra.mrb[92].mxu0 %v8879_v57  ;;  %1592 = vmatprep.mubr.bf16.mxu1 %v8599_v51 }
 0x23a   : > { %2811 = vmatprep.mubr.bf16.mxu0 %v8599_v51 }
 0x23b   : > { %v8897_v7 = vpop.f32.mrb[116].mxu1 }
 0x23c   : > { %v8899_v36 = vpop.f32.mrb[117].mxu1 }
 0x23d   : > { %v970_v30 = vpop.f32.mrb[118].mxu1 }
 0x23e   : > { %v971_v17 = vpop.f32.mrb[119].mxu1 }
 0x240   : > { %1593 = vmatmul.mubr.bf16.gmra.mrb[192].mxu1 %v8520_v21 }
 0x241   : > { %2812 = vmatmul.mubr.bf16.gmra.mrb[96].mxu0 %v8902_v13  ;;  %1602 = vmatprep.mubr.bf16.mxu1 %v8599_v51 }
 0x242   : > { %2821 = vmatprep.mubr.bf16.mxu0 %v8599_v51 }
 0x248   : > { %1603 = vmatmul.mubr.bf16.gmra.mrb[196].mxu1 %v8527_v23 }
 0x249   : > { %2822 = vmatmul.mubr.bf16.gmra.mrb[100].mxu0 %v8514_v19  ;;  %1610 = vmatprep.mubr.bf16.mxu1 %v8599_v51 }
 0x24a   : > { %2829 = vmatprep.mubr.bf16.mxu0 %v8599_v51 }
 0x24b   : > { %v8911_v30 = vpop.f32.mrb[124].mxu1 }
 0x24c   : > { %v8913_v17 = vpop.f32.mrb[125].mxu1 }
 0x24d   : > { %v988_v3 = vpop.f32.mrb[126].mxu1 }
 0x24e   : > { %v989_v50 = vpop.f32.mrb[127].mxu1 }
 0x250   : > { %1611 = vmatmul.mubr.bf16.gmra.mrb[200].mxu1 %v8533_v25 }
 0x251   : > { %2830 = vmatmul.mubr.bf16.gmra.mrb[104].mxu0 %v8520_v21  ;;  %1620 = vmatprep.mubr.bf16.mxu1 %v8599_v51 }
 0x252   : > { %2839 = vmatprep.mubr.bf16.mxu0 %v8599_v51 }
 0x253   : > { %v8919_v8 = vpop.f32.mrb[64].mxu1 }
 0x254   : > { %10838 = vst [vmem:[#allocation45_spill] sm:$0xff] %v8919_v8  ;;  %v8921_v19 = vpop.f32.mrb[65].mxu1  ;;  %v7936_v8 = vld [vmem:[#allocation6 + $0x374] ss:$8 sps:$4 sm:$0xff]  }
 0x255   : > { %10839 = vst [vmem:[#allocation46_spill] sm:$0xff] %v8921_v19  ;;  %v8923_v28 = vpop.f32.mrb[66].mxu1  ;;  %3171 = vmatprep.subr.bf16.mxu0 %v7936_v8 }
 0x256   : > { %10840 = vst [vmem:[#allocation47_spill] sm:$0xff] %v8923_v28  ;;  %v8925_v56 = vpop.f32.mrb[67].mxu1 }
 0x257   : > { %10841 = vst [vmem:[#allocation48_spill] sm:$0xff] %v8925_v56  ;;  %v7934_v56 = vld [vmem:[#allocation6 + $0x370] ss:$8 sps:$4 sm:$0xff]  }
 0x258   : > { %1621 = vmatmul.mubr.bf16.gmra.mrb[204].mxu1 %v8540_v27  ;;  %v7931_v27 = vld [vmem:[#allocation6 + $0xf0] ss:$8 sps:$4 sm:$0xff]   ;;  %3172 = vmatpush1.bf16.msra.mxu0 %v7934_v56 }
 0x259   : > { %2840 = vmatmul.mubr.bf16.gmra.mrb[108].mxu0 %v8527_v23  ;;  %1628 = vmatprep.mubr.bf16.mxu1 %v8599_v51  ;;  %v7933_v23 = vld [vmem:[#allocation6 + $0xf4] ss:$8 sps:$4 sm:$0xff]  }
 0x25a   : > { %2847 = vmatprep.mubr.bf16.mxu0 %v8599_v51  ;;  %1903 = vmatprep.subr.bf16.mxu1 %v7933_v23 }
 0x25b   : > { %v1259_v21 = vpop.f32.mrb[128].mxu1  ;;  %1904 = vmatpush1.bf16.msra.mxu1 %v7931_v27 }
 0x25c   : > { %v8932_v50 = vadd.f32 %v1259_v21, %v8813_v54  ;;  %v1261_v3 = vpop.f32.mrb[129].mxu1 }
 0x25d   : > { %v8935_v55 = vadd.f32 %v1261_v3, %v8815_v11  ;;  %v1263_v19 = vpop.f32.mrb[130].mxu1 }
 0x25e   : > { %v1264_v28 = vpop.f32.mrb[131].mxu1 }
 0x260   : > { %1629 = vmatmul.mubr.bf16.gmra.mrb[208].mxu1 %v8546_v29 }
 0x261   : > { %2848 = vmatmul.mubr.bf16.gmra.mrb[112].mxu0 %v8533_v25  ;;  %1638 = vmatprep.mubr.bf16.mxu1 %v8599_v51  ;;  %v8950_v25 = vld [vmem:[#allocation2 + $0x68] sm:$0xff] }
 0x262   : > { %2857 = vmatprep.mubr.bf16.mxu0 %v8599_v51 }
 0x263   : > { %v8941_v54 = vpop.f32.mrb[72].mxu1 }
 0x264   : > { %v8943_v11 = vpop.f32.mrb[73].mxu1 }
 0x265   : > { %v8945_v19 = vpop.f32.mrb[74].mxu1 }
 0x266   : > { %v8947_v29 = vpop.f32.mrb[75].mxu1 }
 0x268   : > { %1639 = vmatmul.mubr.bf16.gmra.mrb[212].mxu1 %v8553_v31  ;;  %v8962_v31 = vld [vmem:[#allocation2 + $0x70] sm:$0xff] }
 0x269   : > { %2858 = vmatmul.mubr.bf16.gmra.mrb[116].mxu0 %v8950_v25  ;;  %1646 = vmatprep.mubr.bf16.mxu1 %v8599_v51 }
 0x26a   : > { %2865 = vmatprep.mubr.bf16.mxu0 %v8599_v51 }
 0x26b   : > { %v1277_v28 = vpop.f32.mrb[132].mxu1 }
 0x26c   : > { %v8956_v8 = vadd.f32 %v1277_v28, %v8825_v58  ;;  %v1279_v21 = vpop.f32.mrb[133].mxu1 }
 0x26d   : > { %v8959_v56 = vadd.f32 %v1279_v21, %v8827_v0  ;;  %v1281_v3 = vpop.f32.mrb[134].mxu1  ;;  %v8976_v21 = vld [vmem:[#allocation2 + $0x78] sm:$0xff] }
 0x26e   : > { %v1282_v27 = vpop.f32.mrb[135].mxu1 }
 0x26f   : > { %10842 = vst [vmem:[#allocation49_spill] sm:$0xff] %v8959_v56  ;;  %v7942_v56 = vld [vmem:[#allocation6 + $0x404] ss:$8 sps:$4 sm:$0xff]  }
 0x270   : > { %1647 = vmatmul.mubr.bf16.gmra.mrb[216].mxu1 %v8559_v33  ;;  %4183 = vmatprep.subr.bf16.mxu0 %v7942_v56 }
 0x271   : > { %2866 = vmatmul.mubr.bf16.gmra.mrb[120].mxu0 %v8962_v31  ;;  %1656 = vmatprep.mubr.bf16.mxu1 %v8599_v51 }
 0x272   : > { %2875 = vmatprep.mubr.bf16.mxu0 %v8599_v51 }
 0x273   : > { %v8967_v23 = vpop.f32.mrb[80].mxu1 }
 0x274   : > { %10843 = vst [vmem:[#allocation50_spill] sm:$0xff] %v8967_v23  ;;  %v8969_v58 = vpop.f32.mrb[81].mxu1  ;;  %v7939_v23 = vld [vmem:[#allocation6 + $0x384] ss:$8 sps:$4 sm:$0xff]  }
 0x275   : > { %10844 = vst [vmem:[#allocation51_spill] sm:$0xff] %v8969_v58  ;;  %v8971_v28 = vpop.f32.mrb[82].mxu1  ;;  %3670 = vmatprep.subr.bf16.mxu1 %v7939_v23 }
 0x276   : > { %10845 = vst [vmem:[#allocation52_spill] sm:$0xff] %v8971_v28  ;;  %v8973_v0 = vpop.f32.mrb[83].mxu1 }
 0x277   : > { %10846 = vst [vmem:[#allocation53_spill] sm:$0xff] %v8973_v0 }
 0x278   : > { %1657 = vmatmul.mubr.bf16.gmra.mrb[220].mxu1 %v8565_v34  ;;  %v8988_v34 = vld [vmem:[#allocation2 + $0x80] sm:$0xff] }
 0x279   : > { %2876 = vmatmul.mubr.bf16.gmra.mrb[124].mxu0 %v8976_v21  ;;  %1664 = vmatprep.mubr.bf16.mxu1 %v8599_v51 }
 0x27a   : > { %2883 = vmatprep.mubr.bf16.mxu0 %v8599_v51 }
 0x27b   : > { %v1295_v33 = vpop.f32.mrb[136].mxu1 }
 0x27c   : > { %v8982_v3 = vadd.f32 %v1295_v33, %v8837_v63  ;;  %v1297_v27 = vpop.f32.mrb[137].mxu1 }
 0x27d   : > { %v8985_v58 = vadd.f32 %v1297_v27, %v8839_v42  ;;  %v1299_v28 = vpop.f32.mrb[138].mxu1 }
 0x27e   : > { %v1300_v0 = vpop.f32.mrb[139].mxu1 }
 0x280   : > { %1665 = vmatmul.mubr.bf16.gmra.mrb[224].mxu1 %v8571_v35  ;;  %v9002_v35 = vld [vmem:[#allocation2 + $0x88] sm:$0xff] }
 0x281   : > { %2884 = vmatmul.mubr.bf16.gmra.mrb[128].mxu0 %v8988_v34  ;;  %1674 = vmatprep.mubr.bf16.mxu1 %v8599_v51 }
 0x282   : > { %2893 = vmatprep.mubr.bf16.mxu0 %v8599_v51 }
 0x283   : > { %v8993_v63 = vpop.f32.mrb[88].mxu1 }
 0x284   : > { %v8995_v42 = vpop.f32.mrb[89].mxu1 }
 0x285   : > { %10847 = vst [vmem:[#allocation54_spill] sm:$0xff] %v8995_v42  ;;  %v8997_v28 = vpop.f32.mrb[90].mxu1 }
 0x286   : > { %10848 = vst [vmem:[#allocation55_spill] sm:$0xff] %v8997_v28  ;;  %v8999_v0 = vpop.f32.mrb[91].mxu1 }
 0x287   : > { %10849 = vst [vmem:[#allocation56_spill] sm:$0xff] %v8999_v0 }
 0x288   : > { %1675 = vmatmul.mubr.bf16.gmra.mrb[228].mxu1 %v8577_v41  ;;  %v9014_v41 = vld [vmem:[#allocation2 + $0x90] sm:$0xff] }
 0x289   : > { %2894 = vmatmul.mubr.bf16.gmra.mrb[132].mxu0 %v9002_v35  ;;  %1682 = vmatprep.mubr.bf16.mxu1 %v8599_v51 }
 0x28a   : > { %2901 = vmatprep.mubr.bf16.mxu0 %v8599_v51 }
 0x28b   : > { %v1313_v23 = vpop.f32.mrb[140].mxu1 }
 0x28c   : > { %v9008_v33 = vadd.f32 %v1313_v23, %v8853_v26  ;;  %v1315_v56 = vpop.f32.mrb[141].mxu1 }
 0x28d   : > { %v9011_v27 = vadd.f32 %v1315_v56, %v8855_v4  ;;  %v1317_v28 = vpop.f32.mrb[142].mxu1 }
 0x28e   : > { %10850 = vst [vmem:[#allocation57_spill] sm:$0xff] %v9008_v33  ;;  %v1318_v0 = vpop.f32.mrb[143].mxu1  ;;  %v9028_v28 = vld [vmem:[#allocation2 + $0x98] sm:$0xff]  ;;  %v7964_v33 = vld [vmem:[#allocation6 + $0x440] ss:$8 sps:$4 sm:$0xff]  }
 0x28f   : > { %10851 = vst [vmem:[#allocation58_spill] sm:$0xff] %v9011_v27  ;;  %v7952_v27 = vld [vmem:[#allocation6 + $0x420] ss:$8 sps:$4 sm:$0xff]  }
 0x290   : > { %1683 = vmatmul.mubr.bf16.gmra.mrb[232].mxu1 %v8583_v46 }
 0x291   : > { %2902 = vmatmul.mubr.bf16.gmra.mrb[136].mxu0 %v9014_v41  ;;  %1692 = vmatprep.mubr.bf16.mxu1 %v8599_v51 }
 0x292   : > { %2911 = vmatprep.mubr.bf16.mxu0 %v8599_v51 }
 0x293   : > { %v9019_v42 = vpop.f32.mrb[96].mxu1 }
 0x294   : > { %10852 = vst [vmem:[#allocation59_spill] sm:$0xff] %v9019_v42  ;;  %v9021_v26 = vpop.f32.mrb[97].mxu1 }
 0x295   : > { %10853 = vst [vmem:[#allocation60_spill] sm:$0xff] %v9021_v26  ;;  %v9023_v23 = vpop.f32.mrb[98].mxu1 }
 0x296   : > { %10854 = vst [vmem:[#allocation61_spill] sm:$0xff] %v9023_v23  ;;  %v9025_v4 = vpop.f32.mrb[99].mxu1 }
 0x297   : > { %10855 = vst [vmem:[#allocation62_spill] sm:$0xff] %v9025_v4 }
 0x298   : > { %1693 = vmatmul.mubr.bf16.gmra.mrb[236].mxu1 %v8589_v48  ;;  %v9040_v48 = vld [vmem:[#allocation2 + $0xa0] sm:$0xff] }
 0x299   : > { %2912 = vmatmul.mubr.bf16.gmra.mrb[140].mxu0 %v9028_v28  ;;  %1700 = vmatprep.mubr.bf16.mxu1 %v8599_v51 }
 0x29a   : > { %2919 = vmatprep.mubr.bf16.mxu0 %v8599_v51 }
 0x29b   : > { %v1331_v46 = vpop.f32.mrb[144].mxu1 }
 0x29c   : > { %v9034_v0 = vadd.f32 %v1331_v46, %v8869_v40  ;;  %v1333_v56 = vpop.f32.mrb[145].mxu1 }
 0x29d   : > { %v9037_v26 = vadd.f32 %v1333_v56, %v8871_v5  ;;  %v1335_v23 = vpop.f32.mrb[146].mxu1 }
 0x29e   : > { %10856 = vst [vmem:[#allocation63_spill] sm:$0xff] %v9034_v0  ;;  %v1336_v4 = vpop.f32.mrb[147].mxu1  ;;  %v9054_v23 = vld [vmem:[#allocation2 + $0xa8] sm:$0xff] }
 0x29f   : > { %10857 = vst [vmem:[#allocation64_spill] sm:$0xff] %v9037_v26  ;;  %v9097_v26 = vld [vmem:[#allocation2 + $0xd0] sm:$0xff] }
 0x2a0   : > { %1701 = vmatmul.mubr.bf16.gmra.mrb[240].mxu1 %v8595_v49  ;;  %v9057_v49 = vld [vmem:[#allocation2] sm:$0xff] }
 0x2a1   : > { %2920 = vmatmul.mubr.bf16.gmra.mrb[144].mxu0 %v9040_v48  ;;  %1710 = vmatprep.mubr.bf16.mxu1 %v8599_v51 }
 0x2a2   : > { %2929 = vmatprep.mubr.bf16.mxu0 %v8599_v51 }
 0x2a3   : > { %v9045_v42 = vpop.f32.mrb[104].mxu1 }
 0x2a4   : > { %10858 = vst [vmem:[#allocation65_spill] sm:$0xff] %v9045_v42  ;;  %v9047_v40 = vpop.f32.mrb[105].mxu1  ;;  %v9070_v42 = vld [vmem:[#allocation2 + $0xb0] sm:$0xff] }
 0x2a5   : > { %10859 = vst [vmem:[#allocation66_spill] sm:$0xff] %v9047_v40  ;;  %v9049_v46 = vpop.f32.mrb[106].mxu1  ;;  %v9067_v40 = vld [vmem:[#allocation2 + $0xc0] sm:$0xff] }
 0x2a6   : > { %10860 = vst [vmem:[#allocation67_spill] sm:$0xff] %v9049_v46  ;;  %v9051_v5 = vpop.f32.mrb[107].mxu1 }
 0x2a7   : > { %10861 = vst [vmem:[#allocation68_spill] sm:$0xff] %v9051_v5 }
 0x2a8   : > { %1711 = vmatmul.mubr.bf16.gmra.mrb[244].mxu1 %v8603_v53 }
 0x2a9   : > { %2930 = vmatmul.mubr.bf16.gmra.mrb[148].mxu0 %v9054_v23  ;;  %1718 = vmatprep.mubr.bf16.mxu1 %v9057_v49 }
 0x2aa   : > { %2937 = vmatprep.mubr.bf16.mxu0 %v9057_v49 }
 0x2ab   : > { %v1349_v51 = vpop.f32.mrb[148].mxu1 }
 0x2ac   : > { %v9062_v4 = vadd.f32 %v1349_v51, %v8885_v24  ;;  %v1351_v56 = vpop.f32.mrb[149].mxu1 }
 0x2ad   : > { %v9065_v46 = vadd.f32 %v1351_v56, %v8887_v14  ;;  %v1353_v5 = vpop.f32.mrb[150].mxu1  ;;  %v9083_v56 = vld [vmem:[#allocation2 + $0xc8] sm:$0xff] }
 0x2ae   : > { %10862 = vst [vmem:[#allocation69_spill] sm:$0xff] %v9062_v4  ;;  %v1354_v53 = vpop.f32.mrb[151].mxu1 }
 0x2af   : > { %10863 = vst [vmem:[#allocation70_spill] sm:$0xff] %v9065_v46  ;;  %v9086_v53 = vld [vmem:[#allocation2 + $0xb8] sm:$0xff] }
 0x2b0   : > { %1719 = vmatmul.mubr.bf16.gmra.mrb[248].mxu1 %v9067_v40 }
 0x2b1   : > { %2938 = vmatmul.mubr.bf16.gmra.mrb[152].mxu0 %v9070_v42  ;;  %1728 = vmatprep.mubr.bf16.mxu1 %v9057_v49 }
 0x2b2   : > { %2947 = vmatprep.mubr.bf16.mxu0 %v9057_v49 }
 0x2b3   : > { %v9075_v24 = vpop.f32.mrb[112].mxu1 }
 0x2b4   : > { %10864 = vst [vmem:[#allocation71_spill] sm:$0xff] %v9075_v24  ;;  %v9077_v51 = vpop.f32.mrb[113].mxu1 }
 0x2b5   : > { %10865 = vst [vmem:[#allocation72_spill] sm:$0xff] %v9077_v51  ;;  %v9079_v14 = vpop.f32.mrb[114].mxu1 }
 0x2b6   : > { %10866 = vst [vmem:[#allocation73_spill] sm:$0xff] %v9079_v14  ;;  %v9081_v5 = vpop.f32.mrb[115].mxu1 }
 0x2b7   : > { %10867 = vst [vmem:[#allocation74_spill] sm:$0xff] %v9081_v5 }
 0x2b8   : > { %1729 = vmatmul.mubr.bf16.gmra.mrb[252].mxu1 %v9083_v56 }
 0x2b9   : > { %2948 = vmatmul.mubr.bf16.gmra.mrb[156].mxu0 %v9086_v53  ;;  %1736 = vmatprep.mubr.bf16.mxu1 %v9057_v49 }
 0x2ba   : > { %2955 = vmatprep.mubr.bf16.mxu0 %v9057_v49 }
 0x2bb   : > { %v1367_v46 = vpop.f32.mrb[152].mxu1 }
 0x2bc   : > { %v9092_v24 = vadd.f32 %v1367_v46, %v8897_v7  ;;  %v1369_v51 = vpop.f32.mrb[153].mxu1 }
 0x2bd   : > { %v9095_v14 = vadd.f32 %v1369_v51, %v8899_v36  ;;  %v1371_v5 = vpop.f32.mrb[154].mxu1  ;;  %v9111_v51 = vld [vmem:[#allocation2 + $0xd8] sm:$0xff] }
 0x2be   : > { %10868 = vst [vmem:[#allocation75_spill] sm:$0xff] %v9092_v24  ;;  %v1372_v4 = vpop.f32.mrb[155].mxu1  ;;  %v9129_v24 = vld [vmem:[#allocation2 + $0xe8] sm:$0xff] }
 0x2bf   : > { %10869 = vst [vmem:[#allocation76_spill] sm:$0xff] %v9095_v14  ;;  %v9123_v14 = vld [vmem:[#allocation2 + $0xe0] sm:$0xff] }
 0x2c0   : > { %1737 = vmatmul.mubr.bf16.gmra.mrb[4].mxu1 %v9097_v26 }
 0x2c1   : > { %2956 = vmatmul.mubr.bf16.gmra.mrb[160].mxu0 %v9067_v40  ;;  %1746 = vmatprep.mubr.bf16.mxu1 %v9057_v49 }
 0x2c2   : > { %2965 = vmatprep.mubr.bf16.mxu0 %v9057_v49 }
 0x2c3   : > { %v9103_v0 = vpop.f32.mrb[120].mxu1 }
 0x2c4   : > { %10870 = vst [vmem:[#allocation77_spill] sm:$0xff] %v9103_v0  ;;  %v9105_v7 = vpop.f32.mrb[121].mxu1 }
 0x2c5   : > { %10871 = vst [vmem:[#allocation78_spill] sm:$0xff] %v9105_v7  ;;  %v9107_v46 = vpop.f32.mrb[122].mxu1 }
 0x2c6   : > { %10872 = vst [vmem:[#allocation79_spill] sm:$0xff] %v9107_v46  ;;  %v9109_v36 = vpop.f32.mrb[123].mxu1 }
 0x2c7   : > { %10873 = vst [vmem:[#allocation80_spill] sm:$0xff] %v9109_v36 }
 0x2c8   : > { %1747 = vmatmul.mubr.bf16.gmra.mrb[12].mxu1 %v9111_v51 }
 0x2c9   : > { %2966 = vmatmul.mubr.bf16.gmra.mrb[164].mxu0 %v9083_v56  ;;  %1754 = vmatprep.mubr.bf16.mxu1 %v9057_v49 }
 0x2ca   : > { %2973 = vmatprep.mubr.bf16.mxu0 %v9057_v49 }
 0x2cb   : > { %v1385_v4 = vpop.f32.mrb[156].mxu1 }
 0x2cc   : > { %v9118_v5 = vadd.f32 %v1385_v4, %v8911_v30  ;;  %v1387_v0 = vpop.f32.mrb[157].mxu1  ;;  %v9144_v30 = vld [vmem:[#allocation2 + $0xf0] sm:$0xff]  ;;  %v7954_v4 = vld [vmem:[#allocation6 + $0x424] ss:$8 sps:$4 sm:$0xff]  }
 0x2cd   : > { %v9121_v7 = vadd.f32 %v1387_v0, %v8913_v17  ;;  %v1389_v46 = vpop.f32.mrb[158].mxu1  ;;  %v7937_v17 = vld [vmem:[#allocation6 + $0x380] ss:$8 sps:$4 sm:$0xff]   ;;  %v7945_v0 = vld [vmem:[#allocation6 + $0x394] ss:$8 sps:$4 sm:$0xff]  }
 0x2ce   : > { %10874 = vst [vmem:[#allocation81_spill] sm:$0xff] %v9118_v5  ;;  %v1390_v36 = vpop.f32.mrb[159].mxu1  ;;  %v7948_v46 = vld [vmem:[#allocation6 + $0x414] ss:$8 sps:$4 sm:$0xff]   ;;  %v7949_v5 = vld [vmem:[#allocation6 + $0x3a0] ss:$8 sps:$4 sm:$0xff]  }
 0x2cf   : > { %10875 = vst [vmem:[#allocation82_spill] sm:$0xff] %v9121_v7  ;;  %v7943_v36 = vld [vmem:[#allocation6 + $0x390] ss:$8 sps:$4 sm:$0xff]   ;;  %v9159_v7 = vld [vmem:[#allocation2 + $0x28] sm:$0xff] }
 0x2d0   : > { %1755 = vmatmul.mubr.bf16.gmra.mrb[20].mxu1 %v9123_v14 }
 0x2d1   : > { %2974 = vmatmul.mubr.bf16.gmra.mrb[168].mxu0 %v9097_v26  ;;  %1764 = vmatprep.mubr.bf16.mxu1 %v9057_v49 }
 0x2d2   : > { %2983 = vmatprep.mubr.bf16.mxu0 %v9057_v49 }
 0x2d8   : > { %1765 = vmatmul.mubr.bf16.gmra.mrb[28].mxu1 %v9129_v24 }
 0x2d9   : > { %2984 = vmatmul.mubr.bf16.gmra.mrb[172].mxu0 %v9111_v51  ;;  %1772 = vmatprep.mubr.bf16.mxu1 %v9057_v49 }
 0x2da   : > { %2991 = vmatprep.mubr.bf16.mxu0 %v9057_v49 }
 0x2e0   : > { %1773 = vmatmul.mubr.bf16.gmra.mrb[36].mxu1 %v8655_v9  ;;  %v9153_v9 = vld [vmem:[#allocation2 + $0x20] sm:$0xff] }
 0x2e1   : > { %2992 = vmatmul.mubr.bf16.gmra.mrb[176].mxu0 %v9123_v14  ;;  %1782 = vmatprep.mubr.bf16.mxu1 %v9057_v49 }
 0x2e2   : > { %3001 = vmatprep.mubr.bf16.mxu0 %v9057_v49 }
 0x2e8   : > { %1783 = vmatmul.mubr.bf16.gmra.mrb[44].mxu1 %v8669_v20 }
 0x2e9   : > { %3002 = vmatmul.mubr.bf16.gmra.mrb[180].mxu0 %v9129_v24  ;;  %1790 = vmatprep.mubr.bf16.mxu1 %v9057_v49 }
 0x2ea   : > { %3009 = vmatprep.mubr.bf16.mxu0 %v9057_v49 }
 0x2f0   : > { %1791 = vmatmul.mubr.bf16.gmra.mrb[52].mxu1 %v8679_v38  ;;  %v7940_v38 = vld [vmem:[#allocation6 + $0x400] ss:$8 sps:$4 sm:$0xff]  }
 0x2f1   : > { %3010 = vmatmul.mubr.bf16.gmra.mrb[184].mxu0 %v9144_v30  ;;  %1800 = vmatprep.mubr.bf16.mxu1 %v9057_v49 }
 0x2f2   : > { %3019 = vmatprep.mubr.bf16.mxu0 %v9057_v49 }
 0x2f8   : > { %1801 = vmatmul.mubr.bf16.gmra.mrb[60].mxu1 %v8693_v47  ;;  %v7946_v47 = vld [vmem:[#allocation6 + $0x410] ss:$8 sps:$4 sm:$0xff]  }
 0x2f9   : > { %3020 = vmatmul.mubr.bf16.gmra.mrb[188].mxu0 %v8669_v20  ;;  %1921 = vmatprep.mubr.bf16.mxu1 %v9057_v49  ;;  %v7951_v20 = vld [vmem:[#allocation6 + $0x3a4] ss:$8 sps:$4 sm:$0xff]  }
 0x2fa   : > { %3189 = vmatprep.mubr.bf16.mxu0 %v9057_v49 }
 0x300   : > { %1922 = vmatmul.mubr.bf16.vlgmr.msra.gmra.mrb[160].mxu1 %v9057_v49 }
 0x301   : > { %3190 = vmatmul.mubr.bf16.vlgmr.msra.gmra.mrb[0].mxu0 %v9153_v9  ;;  %3671 = vmatpush1.bf16.msra.mxu1 %v7937_v17  ;;  %v7957_v17 = vld [vmem:[#allocation6 + $0x3b4] ss:$8 sps:$4 sm:$0xff]  }
 0x302   : > { %4184 = vmatpush1.bf16.msra.mxu0 %v7940_v38  ;;  %1931 = vmatprep.mubr.bf16.mxu1 %v9057_v49  ;;  %v7960_v38 = vld [vmem:[#allocation6 + $0x434] ss:$8 sps:$4 sm:$0xff]  }
 0x303   : > { %3199 = vmatprep.mubr.bf16.mxu0 %v9057_v49  ;;  %3672 = vmatprep.subr.bf16.mxu1 %v7945_v0  ;;  %v7955_v0 = vld [vmem:[#allocation6 + $0x3b0] ss:$8 sps:$4 sm:$0xff]  }
 0x304   : > { %4185 = vmatprep.subr.bf16.mxu0 %v7948_v46  ;;  %v7958_v46 = vld [vmem:[#allocation6 + $0x430] ss:$8 sps:$4 sm:$0xff]  }
 0x305   : > { %3673 = vmatpush1.bf16.msra.mxu1 %v7943_v36  ;;  %v7963_v36 = vld [vmem:[#allocation6 + $0x3c4] ss:$8 sps:$4 sm:$0xff]  }
 0x306   : > { %4186 = vmatpush1.bf16.msra.mxu0 %v7946_v47  ;;  %3674 = vmatprep.subr.bf16.mxu1 %v7951_v20  ;;  %v7966_v47 = vld [vmem:[#allocation6 + $0x444] ss:$8 sps:$4 sm:$0xff]   ;;  %v9165_v20 = vld [vmem:[#allocation2 + $0x30] sm:$0xff] }
 0x307   : > { %4187 = vmatprep.subr.bf16.mxu0 %v7954_v4  ;;  %v7961_v4 = vld [vmem:[#allocation6 + $0x3c0] ss:$8 sps:$4 sm:$0xff]  }
 0x308   : > { %1932 = vmatmul.mubr.bf16.gmra.mrb[164].mxu1 %v9057_v49 }
 0x309   : > { %3200 = vmatmul.mubr.bf16.gmra.mrb[192].mxu0 %v9159_v7  ;;  %1939 = vmatprep.mubr.bf16.mxu1 %v9057_v49 }
 0x30a   : > { %3207 = vmatprep.mubr.bf16.mxu0 %v9057_v49  ;;  %3675 = vmatpush1.bf16.msra.mxu1 %v7949_v5  ;;  %v9177_v5 = vld [vmem:[#allocation2 + $0x40] sm:$0xff] }
 0x30b   : > { %4188 = vmatpush1.bf16.msra.mxu0 %v7952_v27  ;;  %3676 = vmatprep.subr.bf16.mxu1 %v7957_v17  ;;  %v9171_v27 = vld [vmem:[#allocation2 + $0x38] sm:$0xff] }
 0x30c   : > { %4189 = vmatprep.subr.bf16.mxu0 %v7960_v38  ;;  %v7969_v17 = vld [vmem:[#allocation6 + $0x3d4] ss:$8 sps:$4 sm:$0xff]   ;;  %v7970_v38 = vld [vmem:[#allocation6 + $0x450] ss:$8 sps:$4 sm:$0xff]  }
 0x30e   : > { %3677 = vmatpush1.bf16.msra.mxu1 %v7955_v0  ;;  %v9195_v0 = vld [vmem:[#allocation2 + $0x58] sm:$0xff] }
 0x30f   : > { %4190 = vmatpush1.bf16.msra.mxu0 %v7958_v46  ;;  %3678 = vmatprep.subr.bf16.mxu1 %v7963_v36  ;;  %v7975_v46 = vld [vmem:[#allocation6 + $0x3e4] ss:$8 sps:$4 sm:$0xff]   ;;  %v7976_v36 = vld [vmem:[#allocation6 + $0x460] ss:$8 sps:$4 sm:$0xff]  }
 0x310   : > { %4191 = vmatprep.subr.bf16.mxu0 %v7966_v47  ;;  %1940 = vmatmul.mubr.bf16.gmra.mrb[168].mxu1 %v8841_v59  ;;  %v7967_v59 = vld [vmem:[#allocation6 + $0x3d0] ss:$8 sps:$4 sm:$0xff]   ;;  %v9207_v47 = vld [vmem:[#allocation2 + $0x68] sm:$0xff] }
 0x311   : > { %3208 = vmatmul.mubr.bf16.gmra.mrb[8].mxu0 %v9165_v20  ;;  %1949 = vmatprep.mubr.bf16.mxu1 %v9057_v49 }
 0x312   : > { %3217 = vmatprep.mubr.bf16.mxu0 %v9057_v49  ;;  %3679 = vmatpush1.bf16.msra.mxu1 %v7961_v4  ;;  %v8012_v4 = vld [vmem:[#allocation2 + $0x48] sm:$0xff] }
 0x313   : > { %4192 = vmatpush1.bf16.msra.mxu0 %v7964_v33  ;;  %3680 = vmatprep.subr.bf16.mxu1 %v7969_v17  ;;  %v9183_v33 = vld [vmem:[#allocation2 + $0x48] sm:$0xff]  ;;  %v9217_v17 = vld [vmem:[#allocation2 + $0x78] sm:$0xff] }
 0x316   : > { %3681 = vmatpush1.bf16.msra.mxu1 %v7967_v59  ;;  %v8013_v59 = vld [vmem:[#allocation2 + $0x50] sm:$0xff] }
 0x317   : > { %3682 = vmatprep.subr.bf16.mxu1 %v7975_v46  ;;  %v7979_v46 = vld [vmem:[#allocation6 + $0x3f0] ss:$8 sps:$4 sm:$0xff]  }
 0x318   : > { %1950 = vmatmul.mubr.bf16.gmra.mrb[172].mxu1 %v8847_v12  ;;  %v7972_v12 = vld [vmem:[#allocation6 + $0x454] ss:$8 sps:$4 sm:$0xff]  }
 0x319   : > { %3218 = vmatmul.mubr.bf16.gmra.mrb[196].mxu0 %v9171_v27  ;;  %1957 = vmatprep.mubr.bf16.mxu1 %v9057_v49 }
 0x31a   : > { %3225 = vmatprep.mubr.bf16.mxu0 %v9057_v49  ;;  %4193 = vmatprep.subr.bf16.mxu0 %v7972_v12  ;;  %v9222_v12 = vld [vmem:[#allocation2 + $0x80] sm:$0xff] }
 0x31b   : > { %4194 = vmatpush1.bf16.msra.mxu0 %v7970_v38  ;;  %v8014_v38 = vld [vmem:[#allocation2 + $0x58] sm:$0xff] }
 0x320   : > { %1958 = vmatmul.mubr.bf16.gmra.mrb[176].mxu1 %v8857_v2  ;;  %v9189_v2 = vld [vmem:[#allocation2 + $0x50] sm:$0xff] }
 0x321   : > { %3226 = vmatmul.mubr.bf16.gmra.mrb[16].mxu0 %v9177_v5  ;;  %1967 = vmatprep.mubr.bf16.mxu1 %v9057_v49 }
 0x322   : > { %3235 = vmatprep.mubr.bf16.mxu0 %v9057_v49 }
 0x328   : > { %1968 = vmatmul.mubr.bf16.gmra.mrb[180].mxu1 %v8863_v52  ;;  %v9201_v52 = vld [vmem:[#allocation2 + $0x60] sm:$0xff] }
 0x329   : > { %3236 = vmatmul.mubr.bf16.gmra.mrb[200].mxu0 %v9183_v33  ;;  %1975 = vmatprep.mubr.bf16.mxu1 %v9057_v49 }
 0x32a   : > { %3243 = vmatprep.mubr.bf16.mxu0 %v9057_v49 }
 0x330   : > { %1976 = vmatmul.mubr.bf16.gmra.mrb[184].mxu1 %v8873_v37  ;;  %v7973_v37 = vld [vmem:[#allocation6 + $0x3e0] ss:$8 sps:$4 sm:$0xff]  }
 0x331   : > { %3244 = vmatmul.mubr.bf16.gmra.mrb[24].mxu0 %v9189_v2  ;;  %1985 = vmatprep.mubr.bf16.mxu1 %v9057_v49 }
 0x332   : > { %3253 = vmatprep.mubr.bf16.mxu0 %v9057_v49  ;;  %3683 = vmatpush1.bf16.msra.mxu1 %v7973_v37  ;;  %v8015_v37 = vld [vmem:[#allocation2 + $0x60] sm:$0xff] }
 0x338   : > { %1986 = vmatmul.mubr.bf16.gmra.mrb[188].mxu1 %v8879_v57  ;;  %v7978_v57 = vld [vmem:[#allocation6 + $0x464] ss:$8 sps:$4 sm:$0xff]  }
 0x339   : > { %3254 = vmatmul.mubr.bf16.gmra.mrb[204].mxu0 %v9195_v0  ;;  %1993 = vmatprep.mubr.bf16.mxu1 %v9057_v49 }
 0x33a   : > { %3261 = vmatprep.mubr.bf16.mxu0 %v9057_v49  ;;  %4195 = vmatprep.subr.bf16.mxu0 %v7978_v57  ;;  %v7982_v57 = vld [vmem:[#allocation6 + $0x470] ss:$8 sps:$4 sm:$0xff]  }
 0x33b   : > { %4196 = vmatpush1.bf16.msra.mxu0 %v7976_v36  ;;  %v7981_v36 = vld [vmem:[#allocation6 + $0x3f4] ss:$8 sps:$4 sm:$0xff]  }
 0x33c   : > { %3684 = vmatprep.subr.bf16.mxu1 %v7981_v36 }
 0x33d   : > { %3685 = vmatpush1.bf16.msra.mxu1 %v7979_v46 }
 0x340   : > { %1994 = vmatmul.mubr.bf16.gmra.mrb[192].mxu1 %v8902_v13  ;;  %v9212_v13 = vld [vmem:[#allocation2 + $0x70] sm:$0xff] }
 0x341   : > { %3262 = vmatmul.mubr.bf16.gmra.mrb[32].mxu0 %v9201_v52  ;;  %2003 = vmatprep.mubr.bf16.mxu1 %v9057_v49 }
 0x342   : > { %3271 = vmatprep.mubr.bf16.mxu0 %v9057_v49 }
 0x348   : > { %2004 = vmatmul.mubr.bf16.gmra.mrb[196].mxu1 %v8012_v4  ;;  %v7984_v4 = vld [vmem:[#allocation6 + $0x474] ss:$8 sps:$4 sm:$0xff]  }
 0x349   : > { %3272 = vmatmul.mubr.bf16.gmra.mrb[208].mxu0 %v9207_v47  ;;  %2011 = vmatprep.mubr.bf16.mxu1 %v9057_v49 }
 0x34a   : > { %3279 = vmatprep.mubr.bf16.mxu0 %v9057_v49  ;;  %4197 = vmatprep.subr.bf16.mxu0 %v7984_v4  ;;  %v9317_v4 = vld [vmem:[#allocation2 + $0xf8] sm:$0xff] }
 0x34b   : > { %4198 = vmatpush1.bf16.msra.mxu0 %v7982_v57 }
 0x350   : > { %2012 = vmatmul.mubr.bf16.gmra.mrb[200].mxu1 %v8013_v59  ;;  %v9227_v59 = vld [vmem:[#allocation2 + $0x88] sm:$0xff] }
 0x351   : > { %3280 = vmatmul.mubr.bf16.gmra.mrb[40].mxu0 %v9212_v13  ;;  %2021 = vmatprep.mubr.bf16.mxu1 %v9057_v49 }
 0x352   : > { %3289 = vmatprep.mubr.bf16.mxu0 %v9057_v49 }
 0x358   : > { %2022 = vmatmul.mubr.bf16.gmra.mrb[204].mxu1 %v8014_v38  ;;  %v9233_v38 = vld [vmem:[#allocation2 + $0x90] sm:$0xff] }
 0x359   : > { %3290 = vmatmul.mubr.bf16.gmra.mrb[212].mxu0 %v9217_v17  ;;  %2029 = vmatprep.mubr.bf16.mxu1 %v9057_v49 }
 0x35a   : > { %3297 = vmatprep.mubr.bf16.mxu0 %v9057_v49 }
 0x360   : > { %2030 = vmatmul.mubr.bf16.gmra.mrb[208].mxu1 %v8015_v37  ;;  %v9239_v37 = vld [vmem:[#allocation2 + $0x98] sm:$0xff] }
 0x361   : > { %3298 = vmatmul.mubr.bf16.gmra.mrb[48].mxu0 %v9222_v12  ;;  %2039 = vmatprep.mubr.bf16.mxu1 %v9057_v49 }
 0x362   : > { %3307 = vmatprep.mubr.bf16.mxu0 %v9057_v49 }
 0x368   : > { %2040 = vmatmul.mubr.bf16.gmra.mrb[212].mxu1 %v8950_v25  ;;  %v9245_v25 = vld [vmem:[#allocation2 + $0xa0] sm:$0xff] }
 0x369   : > { %3308 = vmatmul.mubr.bf16.gmra.mrb[216].mxu0 %v9227_v59  ;;  %2047 = vmatprep.mubr.bf16.mxu1 %v9057_v49 }
 0x36a   : > { %3315 = vmatprep.mubr.bf16.mxu0 %v9057_v49 }
 0x370   : > { %2048 = vmatmul.mubr.bf16.gmra.mrb[216].mxu1 %v8962_v31  ;;  %v9251_v31 = vld [vmem:[#allocation2 + $0xa8] sm:$0xff] }
 0x371   : > { %3316 = vmatmul.mubr.bf16.gmra.mrb[56].mxu0 %v9233_v38  ;;  %2057 = vmatprep.mubr.bf16.mxu1 %v9057_v49 }
 0x372   : > { %3325 = vmatprep.mubr.bf16.mxu0 %v9057_v49 }
 0x378   : > { %2058 = vmatmul.mubr.bf16.gmra.mrb[220].mxu1 %v8976_v21  ;;  %v9257_v21 = vld [vmem:[#allocation2 + $0xb0] sm:$0xff] }
 0x379   : > { %3326 = vmatmul.mubr.bf16.gmra.mrb[220].mxu0 %v9239_v37  ;;  %2065 = vmatprep.mubr.bf16.mxu1 %v9057_v49 }
 0x37a   : > { %3333 = vmatprep.mubr.bf16.mxu0 %v9057_v49 }
 0x380   : > { %2066 = vmatmul.mubr.bf16.gmra.mrb[224].mxu1 %v8988_v34  ;;  %v9263_v34 = vld [vmem:[#allocation2 + $0xb8] sm:$0xff] }
 0x381   : > { %3334 = vmatmul.mubr.bf16.gmra.mrb[224].mxu0 %v9245_v25  ;;  %2075 = vmatprep.mubr.bf16.mxu1 %v9057_v49 }
 0x382   : > { %3343 = vmatprep.mubr.bf16.mxu0 %v9057_v49 }
 0x388   : > { %2076 = vmatmul.mubr.bf16.gmra.mrb[228].mxu1 %v9002_v35  ;;  %v9269_v35 = vld [vmem:[#allocation2 + $0xc0] sm:$0xff] }
 0x389   : > { %3344 = vmatmul.mubr.bf16.gmra.mrb[228].mxu0 %v9251_v31  ;;  %2083 = vmatprep.mubr.bf16.mxu1 %v9057_v49 }
 0x38a   : > { %3351 = vmatprep.mubr.bf16.mxu0 %v9057_v49 }
 0x390   : > { %2084 = vmatmul.mubr.bf16.gmra.mrb[232].mxu1 %v9014_v41  ;;  %v9275_v41 = vld [vmem:[#allocation2 + $0xc8] sm:$0xff] }
 0x391   : > { %3352 = vmatmul.mubr.bf16.gmra.mrb[232].mxu0 %v9257_v21  ;;  %2093 = vmatprep.mubr.bf16.mxu1 %v9057_v49 }
 0x392   : > { %3361 = vmatprep.mubr.bf16.mxu0 %v9057_v49 }
 0x398   : > { %2094 = vmatmul.mubr.bf16.gmra.mrb[236].mxu1 %v9028_v28  ;;  %v9281_v28 = vld [vmem:[#allocation2 + $0xd0] sm:$0xff] }
 0x399   : > { %3362 = vmatmul.mubr.bf16.gmra.mrb[236].mxu0 %v9263_v34  ;;  %2101 = vmatprep.mubr.bf16.mxu1 %v9057_v49 }
 0x39a   : > { %3369 = vmatprep.mubr.bf16.mxu0 %v9057_v49 }
 0x3a0   : > { %2102 = vmatmul.mubr.bf16.gmra.mrb[240].mxu1 %v9040_v48  ;;  %v9287_v48 = vld [vmem:[#allocation2 + $0xd8] sm:$0xff] }
 0x3a1   : > { %3370 = vmatmul.mubr.bf16.gmra.mrb[240].mxu0 %v9269_v35  ;;  %2111 = vmatprep.mubr.bf16.mxu1 %v9057_v49 }
 0x3a2   : > { %3379 = vmatprep.mubr.bf16.mxu0 %v9057_v49 }
 0x3a8   : > { %2112 = vmatmul.mubr.bf16.gmra.mrb[244].mxu1 %v9054_v23  ;;  %v9293_v23 = vld [vmem:[#allocation2 + $0xe0] sm:$0xff] }
 0x3a9   : > { %3380 = vmatmul.mubr.bf16.gmra.mrb[244].mxu0 %v9275_v41  ;;  %2119 = vmatprep.mubr.bf16.mxu1 %v9057_v49 }
 0x3aa   : > { %3387 = vmatprep.mubr.bf16.mxu0 %v9057_v49 }
 0x3b0   : > { %2120 = vmatmul.mubr.bf16.gmra.mrb[248].mxu1 %v9070_v42  ;;  %v9299_v42 = vld [vmem:[#allocation2 + $0xe8] sm:$0xff] }
 0x3b1   : > { %3388 = vmatmul.mubr.bf16.gmra.mrb[248].mxu0 %v9281_v28  ;;  %2129 = vmatprep.mubr.bf16.mxu1 %v9057_v49  ;;  %10876 = vst [vmem:[#allocation83_spill] sm:$0xff] %v9299_v42 }
 0x3b2   : > { %3397 = vmatprep.mubr.bf16.mxu0 %v9057_v49 }
 0x3b8   : > { %2130 = vmatmul.mubr.bf16.gmra.mrb[252].mxu1 %v9086_v53  ;;  %v9305_v53 = vld [vmem:[#allocation2 + $0xf0] sm:$0xff] }
 0x3b9   : > { %3398 = vmatmul.mubr.bf16.gmra.mrb[252].mxu0 %v9287_v48  ;;  %2137 = vmatprep.mubr.bf16.mxu1 %v9057_v49  ;;  %10877 = vst [vmem:[#allocation84_spill] sm:$0xff] %v9305_v53 }
 0x3ba   : > { %3405 = vmatprep.mubr.bf16.mxu0 %v9057_v49 }
 0x3c0   : > { %2138 = vmatmul.mubr.bf16.gmra.mrb[4].mxu1 %v9067_v40 }
 0x3c1   : > { %3406 = vmatmul.mubr.bf16.gmra.mrb[4].mxu0 %v9293_v23  ;;  %2147 = vmatprep.mubr.bf16.mxu1 %v9057_v49 }
 0x3c2   : > { %3415 = vmatprep.mubr.bf16.mxu0 %v9057_v49 }
 0x3c8   : > { %2148 = vmatmul.mubr.bf16.gmra.mrb[12].mxu1 %v9083_v56 }
 0x3c9   : > { %3416 = vmatmul.mubr.bf16.gmra.mrb[12].mxu0 %v9299_v42  ;;  %2155 = vmatprep.mubr.bf16.mxu1 %v9057_v49 }
 0x3ca   : > { %3423 = vmatprep.mubr.bf16.mxu0 %v9057_v49 }
 0x3d0   : > { %2156 = vmatmul.mubr.bf16.gmra.mrb[20].mxu1 %v9097_v26 }
 0x3d1   : > { %3424 = vmatmul.mubr.bf16.gmra.mrb[20].mxu0 %v9305_v53  ;;  %2165 = vmatprep.mubr.bf16.mxu1 %v9057_v49 }
 0x3d2   : > { %3433 = vmatprep.mubr.bf16.mxu0 %v9057_v49 }
 0x3d4   : > { %v3191_v40 = vpop.f32.mrb[0].mxu0 }
 0x3d5   : > { %v9312_v46 = vadd.f32 %v3191_v40, %v8639_v60  ;;  %v3193_v56 = vpop.f32.mrb[1].mxu0 }
 0x3d6   : > { %v9315_v36 = vadd.f32 %v3193_v56, %v8641_v61  ;;  %v3195_v57 = vpop.f32.mrb[2].mxu0 }
 0x3d7   : > { %v9320_v42 = vadd.f32 %v3195_v57, %v8643_v62  ;;  %v3197_v26 = vpop.f32.mrb[3].mxu0  ;;  %v9335_v57 = vld [vmem:[#allocation2 + $0x100] sm:$0xff] }
 0x3d8   : > { %v9323_v53 = vadd.f32 %v3197_v26, %v8647_v1  ;;  %2166 = vmatmul.mubr.bf16.gmra.mrb[28].mxu1 %v9111_v51 }
 0x3d9   : > { %3434 = vmatmul.mubr.bf16.gmra.mrb[28].mxu0 %v9317_v4  ;;  %2173 = vmatprep.mubr.bf16.mxu1 %v9057_v49 }
 0x3da   : > { %3441 = vmatprep.mubr.bf16.mxu0 %v9057_v49 }
 0x3dc   : > { %v3201_v60 = vpop.f32.mrb[192].mxu0 }
 0x3dd   : > { %v9330_v61 = vadd.f32 %v3201_v60, %v8653_v6  ;;  %v3203_v40 = vpop.f32.mrb[193].mxu0 }
 0x3de   : > { %v9333_v62 = vadd.f32 %v3203_v40, %v8657_v10  ;;  %v3205_v56 = vpop.f32.mrb[194].mxu0  ;;  %v9347_v40 = vld [vmem:[#allocation2 + $0x108] sm:$0xff] }
 0x3df   : > { %v3206_v1 = vpop.f32.mrb[195].mxu0 }
 0x3e0   : > { %2174 = vmatmul.mubr.bf16.gmra.mrb[36].mxu1 %v9123_v14 }
 0x3e1   : > { %3442 = vmatmul.mubr.bf16.gmra.mrb[36].mxu0 %v9335_v57  ;;  %2183 = vmatprep.mubr.bf16.mxu1 %v9057_v49 }
 0x3e2   : > { %3451 = vmatprep.mubr.bf16.mxu0 %v9057_v49 }
 0x3e4   : > { %v3209_v51 = vpop.f32.mrb[8].mxu0 }
 0x3e5   : > { %v9342_v6 = vadd.f32 %v3209_v51, %v8663_v15  ;;  %v3211_v26 = vpop.f32.mrb[9].mxu0 }
 0x3e6   : > { %v9345_v10 = vadd.f32 %v3211_v26, %v8665_v16  ;;  %v3213_v60 = vpop.f32.mrb[10].mxu0 }
 0x3e7   : > { %v9350_v56 = vadd.f32 %v3213_v60, %v8667_v18  ;;  %v3215_v14 = vpop.f32.mrb[11].mxu0 }
 0x3e8   : > { %v9353_v1 = vadd.f32 %v3215_v14, %v8671_v22  ;;  %2184 = vmatmul.mubr.bf16.gmra.mrb[44].mxu1 %v9129_v24 }
 0x3e9   : > { %3452 = vmatmul.mubr.bf16.gmra.mrb[44].mxu0 %v9347_v40  ;;  %2191 = vmatprep.mubr.bf16.mxu1 %v9057_v49 }
 0x3ea   : > { %3459 = vmatprep.mubr.bf16.mxu0 %v9057_v49 }
 0x3ec   : > { %v3219_v15 = vpop.f32.mrb[196].mxu0 }
 0x3ed   : > { %v9360_v16 = vadd.f32 %v3219_v15, %v8677_v32  ;;  %v3221_v51 = vpop.f32.mrb[197].mxu0 }
 0x3ee   : > { %v9363_v18 = vadd.f32 %v3221_v51, %v8681_v39  ;;  %v3223_v26 = vpop.f32.mrb[198].mxu0 }
 0x3ef   : > { %v3224_v60 = vpop.f32.mrb[199].mxu0 }
 0x3f0   : > { %2192 = vmatmul.mubr.bf16.gmra.mrb[52].mxu1 %v9144_v30  ;;  %v10880_v30 = vld [vmem:[#allocation12_spill] sm:$0xff]  ;;  %v8016_v60 = vld [vmem:[#allocation2 + $0xf8] sm:$0xff] }
 0x3f1   : > { %3460 = vmatmul.mubr.bf16.gmra.mrb[52].mxu0 %v9057_v49  ;;  %2201 = vmatprep.mubr.bf16.mxu1 %v9057_v49 }
 0x3f2   : > { %3469 = vmatprep.mubr.bf16.mxu0 %v9057_v49 }
 0x3f4   : > { %v3227_v22 = vpop.f32.mrb[16].mxu0 }
 0x3f5   : > { %v9370_v24 = vadd.f32 %v3227_v22, %v8687_v43  ;;  %v3229_v32 = vpop.f32.mrb[17].mxu0  ;;  %v10882_v22 = vld [vmem:[#allocation13_spill] sm:$0xff] }
 0x3f6   : > { %v9373_v14 = vadd.f32 %v3229_v32, %v8689_v44  ;;  %v3231_v39 = vpop.f32.mrb[18].mxu0 }
 0x3f7   : > { %v9376_v15 = vadd.f32 %v3231_v39, %v8691_v45  ;;  %v3233_v51 = vpop.f32.mrb[19].mxu0 }
 0x3f8   : > { %10878 = vst [vmem:[#allocation85_spill] sm:$0xff] %v9373_v14  ;;  %v9379_v26 = vadd.f32 %v3233_v51, %v10880_v30  ;;  %2202 = vmatmul.mubr.bf16.gmra.mrb[60].mxu1 %v8016_v60  ;;  %v10884_v14 = vld [vmem:[#allocation14_spill] sm:$0xff]  ;;  %v10886_v30 = vld [vmem:[#allocation15_spill] sm:$0xff] }
 0x3f9   : > { %10879 = vst [vmem:[#allocation86_spill] sm:$0xff] %v9376_v15  ;;  %3470 = vmatmul.mubr.bf16.gmra.mrb[60].mxu0 %v9057_v49  ;;  %3702 = vmatprep.mubr.bf16.mxu1 %v9057_v49 }
 0x3fa   : > { %10881 = vst [vmem:[#allocation12_spill] sm:$0xff] %v9379_v26  ;;  %4215 = vmatprep.mubr.bf16.mxu0 %v9057_v49 }
 0x3fc   : > { %v3237_v43 = vpop.f32.mrb[200].mxu0 }
 0x3fd   : > { %v9385_v44 = vadd.f32 %v3237_v43, %v10882_v22  ;;  %v3239_v32 = vpop.f32.mrb[201].mxu0  ;;  %v10887_v22 = vld [vmem:[#allocation16_spill] sm:$0xff] }
 0x3fe   : > { %v9388_v45 = vadd.f32 %v3239_v32, %v10884_v14  ;;  %v3241_v39 = vpop.f32.mrb[202].mxu0  ;;  %v10888_v32 = vld [vmem:[#allocation17_spill] sm:$0xff] }
 0x3ff   : > { %10883 = vst [vmem:[#allocation13_spill] sm:$0xff] %v9385_v44  ;;  %v3242_v15 = vpop.f32.mrb[203].mxu0 }
 0x400   : > { %10885 = vst [vmem:[#allocation14_spill] sm:$0xff] %v9388_v45  ;;  %3703 = vmatmul.mubr.bf16.vlgmr.msra.gmra.mrb[160].mxu1 %v9153_v9  ;;  %v10890_v45 = vld [vmem:[#allocation18_spill] sm:$0xff] }
 0x401   : > { %4216 = vmatmul.mubr.bf16.vlgmr.msra.gmra.mrb[64].mxu0 %v9153_v9  ;;  %3712 = vmatprep.mubr.bf16.mxu1 %v9057_v49 }
 0x402   : > { %4225 = vmatprep.mubr.bf16.mxu0 %v9057_v49 }
 0x404   : > { %v3245_v51 = vpop.f32.mrb[24].mxu0 }
 0x405   : > { %v9395_v60 = vadd.f32 %v3245_v51, %v10886_v30  ;;  %v3247_v43 = vpop.f32.mrb[25].mxu0  ;;  %v10892_v51 = vld [vmem:[#allocation19_spill] sm:$0xff] }
 0x406   : > { %v9398_v26 = vadd.f32 %v3247_v43, %v10887_v22  ;;  %v3249_v14 = vpop.f32.mrb[26].mxu0  ;;  %v10894_v22 = vld [vmem:[#allocation20_spill] sm:$0xff] }
 0x407   : > { %v9401_v39 = vadd.f32 %v3249_v14, %v10888_v32  ;;  %v3251_v15 = vpop.f32.mrb[27].mxu0 }
 0x408   : > { %v9404_v44 = vadd.f32 %v3251_v15, %v10890_v45  ;;  %3713 = vmatmul.mubr.bf16.gmra.mrb[164].mxu1 %v9159_v7  ;;  %v10896_v45 = vld [vmem:[#allocation21_spill] sm:$0xff] }
 0x409   : > { %10889 = vst [vmem:[#allocation15_spill] sm:$0xff] %v9401_v39  ;;  %4226 = vmatmul.mubr.bf16.gmra.mrb[68].mxu0 %v9159_v7  ;;  %3720 = vmatprep.mubr.bf16.mxu1 %v9057_v49 }
 0x40a   : > { %10891 = vst [vmem:[#allocation16_spill] sm:$0xff] %v9404_v44  ;;  %4233 = vmatprep.mubr.bf16.mxu0 %v9057_v49 }
 0x40c   : > { %v3255_v9 = vpop.f32.mrb[204].mxu0 }
 0x40d   : > { %v9411_v30 = vadd.f32 %v3255_v9, %v10892_v51  ;;  %v3257_v43 = vpop.f32.mrb[205].mxu0  ;;  %v10897_v51 = vld [vmem:[#allocation22_spill] sm:$0xff] }
 0x40e   : > { %v9414_v14 = vadd.f32 %v3257_v43, %v10894_v22  ;;  %v3259_v32 = vpop.f32.mrb[206].mxu0  ;;  %v10898_v22 = vld [vmem:[#allocation23_spill] sm:$0xff] }
 0x40f   : > { %10893 = vst [vmem:[#allocation17_spill] sm:$0xff] %v9411_v30  ;;  %v3260_v39 = vpop.f32.mrb[207].mxu0 }
 0x410   : > { %10895 = vst [vmem:[#allocation18_spill] sm:$0xff] %v9414_v14  ;;  %3721 = vmatmul.mubr.bf16.gmra.mrb[168].mxu1 %v9165_v20  ;;  %v10900_v14 = vld [vmem:[#allocation24_spill] sm:$0xff] }
 0x411   : > { %4234 = vmatmul.mubr.bf16.gmra.mrb[72].mxu0 %v9165_v20  ;;  %3730 = vmatprep.mubr.bf16.mxu1 %v9057_v49 }
 0x412   : > { %4243 = vmatprep.mubr.bf16.mxu0 %v9057_v49 }
 0x414   : > { %v3263_v7 = vpop.f32.mrb[32].mxu0 }
 0x415   : > { %v9421_v15 = vadd.f32 %v3263_v7, %v10896_v45  ;;  %v3265_v9 = vpop.f32.mrb[33].mxu0  ;;  %v10902_v7 = vld [vmem:[#allocation25_spill] sm:$0xff] }
 0x416   : > { %v9424_v44 = vadd.f32 %v3265_v9, %v10897_v51  ;;  %v3267_v43 = vpop.f32.mrb[34].mxu0  ;;  %v10904_v51 = vld [vmem:[#allocation26_spill] sm:$0xff] }
 0x417   : > { %v9427_v32 = vadd.f32 %v3267_v43, %v10898_v22  ;;  %v3269_v39 = vpop.f32.mrb[35].mxu0 }
 0x418   : > { %v9430_v30 = vadd.f32 %v3269_v39, %v10900_v14  ;;  %3731 = vmatmul.mubr.bf16.gmra.mrb[172].mxu1 %v9171_v27  ;;  %v10906_v14 = vld [vmem:[#allocation27_spill] sm:$0xff] }
 0x419   : > { %10899 = vst [vmem:[#allocation19_spill] sm:$0xff] %v9427_v32  ;;  %4244 = vmatmul.mubr.bf16.gmra.mrb[76].mxu0 %v9171_v27  ;;  %3738 = vmatprep.mubr.bf16.mxu1 %v9057_v49 }
 0x41a   : > { %10901 = vst [vmem:[#allocation20_spill] sm:$0xff] %v9430_v30  ;;  %4251 = vmatprep.mubr.bf16.mxu0 %v9057_v49 }
 0x41c   : > { %v3273_v20 = vpop.f32.mrb[208].mxu0 }
 0x41d   : > { %v9437_v45 = vadd.f32 %v3273_v20, %v10902_v7  ;;  %v3275_v9 = vpop.f32.mrb[209].mxu0  ;;  %v10907_v7 = vld [vmem:[#allocation28_spill] sm:$0xff] }
 0x41e   : > { %v9440_v43 = vadd.f32 %v3275_v9, %v10904_v51  ;;  %v3277_v22 = vpop.f32.mrb[210].mxu0  ;;  %v10908_v51 = vld [vmem:[#allocation29_spill] sm:$0xff] }
 0x41f   : > { %10903 = vst [vmem:[#allocation21_spill] sm:$0xff] %v9437_v45  ;;  %v3278_v32 = vpop.f32.mrb[211].mxu0 }
 0x420   : > { %10905 = vst [vmem:[#allocation22_spill] sm:$0xff] %v9440_v43  ;;  %3739 = vmatmul.mubr.bf16.gmra.mrb[176].mxu1 %v9177_v5  ;;  %v10910_v43 = vld [vmem:[#allocation30_spill] sm:$0xff] }
 0x421   : > { %4252 = vmatmul.mubr.bf16.gmra.mrb[80].mxu0 %v9177_v5  ;;  %3748 = vmatprep.mubr.bf16.mxu1 %v9057_v49 }
 0x422   : > { %4261 = vmatprep.mubr.bf16.mxu0 %v9057_v49 }
 0x424   : > { %v3281_v27 = vpop.f32.mrb[40].mxu0 }
 0x425   : > { %v9447_v39 = vadd.f32 %v3281_v27, %v10906_v14  ;;  %v3283_v20 = vpop.f32.mrb[41].mxu0  ;;  %v10912_v27 = vld [vmem:[#allocation31_spill] sm:$0xff] }
 0x426   : > { %v9450_v30 = vadd.f32 %v3283_v20, %v10907_v7  ;;  %v3285_v9 = vpop.f32.mrb[42].mxu0  ;;  %v10914_v7 = vld [vmem:[#allocation32_spill] sm:$0xff] }
 0x427   : > { %v9453_v22 = vadd.f32 %v3285_v9, %v10908_v51  ;;  %v3287_v32 = vpop.f32.mrb[43].mxu0 }
 0x428   : > { %v9456_v45 = vadd.f32 %v3287_v32, %v10910_v43  ;;  %3749 = vmatmul.mubr.bf16.gmra.mrb[180].mxu1 %v9183_v33  ;;  %v10916_v43 = vld [vmem:[#allocation33_spill] sm:$0xff] }
 0x429   : > { %10909 = vst [vmem:[#allocation23_spill] sm:$0xff] %v9453_v22  ;;  %4262 = vmatmul.mubr.bf16.gmra.mrb[84].mxu0 %v9183_v33  ;;  %3756 = vmatprep.mubr.bf16.mxu1 %v9057_v49 }
 0x42a   : > { %10911 = vst [vmem:[#allocation24_spill] sm:$0xff] %v9456_v45  ;;  %4269 = vmatprep.mubr.bf16.mxu0 %v9057_v49 }
 0x42c   : > { %v3291_v5 = vpop.f32.mrb[212].mxu0 }
 0x42d   : > { %v9463_v14 = vadd.f32 %v3291_v5, %v10912_v27  ;;  %v3293_v20 = vpop.f32.mrb[213].mxu0  ;;  %v10917_v27 = vld [vmem:[#allocation34_spill] sm:$0xff] }
 0x42e   : > { %v9466_v9 = vadd.f32 %v3293_v20, %v10914_v7  ;;  %v3295_v51 = vpop.f32.mrb[214].mxu0  ;;  %v10918_v7 = vld [vmem:[#allocation35_spill] sm:$0xff] }
 0x42f   : > { %10913 = vst [vmem:[#allocation25_spill] sm:$0xff] %v9463_v14  ;;  %v3296_v22 = vpop.f32.mrb[215].mxu0 }
 0x430   : > { %10915 = vst [vmem:[#allocation26_spill] sm:$0xff] %v9466_v9  ;;  %3757 = vmatmul.mubr.bf16.gmra.mrb[184].mxu1 %v9189_v2  ;;  %v10920_v9 = vld [vmem:[#allocation36_spill] sm:$0xff] }
 0x431   : > { %4270 = vmatmul.mubr.bf16.gmra.mrb[88].mxu0 %v9189_v2  ;;  %3766 = vmatprep.mubr.bf16.mxu1 %v9057_v49 }
 0x432   : > { %4279 = vmatprep.mubr.bf16.mxu0 %v9057_v49 }
 0x434   : > { %v3299_v33 = vpop.f32.mrb[48].mxu0 }
 0x435   : > { %v9473_v32 = vadd.f32 %v3299_v33, %v10916_v43  ;;  %v3301_v5 = vpop.f32.mrb[49].mxu0  ;;  %v10922_v33 = vld [vmem:[#allocation37_spill] sm:$0xff] }
 0x436   : > { %v9476_v45 = vadd.f32 %v3301_v5, %v10917_v27  ;;  %v3303_v20 = vpop.f32.mrb[50].mxu0  ;;  %v10924_v27 = vld [vmem:[#allocation38_spill] sm:$0xff] }
 0x437   : > { %v9479_v51 = vadd.f32 %v3303_v20, %v10918_v7  ;;  %v3305_v22 = vpop.f32.mrb[51].mxu0 }
 0x438   : > { %v9482_v14 = vadd.f32 %v3305_v22, %v10920_v9  ;;  %3767 = vmatmul.mubr.bf16.gmra.mrb[188].mxu1 %v9195_v0  ;;  %v10926_v9 = vld [vmem:[#allocation39_spill] sm:$0xff] }
 0x439   : > { %10919 = vst [vmem:[#allocation27_spill] sm:$0xff] %v9479_v51  ;;  %4280 = vmatmul.mubr.bf16.gmra.mrb[92].mxu0 %v9195_v0  ;;  %3774 = vmatprep.mubr.bf16.mxu1 %v9057_v49 }
 0x43a   : > { %10921 = vst [vmem:[#allocation28_spill] sm:$0xff] %v9482_v14  ;;  %4287 = vmatprep.mubr.bf16.mxu0 %v9057_v49 }
 0x43c   : > { %v3309_v2 = vpop.f32.mrb[216].mxu0 }
 0x43d   : > { %v9489_v43 = vadd.f32 %v3309_v2, %v10922_v33  ;;  %v3311_v5 = vpop.f32.mrb[217].mxu0  ;;  %v10927_v33 = vld [vmem:[#allocation40_spill] sm:$0xff] }
 0x43e   : > { %v9492_v20 = vadd.f32 %v3311_v5, %v10924_v27  ;;  %v3313_v7 = vpop.f32.mrb[218].mxu0  ;;  %v10928_v27 = vld [vmem:[#allocation41_spill] sm:$0xff] }
 0x43f   : > { %10923 = vst [vmem:[#allocation29_spill] sm:$0xff] %v9489_v43  ;;  %v3314_v51 = vpop.f32.mrb[219].mxu0 }
 0x440   : > { %10925 = vst [vmem:[#allocation30_spill] sm:$0xff] %v9492_v20  ;;  %3775 = vmatmul.mubr.bf16.gmra.mrb[192].mxu1 %v9201_v52  ;;  %v10930_v20 = vld [vmem:[#allocation42_spill] sm:$0xff] }
 0x441   : > { %4288 = vmatmul.mubr.bf16.gmra.mrb[96].mxu0 %v9201_v52  ;;  %3784 = vmatprep.mubr.bf16.mxu1 %v9057_v49 }
 0x442   : > { %4297 = vmatprep.mubr.bf16.mxu0 %v9057_v49 }
 0x444   : > { %v3317_v0 = vpop.f32.mrb[56].mxu0 }
 0x445   : > { %v9499_v22 = vadd.f32 %v3317_v0, %v10926_v9  ;;  %v3319_v2 = vpop.f32.mrb[57].mxu0  ;;  %v10932_v0 = vld [vmem:[#allocation43_spill] sm:$0xff] }
 0x446   : > { %v9502_v14 = vadd.f32 %v3319_v2, %v10927_v33  ;;  %v3321_v5 = vpop.f32.mrb[58].mxu0  ;;  %v10934_v33 = vld [vmem:[#allocation44_spill] sm:$0xff] }
 0x447   : > { %v9505_v7 = vadd.f32 %v3321_v5, %v10928_v27  ;;  %v3323_v51 = vpop.f32.mrb[59].mxu0 }
 0x448   : > { %v9508_v43 = vadd.f32 %v3323_v51, %v10930_v20  ;;  %3785 = vmatmul.mubr.bf16.gmra.mrb[196].mxu1 %v9207_v47  ;;  %v10936_v20 = vld [vmem:[#allocation45_spill] sm:$0xff] }
 0x449   : > { %10929 = vst [vmem:[#allocation31_spill] sm:$0xff] %v9505_v7  ;;  %4298 = vmatmul.mubr.bf16.gmra.mrb[100].mxu0 %v9207_v47  ;;  %3792 = vmatprep.mubr.bf16.mxu1 %v9057_v49 }
 0x44a   : > { %10931 = vst [vmem:[#allocation32_spill] sm:$0xff] %v9508_v43  ;;  %4305 = vmatprep.mubr.bf16.mxu0 %v9057_v49 }
 0x44c   : > { %v3327_v52 = vpop.f32.mrb[220].mxu0 }
 0x44d   : > { %v9515_v9 = vadd.f32 %v3327_v52, %v10932_v0  ;;  %v3329_v2 = vpop.f32.mrb[221].mxu0  ;;  %v10937_v0 = vld [vmem:[#allocation46_spill] sm:$0xff] }
 0x44e   : > { %v9518_v5 = vadd.f32 %v3329_v2, %v10934_v33  ;;  %v3331_v27 = vpop.f32.mrb[222].mxu0  ;;  %v10938_v33 = vld [vmem:[#allocation47_spill] sm:$0xff] }
 0x44f   : > { %10933 = vst [vmem:[#allocation33_spill] sm:$0xff] %v9515_v9  ;;  %v3332_v7 = vpop.f32.mrb[223].mxu0 }
 0x450   : > { %10935 = vst [vmem:[#allocation34_spill] sm:$0xff] %v9518_v5  ;;  %3793 = vmatmul.mubr.bf16.gmra.mrb[200].mxu1 %v9212_v13  ;;  %v10939_v5 = vld [vmem:[#allocation48_spill] sm:$0xff] }
 0x451   : > { %4306 = vmatmul.mubr.bf16.gmra.mrb[104].mxu0 %v9212_v13  ;;  %3802 = vmatprep.mubr.bf16.mxu1 %v9057_v49 }
 0x452   : > { %4315 = vmatprep.mubr.bf16.mxu0 %v9057_v49 }
 0x454   : > { %v3335_v47 = vpop.f32.mrb[224].mxu0 }
 0x455   : > { %v9525_v51 = vadd.f32 %v3335_v47, %v10936_v20  ;;  %v3337_v52 = vpop.f32.mrb[225].mxu0 }
 0x456   : > { %v9528_v43 = vadd.f32 %v3337_v52, %v10937_v0  ;;  %v3339_v2 = vpop.f32.mrb[226].mxu0 }
 0x457   : > { %v9531_v27 = vadd.f32 %v3339_v2, %v10938_v33  ;;  %v3341_v7 = vpop.f32.mrb[227].mxu0 }
 0x458   : > { %v9534_v9 = vadd.f32 %v3341_v7, %v10939_v5  ;;  %3803 = vmatmul.mubr.bf16.gmra.mrb[204].mxu1 %v9217_v17 }
 0x459   : > { %4316 = vmatmul.mubr.bf16.gmra.mrb[108].mxu0 %v9217_v17  ;;  %3810 = vmatprep.mubr.bf16.mxu1 %v9057_v49 }
 0x45a   : > { %4323 = vmatprep.mubr.bf16.mxu0 %v9057_v49 }
 0x45c   : > { %v3345_v13 = vpop.f32.mrb[228].mxu0 }
 0x45d   : > { %v9541_v47 = vadd.f32 %v3345_v13, %v8932_v50  ;;  %v3347_v20 = vpop.f32.mrb[229].mxu0 }
 0x45e   : > { %v9544_v52 = vadd.f32 %v3347_v20, %v8935_v55  ;;  %v3349_v0 = vpop.f32.mrb[230].mxu0 }
 0x45f   : > { %v3350_v2 = vpop.f32.mrb[231].mxu0  ;;  %v10940_v0 = vld [vmem:[#allocation49_spill] sm:$0xff] }
 0x460   : > { %3811 = vmatmul.mubr.bf16.gmra.mrb[208].mxu1 %v9222_v12 }
 0x461   : > { %4324 = vmatmul.mubr.bf16.gmra.mrb[112].mxu0 %v9222_v12  ;;  %3820 = vmatprep.mubr.bf16.mxu1 %v9057_v49 }
 0x462   : > { %4333 = vmatprep.mubr.bf16.mxu0 %v9057_v49 }
 0x464   : > { %v3353_v17 = vpop.f32.mrb[232].mxu0 }
 0x465   : > { %v9551_v5 = vadd.f32 %v3353_v17, %v8941_v54  ;;  %v3355_v50 = vpop.f32.mrb[233].mxu0 }
 0x466   : > { %v9554_v33 = vadd.f32 %v3355_v50, %v8943_v11  ;;  %v3357_v55 = vpop.f32.mrb[234].mxu0 }
 0x467   : > { %v9557_v7 = vadd.f32 %v3357_v55, %v8945_v19  ;;  %v3359_v13 = vpop.f32.mrb[235].mxu0  ;;  %v10943_v55 = vld [vmem:[#allocation51_spill] sm:$0xff] }
 0x468   : > { %v9560_v20 = vadd.f32 %v3359_v13, %v8947_v29  ;;  %3821 = vmatmul.mubr.bf16.gmra.mrb[212].mxu1 %v9227_v59 }
 0x469   : > { %4334 = vmatmul.mubr.bf16.gmra.mrb[116].mxu0 %v9227_v59  ;;  %3828 = vmatprep.mubr.bf16.mxu1 %v9057_v49  ;;  %v10942_v59 = vld [vmem:[#allocation50_spill] sm:$0xff] }
 0x46a   : > { %4341 = vmatprep.mubr.bf16.mxu0 %v9057_v49 }
 0x46c   : > { %v3363_v54 = vpop.f32.mrb[236].mxu0 }
 0x46d   : > { %v9567_v11 = vadd.f32 %v3363_v54, %v8956_v8  ;;  %v3365_v12 = vpop.f32.mrb[237].mxu0 }
 0x46e   : > { %v9570_v19 = vadd.f32 %v3365_v12, %v10940_v0  ;;  %v3367_v2 = vpop.f32.mrb[238].mxu0  ;;  %v10945_v12 = vld [vmem:[#allocation52_spill] sm:$0xff] }
 0x46f   : > { %v3368_v17 = vpop.f32.mrb[239].mxu0 }
 0x470   : > { %10941 = vst [vmem:[#allocation35_spill] sm:$0xff] %v9570_v19  ;;  %3829 = vmatmul.mubr.bf16.gmra.mrb[216].mxu1 %v9233_v38  ;;  %v10947_v17 = vld [vmem:[#allocation53_spill] sm:$0xff] }
 0x471   : > { %4342 = vmatmul.mubr.bf16.gmra.mrb[120].mxu0 %v9233_v38  ;;  %3838 = vmatprep.mubr.bf16.mxu1 %v9057_v49 }
 0x472   : > { %4351 = vmatprep.mubr.bf16.mxu0 %v9057_v49 }
 0x474   : > { %v3371_v29 = vpop.f32.mrb[240].mxu0 }
 0x475   : > { %v9577_v50 = vadd.f32 %v3371_v29, %v10942_v59  ;;  %v3373_v8 = vpop.f32.mrb[241].mxu0 }
 0x476   : > { %v9580_v13 = vadd.f32 %v3373_v8, %v10943_v55  ;;  %v3375_v54 = vpop.f32.mrb[242].mxu0 }
 0x477   : > { %v9583_v0 = vadd.f32 %v3375_v54, %v10945_v12  ;;  %v3377_v2 = vpop.f32.mrb[243].mxu0 }
 0x478   : > { %10944 = vst [vmem:[#allocation36_spill] sm:$0xff] %v9580_v13  ;;  %v9586_v19 = vadd.f32 %v3377_v2, %v10947_v17  ;;  %3839 = vmatmul.mubr.bf16.gmra.mrb[220].mxu1 %v9239_v37  ;;  %v10952_v2 = vld [vmem:[#allocation54_spill] sm:$0xff] }
 0x479   : > { %10946 = vst [vmem:[#allocation37_spill] sm:$0xff] %v9583_v0  ;;  %4352 = vmatmul.mubr.bf16.gmra.mrb[124].mxu0 %v9239_v37  ;;  %3846 = vmatprep.mubr.bf16.mxu1 %v9057_v49 }
 0x47a   : > { %10948 = vst [vmem:[#allocation38_spill] sm:$0xff] %v9586_v19  ;;  %4359 = vmatprep.mubr.bf16.mxu0 %v9057_v49 }
 0x47c   : > { %v3381_v38 = vpop.f32.mrb[244].mxu0 }
 0x47d   : > { %v9593_v29 = vadd.f32 %v3381_v38, %v8982_v3  ;;  %v3383_v59 = vpop.f32.mrb[245].mxu0  ;;  %v10954_v38 = vld [vmem:[#allocation55_spill] sm:$0xff] }
 0x47e   : > { %v9596_v8 = vadd.f32 %v3383_v59, %v8985_v58  ;;  %v3385_v55 = vpop.f32.mrb[246].mxu0 }
 0x47f   : > { %10949 = vst [vmem:[#allocation39_spill] sm:$0xff] %v9593_v29  ;;  %v3386_v54 = vpop.f32.mrb[247].mxu0 }
 0x480   : > { %10950 = vst [vmem:[#allocation40_spill] sm:$0xff] %v9596_v8  ;;  %3847 = vmatmul.mubr.bf16.gmra.mrb[224].mxu1 %v9245_v25  ;;  %v10956_v54 = vld [vmem:[#allocation56_spill] sm:$0xff] }
 0x481   : > { %4360 = vmatmul.mubr.bf16.gmra.mrb[128].mxu0 %v9245_v25  ;;  %3856 = vmatprep.mubr.bf16.mxu1 %v9057_v49  ;;  %v10958_v25 = vld [vmem:[#allocation57_spill] sm:$0xff] }
 0x482   : > { %4369 = vmatprep.mubr.bf16.mxu0 %v9057_v49  ;;  %v9616_v49 = vld [vmem:[#allocation2] sm:$0xff] }
 0x484   : > { %v3389_v37 = vpop.f32.mrb[248].mxu0 }
 0x485   : > { %v9603_v12 = vadd.f32 %v3389_v37, %v8993_v63  ;;  %v3391_v3 = vpop.f32.mrb[249].mxu0 }
 0x486   : > { %v9606_v17 = vadd.f32 %v3391_v3, %v10952_v2  ;;  %v3393_v58 = vpop.f32.mrb[250].mxu0  ;;  %v10960_v2 = vld [vmem:[#allocation58_spill] sm:$0xff] }
 0x487   : > { %10951 = vst [vmem:[#allocation41_spill] sm:$0xff] %v9603_v12  ;;  %v9609_v59 = vadd.f32 %v3393_v58, %v10954_v38  ;;  %v3395_v55 = vpop.f32.mrb[251].mxu0 }
 0x488   : > { %10953 = vst [vmem:[#allocation42_spill] sm:$0xff] %v9606_v17  ;;  %v9612_v8 = vadd.f32 %v3395_v55, %v10956_v54  ;;  %3857 = vmatmul.mubr.bf16.gmra.mrb[228].mxu1 %v9251_v31  ;;  %v10962_v54 = vld [vmem:[#allocation59_spill] sm:$0xff] }
 0x489   : > { %10955 = vst [vmem:[#allocation43_spill] sm:$0xff] %v9609_v59  ;;  %4370 = vmatmul.mubr.bf16.gmra.mrb[132].mxu0 %v9251_v31  ;;  %3864 = vmatprep.mubr.bf16.mxu1 %v9616_v49 }
 0x48a   : > { %10957 = vst [vmem:[#allocation44_spill] sm:$0xff] %v9612_v8  ;;  %4377 = vmatprep.mubr.bf16.mxu0 %v9616_v49 }
 0x48c   : > { %v3399_v63 = vpop.f32.mrb[252].mxu0 }
 0x48d   : > { %v9621_v37 = vadd.f32 %v3399_v63, %v10958_v25  ;;  %v3401_v3 = vpop.f32.mrb[253].mxu0  ;;  %v10964_v25 = vld [vmem:[#allocation60_spill] sm:$0xff] }
 0x48e   : > { %v9624_v58 = vadd.f32 %v3401_v3, %v10960_v2  ;;  %v3403_v38 = vpop.f32.mrb[254].mxu0  ;;  %v10966_v2 = vld [vmem:[#allocation61_spill] sm:$0xff] }
 0x48f   : > { %10959 = vst [vmem:[#allocation45_spill] sm:$0xff] %v9621_v37  ;;  %v3404_v55 = vpop.f32.mrb[255].mxu0 }
 0x490   : > { %10961 = vst [vmem:[#allocation46_spill] sm:$0xff] %v9624_v58  ;;  %3865 = vmatmul.mubr.bf16.gmra.mrb[232].mxu1 %v9257_v21  ;;  %v10968_v58 = vld [vmem:[#allocation62_spill] sm:$0xff] }
 0x491   : > { %4378 = vmatmul.mubr.bf16.gmra.mrb[136].mxu0 %v9257_v21  ;;  %3874 = vmatprep.mubr.bf16.mxu1 %v9616_v49 }
 0x492   : > { %4387 = vmatprep.mubr.bf16.mxu0 %v9616_v49 }
 0x494   : > { %v3407_v31 = vpop.f32.mrb[4].mxu0 }
 0x495   : > { %v9631_v8 = vadd.f32 %v3407_v31, %v10962_v54  ;;  %v3409_v63 = vpop.f32.mrb[5].mxu0  ;;  %v10970_v31 = vld [vmem:[#allocation63_spill] sm:$0xff] }
 0x496   : > { %v9634_v59 = vadd.f32 %v3409_v63, %v10964_v25  ;;  %v3411_v3 = vpop.f32.mrb[6].mxu0  ;;  %v10972_v25 = vld [vmem:[#allocation64_spill] sm:$0xff] }
 0x497   : > { %10963 = vst [vmem:[#allocation47_spill] sm:$0xff] %v9631_v8  ;;  %v9637_v38 = vadd.f32 %v3411_v3, %v10966_v2  ;;  %v3413_v55 = vpop.f32.mrb[7].mxu0 }
 0x498   : > { %10965 = vst [vmem:[#allocation48_spill] sm:$0xff] %v9634_v59  ;;  %v9640_v17 = vadd.f32 %v3413_v55, %v10968_v58  ;;  %3875 = vmatmul.mubr.bf16.gmra.mrb[236].mxu1 %v9263_v34  ;;  %v10974_v58 = vld [vmem:[#allocation65_spill] sm:$0xff] }
 0x499   : > { %10967 = vst [vmem:[#allocation49_spill] sm:$0xff] %v9637_v38  ;;  %4388 = vmatmul.mubr.bf16.gmra.mrb[140].mxu0 %v9263_v34  ;;  %3882 = vmatprep.mubr.bf16.mxu1 %v9616_v49 }
 0x49a   : > { %10969 = vst [vmem:[#allocation50_spill] sm:$0xff] %v9640_v17  ;;  %4395 = vmatprep.mubr.bf16.mxu0 %v9616_v49 }
 0x49c   : > { %v3417_v21 = vpop.f32.mrb[12].mxu0 }
 0x49d   : > { %v9647_v54 = vadd.f32 %v3417_v21, %v10970_v31  ;;  %v3419_v63 = vpop.f32.mrb[13].mxu0  ;;  %v10976_v31 = vld [vmem:[#allocation66_spill] sm:$0xff] }
 0x49e   : > { %v9650_v3 = vadd.f32 %v3419_v63, %v10972_v25  ;;  %v3421_v2 = vpop.f32.mrb[14].mxu0  ;;  %v10978_v25 = vld [vmem:[#allocation67_spill] sm:$0xff] }
 0x49f   : > { %10971 = vst [vmem:[#allocation51_spill] sm:$0xff] %v9647_v54  ;;  %v3422_v38 = vpop.f32.mrb[15].mxu0 }
 0x4a0   : > { %10973 = vst [vmem:[#allocation52_spill] sm:$0xff] %v9650_v3  ;;  %3883 = vmatmul.mubr.bf16.gmra.mrb[240].mxu1 %v9269_v35  ;;  %v10980_v3 = vld [vmem:[#allocation68_spill] sm:$0xff] }
 0x4a1   : > { %4396 = vmatmul.mubr.bf16.gmra.mrb[144].mxu0 %v9269_v35  ;;  %3892 = vmatprep.mubr.bf16.mxu1 %v9616_v49 }
 0x4a2   : > { %4405 = vmatprep.mubr.bf16.mxu0 %v9616_v49 }
 0x4a4   : > { %v3425_v34 = vpop.f32.mrb[20].mxu0 }
 0x4a5   : > { %v9657_v55 = vadd.f32 %v3425_v34, %v10974_v58  ;;  %v3427_v21 = vpop.f32.mrb[21].mxu0  ;;  %v10982_v34 = vld [vmem:[#allocation69_spill] sm:$0xff] }
 0x4a6   : > { %v9660_v17 = vadd.f32 %v3427_v21, %v10976_v31  ;;  %v3429_v63 = vpop.f32.mrb[22].mxu0  ;;  %v10984_v31 = vld [vmem:[#allocation70_spill] sm:$0xff] }
 0x4a7   : > { %10975 = vst [vmem:[#allocation53_spill] sm:$0xff] %v9657_v55  ;;  %v9663_v2 = vadd.f32 %v3429_v63, %v10978_v25  ;;  %v3431_v38 = vpop.f32.mrb[23].mxu0 }
 0x4a8   : > { %10977 = vst [vmem:[#allocation54_spill] sm:$0xff] %v9660_v17  ;;  %v9666_v54 = vadd.f32 %v3431_v38, %v10980_v3  ;;  %3893 = vmatmul.mubr.bf16.gmra.mrb[244].mxu1 %v9275_v41  ;;  %v10986_v3 = vld [vmem:[#allocation71_spill] sm:$0xff] }
 0x4a9   : > { %10979 = vst [vmem:[#allocation55_spill] sm:$0xff] %v9663_v2  ;;  %4406 = vmatmul.mubr.bf16.gmra.mrb[148].mxu0 %v9275_v41  ;;  %3900 = vmatprep.mubr.bf16.mxu1 %v9616_v49 }
 0x4aa   : > { %10981 = vst [vmem:[#allocation56_spill] sm:$0xff] %v9666_v54  ;;  %4413 = vmatprep.mubr.bf16.mxu0 %v9616_v49 }
 0x4ac   : > { %v3435_v35 = vpop.f32.mrb[28].mxu0 }
 0x4ad   : > { %v9673_v58 = vadd.f32 %v3435_v35, %v10982_v34  ;;  %v3437_v21 = vpop.f32.mrb[29].mxu0  ;;  %v10988_v34 = vld [vmem:[#allocation72_spill] sm:$0xff] }
 0x4ae   : > { %v9676_v63 = vadd.f32 %v3437_v21, %v10984_v31  ;;  %v3439_v25 = vpop.f32.mrb[30].mxu0  ;;  %v10990_v31 = vld [vmem:[#allocation73_spill] sm:$0xff] }
 0x4af   : > { %10983 = vst [vmem:[#allocation57_spill] sm:$0xff] %v9673_v58  ;;  %v3440_v2 = vpop.f32.mrb[31].mxu0 }
 0x4b0   : > { %10985 = vst [vmem:[#allocation58_spill] sm:$0xff] %v9676_v63  ;;  %3901 = vmatmul.mubr.bf16.gmra.mrb[248].mxu1 %v9281_v28  ;;  %v10992_v63 = vld [vmem:[#allocation74_spill] sm:$0xff] }
 0x4b1   : > { %4414 = vmatmul.mubr.bf16.gmra.mrb[152].mxu0 %v9281_v28  ;;  %3910 = vmatprep.mubr.bf16.mxu1 %v9616_v49 }
 0x4b2   : > { %4423 = vmatprep.mubr.bf16.mxu0 %v9616_v49 }
 0x4b4   : > { %v3443_v41 = vpop.f32.mrb[36].mxu0 }
 0x4b5   : > { %v9683_v38 = vadd.f32 %v3443_v41, %v10986_v3  ;;  %v3445_v35 = vpop.f32.mrb[37].mxu0  ;;  %v10994_v41 = vld [vmem:[#allocation75_spill] sm:$0xff] }
 0x4b6   : > { %v9686_v54 = vadd.f32 %v3445_v35, %v10988_v34  ;;  %v3447_v21 = vpop.f32.mrb[38].mxu0  ;;  %v10996_v34 = vld [vmem:[#allocation76_spill] sm:$0xff] }
 0x4b7   : > { %10987 = vst [vmem:[#allocation59_spill] sm:$0xff] %v9683_v38  ;;  %v9689_v25 = vadd.f32 %v3447_v21, %v10990_v31  ;;  %v3449_v2 = vpop.f32.mrb[39].mxu0 }
 0x4b8   : > { %10989 = vst [vmem:[#allocation60_spill] sm:$0xff] %v9686_v54  ;;  %v9692_v58 = vadd.f32 %v3449_v2, %v10992_v63  ;;  %3911 = vmatmul.mubr.bf16.gmra.mrb[252].mxu1 %v9287_v48  ;;  %v10998_v63 = vld [vmem:[#allocation77_spill] sm:$0xff] }
 0x4b9   : > { %10991 = vst [vmem:[#allocation61_spill] sm:$0xff] %v9689_v25  ;;  %4424 = vmatmul.mubr.bf16.gmra.mrb[156].mxu0 %v9287_v48  ;;  %3918 = vmatprep.mubr.bf16.mxu1 %v9616_v49 }
 0x4ba   : > { %10993 = vst [vmem:[#allocation62_spill] sm:$0xff] %v9692_v58  ;;  %4431 = vmatprep.mubr.bf16.mxu0 %v9616_v49 }
 0x4bc   : > { %v3453_v28 = vpop.f32.mrb[44].mxu0 }
 0x4bd   : > { %v9699_v3 = vadd.f32 %v3453_v28, %v10994_v41  ;;  %v3455_v35 = vpop.f32.mrb[45].mxu0  ;;  %v11000_v41 = vld [vmem:[#allocation78_spill] sm:$0xff] }
 0x4be   : > { %v9702_v21 = vadd.f32 %v3455_v35, %v10996_v34  ;;  %v3457_v31 = vpop.f32.mrb[46].mxu0  ;;  %v11002_v34 = vld [vmem:[#allocation79_spill] sm:$0xff] }
 0x4bf   : > { %10995 = vst [vmem:[#allocation63_spill] sm:$0xff] %v9699_v3  ;;  %v3458_v25 = vpop.f32.mrb[47].mxu0 }
 0x4c0   : > { %10997 = vst [vmem:[#allocation64_spill] sm:$0xff] %v9702_v21  ;;  %3919 = vmatmul.mubr.bf16.gmra.mrb[4].mxu1 %v9293_v23  ;;  %v11004_v21 = vld [vmem:[#allocation80_spill] sm:$0xff] }
 0x4c1   : > { %4432 = vmatmul.mubr.bf16.gmra.mrb[160].mxu0 %v9293_v23  ;;  %3928 = vmatprep.mubr.bf16.mxu1 %v9616_v49  ;;  %v11006_v23 = vld [vmem:[#allocation83_spill] sm:$0xff] }
 0x4c2   : > { %4441 = vmatprep.mubr.bf16.mxu0 %v9616_v49 }
 0x4c4   : > { %v3461_v48 = vpop.f32.mrb[52].mxu0 }
 0x4c5   : > { %v9709_v2 = vadd.f32 %v3461_v48, %v10998_v63  ;;  %v3463_v28 = vpop.f32.mrb[53].mxu0  ;;  %v11007_v63 = vld [vmem:[#allocation81_spill] sm:$0xff] }
 0x4c6   : > { %v9712_v58 = vadd.f32 %v3463_v28, %v11000_v41  ;;  %v3465_v35 = vpop.f32.mrb[54].mxu0 }
 0x4c7   : > { %10999 = vst [vmem:[#allocation65_spill] sm:$0xff] %v9709_v2  ;;  %v9715_v31 = vadd.f32 %v3465_v35, %v11002_v34  ;;  %v3467_v25 = vpop.f32.mrb[55].mxu0  ;;  %v11009_v35 = vld [vmem:[#allocation82_spill] sm:$0xff] }
 0x4c8   : > { %11001 = vst [vmem:[#allocation66_spill] sm:$0xff] %v9712_v58  ;;  %v9718_v3 = vadd.f32 %v3467_v25, %v11004_v21  ;;  %3929 = vmatmul.mubr.bf16.gmra.mrb[12].mxu1 %v11006_v23  ;;  %v5500_v58 = vlaneseq  ;;  %v11011_v25 = vld [vmem:[#allocation84_spill] sm:$0xff] }
 0x4c9   : > { %11003 = vst [vmem:[#allocation67_spill] sm:$0xff] %v9715_v31  ;;  %4442 = vmatmul.mubr.bf16.gmra.mrb[164].mxu0 %v11006_v23  ;;  %3936 = vmatprep.mubr.bf16.mxu1 %v9616_v49 }
 0x4ca   : > { %11005 = vst [vmem:[#allocation68_spill] sm:$0xff] %v9718_v3  ;;  %4449 = vmatprep.mubr.bf16.mxu0 %v9616_v49  ;;  %v5501_v23 = vshrl.u32 %v5500_v58, 7 }
 0x4cc   : > { %v3471_v48 = vpop.f32.mrb[60].mxu0 }
 0x4cd   : > { %v9725_v28 = vadd.f32 %v3471_v48, %v11007_v63  ;;  %v3473_v41 = vpop.f32.mrb[61].mxu0 }
 0x4ce   : > { %v9728_v34 = vadd.f32 %v3473_v41, %v11009_v35  ;;  %v3475_v31 = vpop.f32.mrb[62].mxu0  ;;  %v5506_v35 = vsub.s32 1, %v5501_v23 }
 0x4cf   : > { %11008 = vst [vmem:[#allocation69_spill] sm:$0xff] %v9725_v28  ;;  %v3476_v21 = vpop.f32.mrb[63].mxu0  ;;  %v5502_v28 = vsub.s32 0, %v5501_v23  ;;  %v5498_v31 = vld [vmem:[%s10781_s2] sm:$0x3] }
 0x4d0   : > { %11010 = vst [vmem:[#allocation70_spill] sm:$0xff] %v9728_v34  ;;  %3937 = vmatmul.mubr.bf16.gmra.mrb[20].mxu1 %v11011_v25 }
 0x4d1   : > { %4450 = vmatmul.mubr.bf16.gmra.mrb[168].mxu0 %v11011_v25  ;;  %3946 = vmatprep.mubr.bf16.mxu1 %v9616_v49  ;;  %v9739_v0 = vrot.slane %v5498_v31, %v5502_v28 }
 0x4d2   : > { %4459 = vmatprep.mubr.bf16.mxu0 %v9616_v49 }
 0x4d3   : > { %v3704_v3 = vpop.f32.mrb[160].mxu1 }
 0x4d4   : > { %v4217_v2 = vpop.f32.mrb[64].mxu0  ;;  %v3706_v48 = vpop.f32.mrb[161].mxu1  ;;  %v4697_v21 = vrot.slane %v3704_v3, 1 }
 0x4d5   : > { %v4219_v63 = vpop.f32.mrb[65].mxu0  ;;  %v3708_v54 = vpop.f32.mrb[162].mxu1  ;;  %v5146_v58 = vrot.slane %v4217_v2, 2  ;;  %v4700_v55 = vrot.slane %v3706_v48, 1 }
 0x4d6   : > { %v4221_v41 = vpop.f32.mrb[66].mxu0  ;;  %v4698_v25 = vrot.slane %v3708_v54, 1  ;;  %v3710_v38 = vpop.f32.mrb[163].mxu1  ;;  %v5149_v59 = vrot.slane %v4219_v63, 2 }
 0x4d7   : > { %v5147_v34 = vrot.slane %v4221_v41, 2  ;;  %v4223_v17 = vpop.f32.mrb[67].mxu0  ;;  %v4701_v8 = vrot.slane %v3710_v38, 1  ;;  %v9749_v38 = vrot.slane %v5498_v31, %v5506_v35 }
 0x4d8   : > { %v5150_v37 = vrot.slane %v4223_v17, 2  ;;  %v4699_v12 = vsel %vm4696_vm0, %v4697_v21, %v4698_v25  ;;  %3947 = vmatmul.mubr.bf16.gmra.mrb[28].mxu1 %v9317_v4 }
 0x4d9   : > { %v5148_v19 = vsel %vm5145_vm1, %v5146_v58, %v5147_v34  ;;  %4460 = vmatmul.mubr.bf16.gmra.mrb[172].mxu0 %v9317_v4  ;;  %v4953_v3 = vadd.f32 %v9312_v46, %v4699_v12  ;;  %v4702_v54 = vsel %vm4696_vm0, %v4700_v55, %v4701_v8  ;;  %3954 = vmatprep.mubr.bf16.mxu1 %v9616_v49 }
 0x4da   : > { %v5151_v2 = vsel %vm5145_vm1, %v5149_v59, %v5150_v37  ;;  %4467 = vmatprep.mubr.bf16.mxu0 %v9616_v49  ;;  %v4954_v17 = vadd.f32 %v9315_v36, %v4702_v54 }
 0x4db   : > { %v5402_v28 = vadd.f32 %v5148_v19, %v4953_v3  ;;  %v3714_v23 = vpop.f32.mrb[164].mxu1 }
 0x4dc   : > { %v4227_v48 = vpop.f32.mrb[68].mxu0  ;;  %v5403_v63 = vadd.f32 %v5151_v2, %v4954_v17  ;;  %v4703_v41 = vrot.slane %v3714_v23, 1  ;;  %v3716_v21 = vpop.f32.mrb[165].mxu1 }
 0x4dd   : > { %v5152_v4 = vrot.slane %v4227_v48, 2  ;;  %v4229_v46 = vpop.f32.mrb[69].mxu0  ;;  %v5510_v12 = vadd.f32 %v9739_v0, %v5402_v28  ;;  %v4705_v55 = vrot.slane %v3716_v21, 1  ;;  %v3718_v58 = vpop.f32.mrb[166].mxu1 }
 0x4de   : > { %v5154_v59 = vrot.slane %v4229_v46, 2  ;;  %v4231_v29 = vpop.f32.mrb[70].mxu0  ;;  %v5511_v13 = vadd.f32 %v9749_v38, %v5403_v63  ;;  %v4704_v36 = vsel %vm4696_vm0, %v4698_v25, %v4703_v41  ;;  %v4957_v31 = vadd.f32 %v4703_v41, %v9330_v61  ;;  %v3719_v35 = vpop.f32.mrb[167].mxu1 }
 0x4df   : > { %v5153_v19 = vsel %vm5145_vm1, %v5147_v34, %v5152_v4  ;;  %v4232_v3 = vpop.f32.mrb[71].mxu0  ;;  %vm5606_vm2 = vcmp.ge.f32.partialorder %v5510_v12, 0.0  ;;  %v5702_v54 = vmul.f32 0.2, %v5510_v12  ;;  %v4955_v2 = vadd.f32 %v9320_v42, %v4704_v36 }
 0x4e0   : > { %v4706_v17 = vsel %vm4696_vm0, %v4701_v8, %v4705_v55  ;;  %vm5607_vm3 = vcmp.ge.f32.partialorder %v5511_v13, 0.0  ;;  %v5703_v28 = vmul.f32 0.2, %v5511_v13  ;;  %v5406_v23 = vadd.f32 %v5152_v4, %v4957_v31  ;;  %3955 = vmatmul.mubr.bf16.gmra.mrb[36].mxu1 %v9335_v57 }
 0x4e1   : > { %v4956_v29 = vadd.f32 %v9323_v53, %v4706_v17  ;;  %4468 = vmatmul.mubr.bf16.gmra.mrb[176].mxu0 %v9335_v57  ;;  %v5798_v61 = vsel %vm5606_vm2, %v5510_v12, %v5702_v54  ;;  %v5404_v25 = vadd.f32 %v5153_v19, %v4955_v2  ;;  %v4958_v34 = vadd.f32 %v4705_v55, %v9333_v62 }
 0x4e2   : > { %v5155_v48 = vsel %vm5145_vm1, %v5150_v37, %v5154_v59  ;;  %3964 = vmatprep.mubr.bf16.mxu1 %v9616_v49  ;;  %v5799_v42 = vsel %vm5607_vm3, %v5511_v13, %v5703_v28  ;;  %v5514_v8 = vadd.f32 %v9739_v0, %v5406_v23  ;;  %4477 = vmatprep.mubr.bf16.mxu0 %v9616_v49 }
 0x4e3   : > { %v5405_v63 = vadd.f32 %v5155_v48, %v4956_v29  ;;  %v6968_v53 = vpack.c.bf16 %v5799_v42, %v5798_v61  ;;  %v5512_v41 = vadd.f32 %v9739_v0, %v5404_v25  ;;  %v5407_v4 = vadd.f32 %v5154_v59, %v4958_v34  ;;  %v3722_v57 = vpop.f32.mrb[168].mxu1 }
 0x4e4   : > { %v4235_v21 = vpop.f32.mrb[72].mxu0  ;;  %vm5610_vm6 = vcmp.ge.f32.partialorder %v5514_v8, 0.0  ;;  %v5706_v62 = vmul.f32 0.2, %v5514_v8  ;;  %v4707_v46 = vrot.slane %v3722_v57, 1  ;;  %v3724_v12 = vpop.f32.mrb[169].mxu1 }
 0x4e5   : > { %v5513_v37 = vadd.f32 %v9749_v38, %v5405_v63  ;;  %v4237_v13 = vpop.f32.mrb[73].mxu0  ;;  %v6170_v55 = vshrl.u32 %v6968_v53, 16  ;;  %v6173_v58 = vshll.u32 %v6968_v53, 16  ;;  %vm5608_vm7 = vcmp.ge.f32.partialorder %v5512_v41, 0.0  ;;  %v9768_v31 = vpop.f32.mrb[170].mxu1 }
 0x4e6   : > { %v5704_v36 = vmul.f32 0.2, %v5512_v41  ;;  %v5802_v19 = vsel %vm5610_vm6, %v5514_v8, %v5706_v62  ;;  %v5515_v35 = vadd.f32 %v9749_v38, %v5407_v4  ;;  %v4239_v3 = vpop.f32.mrb[74].mxu0  ;;  %v9771_v54 = vpop.f32.mrb[171].mxu1  ;;  %v5156_v23 = vrot.slane %v4235_v21, 2 }
 0x4e7   : > { %vm5609_vm8 = vcmp.ge.f32.partialorder %v5513_v37, 0.0  ;;  %v5705_v59 = vmul.f32 0.2, %v5513_v37  ;;  %v6172_v2 = vrot.slane %v6170_v55, 4  ;;  %v6175_v17 = vrot.slane %v6173_v58, 5  ;;  %v9773_v29 = vpop.f32.mrb[75].mxu0 }
 0x4e8   : > { %v5800_v28 = vsel %vm5608_vm7, %v5512_v41, %v5704_v36  ;;  %vm5611_vm9 = vcmp.ge.f32.partialorder %v5515_v35, 0.0  ;;  %v5707_v61 = vmul.f32 0.2, %v5515_v35  ;;  %v4710_v34 = vrot.slane %v3724_v12, 1  ;;  %3965 = vmatmul.mubr.bf16.gmra.mrb[44].mxu1 %v9347_v40 }
 0x4e9   : > { %v5801_v25 = vsel %vm5609_vm8, %v5513_v37, %v5705_v59  ;;  %4478 = vmatmul.mubr.bf16.gmra.mrb[180].mxu0 %v9347_v40  ;;  %v6176_v48 = vor.u32 %v6175_v17, %v6172_v2  ;;  %v5159_v8 = vrot.slane %v4237_v13, 2  ;;  %v4708_v63 = vrot.slane %v9768_v31, 1  ;;  %3972 = vmatprep.mubr.bf16.mxu1 %v9616_v49 }
 0x4ea   : > { %v6969_v42 = vpack.c.bf16 %v5801_v25, %v5800_v28  ;;  %4485 = vmatprep.mubr.bf16.mxu0 %v9616_v49  ;;  %v5803_v53 = vsel %vm5611_vm9, %v5515_v35, %v5707_v61  ;;  %v5157_v41 = vrot.slane %v4239_v3, 2  ;;  %v4711_v4 = vrot.slane %v9771_v54, 1 }
 0x4eb   : > { %v10791_v57 = vrot.slane %v9773_v29, 2  ;;  %v6177_v21 = vrot.slane %v6176_v48, 4  ;;  %v6970_v62 = vpack.c.bf16 %v5803_v53, %v5802_v19  ;;  %v3732_v12 = vpop.f32.mrb[172].mxu1  ;;  %v4709_v58 = vsel %vm4696_vm0, %v4707_v46, %v4708_v63 }
 0x4ec   : > { %v6179_v37 = vshll.u32 %v6969_v42, 16  ;;  %v6183_v40 = vshrl.u32 %v6969_v42, 16  ;;  %v4245_v55 = vpop.f32.mrb[76].mxu0  ;;  %v5158_v36 = vsel %vm5145_vm1, %v5156_v23, %v5157_v41  ;;  %v4712_v31 = vsel %vm4696_vm0, %v4710_v34, %v4711_v4  ;;  %v3734_v35 = vpop.f32.mrb[173].mxu1 }
 0x4ed   : > { %v5161_v19 = vsel %vm5145_vm1, %v5159_v8, %v10791_v57  ;;  %v9795_v59 = vpop.f32.mrb[77].mxu0  ;;  %v6189_v2 = vshll.u32 %v6970_v62, 16  ;;  %v4959_v17 = vadd.f32 %v9342_v6, %v4709_v58  ;;  %v3736_v28 = vpop.f32.mrb[174].mxu1  ;;  %v4960_v46 = vadd.f32 %v9345_v10, %v4712_v31 }
 0x4ee   : > { %v6181_v3 = vrot.slane %v6179_v37, 5  ;;  %v6185_v54 = vrot.slane %v6183_v40, 4  ;;  %v4249_v61 = vpop.f32.mrb[78].mxu0  ;;  %v4713_v23 = vrot.slane %v3732_v12, 1  ;;  %v5162_v25 = vrot.slane %v4245_v55, 2  ;;  %v3737_v48 = vpop.f32.mrb[175].mxu1 }
 0x4ef   : > { %v4715_v34 = vrot.slane %v3734_v35, 1  ;;  %v4250_v42 = vpop.f32.mrb[79].mxu0  ;;  %v6191_v57 = vrot.slane %v6189_v2, 5  ;;  %v5408_v37 = vadd.f32 %v5158_v36, %v4959_v17  ;;  %v5409_v6 = vadd.f32 %v5161_v19, %v4960_v46 }
 0x4f0   : > { %v6182_v8 = vsel %vm9785_vm10, %v6177_v21, %v6181_v3  ;;  %v6186_v53 = vor.u32 %v6185_v54, %v6181_v3  ;;  %v4714_v62 = vsel %vm4696_vm0, %v4708_v63, %v4713_v23  ;;  %v4963_v10 = vadd.f32 %v4713_v23, %v9360_v16  ;;  %3973 = vmatmul.mubr.bf16.gmra.mrb[52].mxu1 %v9616_v49 }
 0x4f1   : > { %6585 = vst [vmem:[%s9803_s9] sm:$0xff] %v6182_v8  ;;  %v5163_v40 = vsel %vm5145_vm1, %v5157_v41, %v5162_v25  ;;  %v5516_v21 = vadd.f32 %v9739_v0, %v5408_v37  ;;  %v4961_v55 = vadd.f32 %v9350_v56, %v4714_v62  ;;  %v4716_v58 = vsel %vm4696_vm0, %v4711_v4, %v4715_v34 }
 0x4f2   : > { %v6187_v12 = vrot.slane %v6186_v53, 4  ;;  %4486 = vmatmul.mubr.bf16.gmra.mrb[184].mxu0 %v9616_v49  ;;  %3982 = vmatprep.mubr.bf16.mxu1 %v9616_v49  ;;  %v5517_v63 = vadd.f32 %v9749_v38, %v5409_v6  ;;  %v5412_v36 = vadd.f32 %v5162_v25, %v4963_v10  ;;  %v4962_v16 = vadd.f32 %v9353_v1, %v4716_v58 }
 0x4f3   : > { %v4964_v41 = vadd.f32 %v4715_v34, %v9363_v18  ;;  %4495 = vmatprep.mubr.bf16.mxu0 %v9616_v49  ;;  %vm5612_vm11 = vcmp.ge.f32.partialorder %v5516_v21, 0.0  ;;  %v5708_v56 = vmul.f32 0.2, %v5516_v21  ;;  %v5410_v19 = vadd.f32 %v5163_v40, %v4961_v55  ;;  %v3740_v4 = vpop.f32.mrb[176].mxu1 }
 0x4f4   : > { %v6192_v31 = vsel %vm9785_vm10, %v6187_v12, %v6191_v57  ;;  %v4253_v35 = vpop.f32.mrb[80].mxu0  ;;  %vm5613_vm12 = vcmp.ge.f32.partialorder %v5517_v63, 0.0  ;;  %v5709_v3 = vmul.f32 0.2, %v5517_v63  ;;  %v5520_v54 = vadd.f32 %v9739_v0, %v5412_v36  ;;  %v3742_v1 = vpop.f32.mrb[177].mxu1 }
 0x4f5   : > { %6586 = vst [vmem:[%s9803_s9 + $0x8] sm:$0xff] %v6192_v31  ;;  %v5164_v2 = vrot.slane %v9795_v59, 2  ;;  %v9824_v17 = vpop.f32.mrb[81].mxu0  ;;  %v5804_v18 = vsel %vm5612_vm11, %v5516_v21, %v5708_v56  ;;  %v5518_v28 = vadd.f32 %v9739_v0, %v5410_v19  ;;  %v4717_v61 = vrot.slane %v3740_v4, 1  ;;  %v9827_v46 = vpop.f32.mrb[178].mxu1 }
 0x4f6   : > { %v5166_v57 = vrot.slane %v4253_v35, 2  ;;  %v9829_v23 = vpop.f32.mrb[82].mxu0  ;;  %v5805_v25 = vsel %vm5613_vm12, %v5517_v63, %v5709_v3  ;;  %vm5616_vm13 = vcmp.ge.f32.partialorder %v5520_v54, 0.0  ;;  %v5712_v34 = vmul.f32 0.2, %v5520_v54  ;;  %v9834_v59 = vpop.f32.mrb[179].mxu1 }
 0x4f7   : > { %v11014_v48 = vrot.slane %v9773_v29, 2  ;;  %v9836_v8 = vpop.f32.mrb[83].mxu0  ;;  %v6971_v53 = vpack.c.bf16 %v5805_v25, %v5804_v18  ;;  %vm5614_vm14 = vcmp.ge.f32.partialorder %v5518_v28, 0.0  ;;  %v5710_v37 = vmul.f32 0.2, %v5518_v28 }
 0x4f8   : > { %v5808_v62 = vsel %vm5616_vm13, %v5520_v54, %v5712_v34  ;;  %v5413_v10 = vadd.f32 %v5164_v2, %v4964_v41  ;;  %v4720_v40 = vrot.slane %v3742_v1, 1  ;;  %v5169_v12 = vrot.slane %v9824_v17, 2  ;;  %3983 = vmatmul.mubr.bf16.gmra.mrb[60].mxu1 %v9616_v49 }
 0x4f9   : > { %v5165_v42 = vsel %vm5145_vm1, %v11014_v48, %v5164_v2  ;;  %v6194_v21 = vshrl.u32 %v6971_v53, 16  ;;  %v6197_v55 = vshll.u32 %v6971_v53, 16  ;;  %v5806_v29 = vsel %vm5614_vm14, %v5518_v28, %v5710_v37  ;;  %v11015_v48 = vld [vmem:[#allocation85_spill] sm:$0xff] }
 0x4fa   : > { %v5411_v6 = vadd.f32 %v5165_v42, %v4962_v16  ;;  %4496 = vmatmul.mubr.bf16.gmra.mrb[188].mxu0 %v9616_v49  ;;  %v5521_v63 = vadd.f32 %v9749_v38, %v5413_v10  ;;  %v4718_v36 = vrot.slane %v9827_v46, 1  ;;  %v5167_v16 = vrot.slane %v9829_v23, 2 }
 0x4fb   : > { %v4721_v41 = vrot.slane %v9834_v59, 1  ;;  %v6196_v31 = vrot.slane %v6194_v21, 4  ;;  %v6199_v56 = vrot.slane %v6197_v55, 5  ;;  %v3750_v4 = vpop.f32.mrb[180].mxu1 }
 0x4fc   : > { %v5519_v58 = vadd.f32 %v9749_v38, %v5411_v6  ;;  %vm5617_vm2 = vcmp.ge.f32.partialorder %v5521_v63, 0.0  ;;  %v5713_v35 = vmul.f32 0.2, %v5521_v63  ;;  %v4719_v3 = vsel %vm4696_vm0, %v4717_v61, %v4718_v36  ;;  %v4263_v49 = vpop.f32.mrb[84].mxu0  ;;  %v9848_v2 = vpop.f32.mrb[181].mxu1 }
 0x4fd   : > { %v5168_v54 = vsel %vm5145_vm1, %v5166_v57, %v5167_v16  ;;  %v6200_v1 = vor.u32 %v6199_v56, %v6196_v31  ;;  %v4965_v18 = vadd.f32 %v9370_v24, %v4719_v3  ;;  %v4722_v28 = vsel %vm4696_vm0, %v4720_v40, %v4721_v41  ;;  %v9854_v46 = vpop.f32.mrb[85].mxu0  ;;  %v3754_v23 = vpop.f32.mrb[182].mxu1 }
 0x4fe   : > { %vm5615_vm15 = vcmp.ge.f32.partialorder %v5519_v58, 0.0  ;;  %v5711_v19 = vmul.f32 0.2, %v5519_v58  ;;  %v5809_v25 = vsel %vm5617_vm2, %v5521_v63, %v5713_v35  ;;  %v4966_v61 = vadd.f32 %v11015_v48, %v4722_v28  ;;  %v4267_v42 = vpop.f32.mrb[86].mxu0  ;;  %v3755_v53 = vpop.f32.mrb[183].mxu1 }
 0x4ff   : > { %v5170_v57 = vrot.slane %v9836_v8, 2  ;;  %v6201_v37 = vrot.slane %v6200_v1, 4  ;;  %v6973_v6 = vpack.c.bf16 %v5809_v25, %v5808_v62  ;;  %v5414_v10 = vadd.f32 %v5168_v54, %v4965_v18  ;;  %v4268_v24 = vpop.f32.mrb[87].mxu0  ;;  %v11016_v62 = vld [vmem:[#allocation86_spill] sm:$0xff] }
 0x500   : > { %v5807_v17 = vsel %vm5615_vm15, %v5519_v58, %v5711_v19  ;;  %v4723_v21 = vrot.slane %v3750_v4, 1  ;;  %v5172_v31 = vrot.slane %v4263_v49, 2  ;;  %v11017_v4 = vld [vmem:[#allocation13_spill] sm:$0xff] }
 0x501   : > { %v6972_v34 = vpack.c.bf16 %v5807_v17, %v5806_v29  ;;  %v5171_v40 = vsel %vm5145_vm1, %v5169_v12, %v5170_v57  ;;  %v6213_v63 = vshll.u32 %v6973_v6, 16  ;;  %v5522_v29 = vadd.f32 %v9739_v0, %v5414_v10 }
 0x502   : > { %v5415_v56 = vadd.f32 %v5171_v40, %v4966_v61  ;;  %v4724_v19 = vsel %vm4696_vm0, %v4718_v36, %v4723_v21  ;;  %v4969_v1 = vadd.f32 %v4723_v21, %v11017_v4  ;;  %v5173_v25 = vsel %vm5145_vm1, %v5167_v16, %v5172_v31 }
 0x503   : > { %v6203_v55 = vshll.u32 %v6972_v34, 16  ;;  %v6207_v58 = vshrl.u32 %v6972_v34, 16  ;;  %v4967_v54 = vadd.f32 %v11016_v62, %v4724_v19  ;;  %v6215_v17 = vrot.slane %v6213_v63, 5  ;;  %v9866_v12 = vpop.f32.mrb[184].mxu1  ;;  %v11018_v62 = vld [vmem:[#allocation14_spill] sm:$0xff] }
 0x504   : > { %vm5618_vm3 = vcmp.ge.f32.partialorder %v5522_v29, 0.0  ;;  %v5714_v18 = vmul.f32 0.2, %v5522_v29  ;;  %v5523_v28 = vadd.f32 %v9749_v38, %v5415_v56  ;;  %v9868_v49 = vpop.f32.mrb[88].mxu0  ;;  %v5418_v34 = vadd.f32 %v5172_v31, %v4969_v1  ;;  %v9873_v48 = vpop.f32.mrb[185].mxu1 }
 0x505   : > { %v6205_v35 = vrot.slane %v6203_v55, 5  ;;  %v6209_v3 = vrot.slane %v6207_v58, 4  ;;  %v9875_v61 = vpop.f32.mrb[89].mxu0  ;;  %v5416_v6 = vadd.f32 %v5173_v25, %v4967_v54  ;;  %v3762_v10 = vpop.f32.mrb[186].mxu1  ;;  %v4725_v55 = vrot.slane %v9848_v2, 1 }
 0x506   : > { %v5810_v42 = vsel %vm5618_vm3, %v5522_v29, %v5714_v18  ;;  %vm5619_vm4 = vcmp.ge.f32.partialorder %v5523_v28, 0.0  ;;  %v5715_v53 = vmul.f32 0.2, %v5523_v28  ;;  %v9878_v21 = vpop.f32.mrb[90].mxu0  ;;  %v5174_v16 = vrot.slane %v9854_v46, 2  ;;  %v9883_v58 = vpop.f32.mrb[187].mxu1 }
 0x507   : > { %v6206_v23 = vsel %vm9785_vm10, %v6201_v37, %v6205_v35  ;;  %v6210_v36 = vor.u32 %v6209_v3, %v6205_v35  ;;  %v5526_v37 = vadd.f32 %v9739_v0, %v5418_v34  ;;  %v9885_v40 = vpop.f32.mrb[91].mxu0  ;;  %v5524_v63 = vadd.f32 %v9739_v0, %v5416_v6 }
 0x508   : > { %6587 = vst [vmem:[%s9803_s9 + $0x10] sm:$0xff] %v6206_v23  ;;  %v5811_v31 = vsel %vm5619_vm4, %v5523_v28, %v5715_v53  ;;  %v4727_v29 = vrot.slane %v9866_v12, 1  ;;  %v5176_v56 = vrot.slane %v9868_v49, 2  ;;  %v4726_v46 = vsel %vm4696_vm0, %v4721_v41, %v4725_v55  ;;  %v11019_v28 = vld [vmem:[#allocation12_spill] sm:$0xff] }
 0x509   : > { %v6211_v24 = vrot.slane %v6210_v36, 4  ;;  %v6974_v35 = vpack.c.bf16 %v5811_v31, %v5810_v42  ;;  %vm5622_vm5 = vcmp.ge.f32.partialorder %v5526_v37, 0.0  ;;  %v5718_v3 = vmul.f32 0.2, %v5526_v37 }
 0x50a   : > { %vm5620_vm6 = vcmp.ge.f32.partialorder %v5524_v63, 0.0  ;;  %v5716_v2 = vmul.f32 0.2, %v5524_v63  ;;  %v4970_v54 = vadd.f32 %v4725_v55, %v11018_v62  ;;  %v4968_v12 = vadd.f32 %v11019_v28, %v4726_v46 }
 0x50b   : > { %v6216_v19 = vsel %vm9785_vm10, %v6211_v24, %v6215_v17  ;;  %v6218_v4 = vshrl.u32 %v6974_v35, 16  ;;  %v6221_v1 = vshll.u32 %v6974_v35, 16  ;;  %v5814_v18 = vsel %vm5622_vm5, %v5526_v37, %v5718_v3  ;;  %v3768_v25 = vpop.f32.mrb[188].mxu1 }
 0x50c   : > { %6588 = vst [vmem:[%s9803_s9 + $0x18] sm:$0xff] %v6216_v19  ;;  %v5812_v49 = vsel %vm5620_vm6, %v5524_v63, %v5716_v2  ;;  %v5175_v17 = vsel %vm5145_vm1, %v5170_v57, %v5174_v16  ;;  %v5419_v23 = vadd.f32 %v5174_v16, %v4970_v54  ;;  %v4730_v36 = vrot.slane %v9873_v48, 1  ;;  %v4281_v34 = vpop.f32.mrb[92].mxu0  ;;  %v9903_v6 = vpop.f32.mrb[189].mxu1 }
 0x50d   : > { %v6220_v59 = vrot.slane %v6218_v4, 4  ;;  %v6223_v42 = vrot.slane %v6221_v1, 5  ;;  %v5417_v41 = vadd.f32 %v5175_v17, %v4968_v12  ;;  %v5179_v53 = vrot.slane %v9875_v61, 2  ;;  %v9905_v24 = vpop.f32.mrb[93].mxu0  ;;  %v3772_v16 = vpop.f32.mrb[190].mxu1 }
 0x50e   : > { %v5527_v37 = vadd.f32 %v9749_v38, %v5419_v23  ;;  %v4728_v55 = vrot.slane %v3762_v10, 1  ;;  %v5177_v8 = vrot.slane %v9878_v21, 2  ;;  %v4731_v57 = vrot.slane %v9883_v58, 1  ;;  %v4285_v48 = vpop.f32.mrb[94].mxu0  ;;  %v3773_v61 = vpop.f32.mrb[191].mxu1 }
 0x50f   : > { %v6224_v31 = vor.u32 %v6223_v42, %v6220_v59  ;;  %v5525_v63 = vadd.f32 %v9749_v38, %v5417_v41  ;;  %v5180_v19 = vrot.slane %v9885_v40, 2  ;;  %v4733_v35 = vrot.slane %v3768_v25, 1  ;;  %v4286_v3 = vpop.f32.mrb[95].mxu0  ;;  %v11020_v25 = vld [vmem:[#allocation15_spill] sm:$0xff]  ;;  %v11021_v42 = vld [vmem:[#allocation17_spill] sm:$0xff] }
 0x510   : > { %vm5623_vm7 = vcmp.ge.f32.partialorder %v5527_v37, 0.0  ;;  %v5719_v2 = vmul.f32 0.2, %v5527_v37  ;;  %v4729_v46 = vsel %vm4696_vm0, %v4727_v29, %v4728_v55  ;;  %v5178_v10 = vsel %vm5145_vm1, %v5176_v56, %v5177_v8 }
 0x511   : > { %v6225_v62 = vrot.slane %v6224_v31, 4  ;;  %vm5621_vm8 = vcmp.ge.f32.partialorder %v5525_v63, 0.0  ;;  %v5717_v21 = vmul.f32 0.2, %v5525_v63  ;;  %v4971_v58 = vadd.f32 %v9395_v60, %v4729_v46 }
 0x512   : > { %v5815_v54 = vsel %vm5623_vm7, %v5527_v37, %v5719_v2  ;;  %v4732_v4 = vsel %vm4696_vm0, %v4730_v36, %v4731_v57  ;;  %v5181_v1 = vsel %vm5145_vm1, %v5179_v53, %v5180_v19  ;;  %v4734_v28 = vsel %vm4696_vm0, %v4728_v55, %v4733_v35 }
 0x513   : > { %v5813_v12 = vsel %vm5621_vm8, %v5525_v63, %v5717_v21  ;;  %v6976_v17 = vpack.c.bf16 %v5815_v54, %v5814_v18  ;;  %v5420_v23 = vadd.f32 %v5178_v10, %v4971_v58  ;;  %v4972_v29 = vadd.f32 %v9398_v26, %v4732_v4  ;;  %v9923_v37 = vpop.f32.mrb[192].mxu1 }
 0x514   : > { %v6975_v56 = vpack.c.bf16 %v5813_v12, %v5812_v49  ;;  %v4973_v59 = vadd.f32 %v11020_v25, %v4734_v28  ;;  %v4975_v41 = vadd.f32 %v4733_v35, %v11021_v42  ;;  %v5182_v60 = vrot.slane %v4281_v34, 2  ;;  %v9925_v36 = vpop.f32.mrb[96].mxu0  ;;  %v9929_v18 = vpop.f32.mrb[193].mxu1  ;;  %v11022_v25 = vld [vmem:[#allocation16_spill] sm:$0xff] }
 0x515   : > { %v6237_v16 = vshll.u32 %v6976_v17, 16  ;;  %v5528_v53 = vadd.f32 %v9739_v0, %v5420_v23  ;;  %v5421_v48 = vadd.f32 %v5181_v1, %v4972_v29  ;;  %v4735_v55 = vrot.slane %v9903_v6, 1  ;;  %v9931_v31 = vpop.f32.mrb[97].mxu0  ;;  %v9934_v34 = vpop.f32.mrb[194].mxu1 }
 0x516   : > { %v6227_v26 = vshll.u32 %v6975_v56, 16  ;;  %v6231_v49 = vshrl.u32 %v6975_v56, 16  ;;  %v5183_v63 = vsel %vm5145_vm1, %v5177_v8, %v5182_v60  ;;  %v5424_v35 = vadd.f32 %v5182_v60, %v4975_v41  ;;  %v9936_v61 = vpop.f32.mrb[98].mxu0  ;;  %v9939_v6 = vpop.f32.mrb[195].mxu1 }
 0x517   : > { %v6239_v3 = vrot.slane %v6237_v16, 5  ;;  %vm5624_vm9 = vcmp.ge.f32.partialorder %v5528_v53, 0.0  ;;  %v5720_v2 = vmul.f32 0.2, %v5528_v53  ;;  %v5529_v46 = vadd.f32 %v9749_v38, %v5421_v48  ;;  %v9941_v10 = vpop.f32.mrb[99].mxu0 }
 0x518   : > { %v6229_v21 = vrot.slane %v6227_v26, 5  ;;  %v6233_v58 = vrot.slane %v6231_v49, 4  ;;  %v5422_v54 = vadd.f32 %v5183_v63, %v4973_v59  ;;  %v5532_v8 = vadd.f32 %v9739_v0, %v5424_v35  ;;  %v11023_v59 = vld [vmem:[#allocation18_spill] sm:$0xff] }
 0x519   : > { %v5816_v4 = vsel %vm5624_vm9, %v5528_v53, %v5720_v2  ;;  %vm5625_vm11 = vcmp.ge.f32.partialorder %v5529_v46, 0.0  ;;  %v5721_v1 = vmul.f32 0.2, %v5529_v46  ;;  %v4736_v28 = vsel %vm4696_vm0, %v4731_v57, %v4735_v55 }
 0x51a   : > { %v6230_v12 = vsel %vm9785_vm10, %v6225_v62, %v6229_v21  ;;  %v6234_v17 = vor.u32 %v6233_v58, %v6229_v21  ;;  %v5530_v23 = vadd.f32 %v9739_v0, %v5422_v54  ;;  %vm5628_vm12 = vcmp.ge.f32.partialorder %v5532_v8, 0.0 }
 0x51b   : > { %6589 = vst [vmem:[%s9803_s9 + $0x20] sm:$0xff] %v6230_v12  ;;  %v5817_v29 = vsel %vm5625_vm11, %v5529_v46, %v5721_v1  ;;  %v5724_v56 = vmul.f32 0.2, %v5532_v8  ;;  %v4974_v42 = vadd.f32 %v11022_v25, %v4736_v28  ;;  %v4976_v41 = vadd.f32 %v4735_v55, %v11023_v59  ;;  %v3786_v57 = vpop.f32.mrb[196].mxu1 }
 0x51c   : > { %v6235_v60 = vrot.slane %v6234_v17, 4  ;;  %v6977_v16 = vpack.c.bf16 %v5817_v29, %v5816_v4  ;;  %vm5626_vm13 = vcmp.ge.f32.partialorder %v5530_v23, 0.0  ;;  %v5722_v53 = vmul.f32 0.2, %v5530_v23  ;;  %v9951_v48 = vpop.f32.mrb[100].mxu0  ;;  %v9956_v35 = vpop.f32.mrb[197].mxu1 }
 0x51d   : > { %v5820_v62 = vsel %vm5628_vm12, %v5532_v8, %v5724_v56  ;;  %v5184_v26 = vrot.slane %v9905_v24, 2  ;;  %v4737_v49 = vrot.slane %v9923_v37, 1  ;;  %v5186_v63 = vrot.slane %v9925_v36, 2  ;;  %v9958_v2 = vpop.f32.mrb[101].mxu0  ;;  %v3790_v54 = vpop.f32.mrb[198].mxu1 }
 0x51e   : > { %v6240_v55 = vsel %vm9785_vm10, %v6235_v60, %v6239_v3  ;;  %v6242_v46 = vshrl.u32 %v6977_v16, 16  ;;  %v6245_v21 = vshll.u32 %v6977_v16, 16  ;;  %v5818_v58 = vsel %vm5626_vm13, %v5530_v23, %v5722_v53  ;;  %v4303_v4 = vpop.f32.mrb[102].mxu0  ;;  %v3791_v1 = vpop.f32.mrb[199].mxu1 }
 0x51f   : > { %6590 = vst [vmem:[%s9803_s9 + $0x28] sm:$0xff] %v6240_v55  ;;  %v5185_v24 = vsel %vm5145_vm1, %v5180_v19, %v5184_v26  ;;  %v5425_v37 = vadd.f32 %v5184_v26, %v4976_v41  ;;  %v4740_v36 = vrot.slane %v9929_v18, 1  ;;  %v5189_v8 = vrot.slane %v9931_v31, 2  ;;  %v4304_v28 = vpop.f32.mrb[103].mxu0  ;;  %v11024_v4 = vld [vmem:[#allocation21_spill] sm:$0xff] }
 0x520   : > { %v6244_v12 = vrot.slane %v6242_v46, 4  ;;  %v6247_v17 = vrot.slane %v6245_v21, 5  ;;  %v5423_v3 = vadd.f32 %v5185_v24, %v4974_v42  ;;  %v4738_v29 = vrot.slane %v9934_v34, 1 }
 0x521   : > { %v5533_v23 = vadd.f32 %v9749_v38, %v5425_v37  ;;  %v5187_v56 = vrot.slane %v9936_v61, 2  ;;  %v4741_v40 = vrot.slane %v9939_v6, 1  ;;  %v5190_v19 = vrot.slane %v9941_v10, 2 }
 0x522   : > { %v6248_v25 = vor.u32 %v6247_v17, %v6244_v12  ;;  %v5531_v18 = vadd.f32 %v9749_v38, %v5423_v3  ;;  %v4739_v31 = vsel %vm4696_vm0, %v4737_v49, %v4738_v29  ;;  %v4743_v59 = vrot.slane %v3786_v57, 1  ;;  %v11025_v12 = vld [vmem:[#allocation19_spill] sm:$0xff] }
 0x523   : > { %vm5629_vm14 = vcmp.ge.f32.partialorder %v5533_v23, 0.0  ;;  %v5725_v41 = vmul.f32 0.2, %v5533_v23  ;;  %v4977_v42 = vadd.f32 %v9421_v15, %v4739_v31  ;;  %v5188_v34 = vsel %vm5145_vm1, %v5186_v63, %v5187_v56  ;;  %v9978_v6 = vpop.f32.mrb[200].mxu1 }
 0x524   : > { %v6249_v60 = vrot.slane %v6248_v25, 4  ;;  %vm5627_vm15 = vcmp.ge.f32.partialorder %v5531_v18, 0.0  ;;  %v5723_v16 = vmul.f32 0.2, %v5531_v18  ;;  %v4742_v61 = vsel %vm4696_vm0, %v4740_v36, %v4741_v40  ;;  %v9980_v53 = vpop.f32.mrb[104].mxu0  ;;  %v9986_v15 = vpop.f32.mrb[201].mxu1 }
 0x525   : > { %v5821_v26 = vsel %vm5629_vm14, %v5533_v23, %v5725_v41  ;;  %v5426_v55 = vadd.f32 %v5188_v34, %v4977_v42  ;;  %v4978_v49 = vadd.f32 %v9424_v44, %v4742_v61  ;;  %v5191_v57 = vsel %vm5145_vm1, %v5189_v8, %v5190_v19  ;;  %v9988_v63 = vpop.f32.mrb[105].mxu0  ;;  %v9992_v37 = vpop.f32.mrb[202].mxu1 }
 0x526   : > { %v5819_v46 = vsel %vm5627_vm15, %v5531_v18, %v5723_v16  ;;  %v6979_v21 = vpack.c.bf16 %v5821_v26, %v5820_v62  ;;  %v4744_v54 = vsel %vm4696_vm0, %v4738_v29, %v4743_v59  ;;  %v4981_v24 = vadd.f32 %v4743_v59, %v11024_v4  ;;  %v9994_v36 = vpop.f32.mrb[106].mxu0  ;;  %v9998_v17 = vpop.f32.mrb[203].mxu1 }
 0x527   : > { %v6978_v1 = vpack.c.bf16 %v5819_v46, %v5818_v58  ;;  %v5534_v44 = vadd.f32 %v9739_v0, %v5426_v55  ;;  %v5427_v28 = vadd.f32 %v5191_v57, %v4978_v49  ;;  %v4979_v8 = vadd.f32 %v11025_v12, %v4744_v54  ;;  %v10000_v3 = vpop.f32.mrb[107].mxu0  ;;  %v11026_v54 = vld [vmem:[#allocation20_spill] sm:$0xff] }
 0x528   : > { %v6261_v23 = vshll.u32 %v6979_v21, 16  ;;  %v5192_v62 = vrot.slane %v9951_v48, 2  ;;  %v4745_v29 = vrot.slane %v9956_v35, 1  ;;  %v5194_v25 = vrot.slane %v9958_v2, 2 }
 0x529   : > { %v6251_v18 = vshll.u32 %v6978_v1, 16  ;;  %v6255_v31 = vshrl.u32 %v6978_v1, 16  ;;  %vm5630_vm2 = vcmp.ge.f32.partialorder %v5534_v44, 0.0  ;;  %v5726_v58 = vmul.f32 0.2, %v5534_v44 }
 0x52a   : > { %v6263_v59 = vrot.slane %v6261_v23, 5  ;;  %v5535_v41 = vadd.f32 %v9749_v38, %v5427_v28  ;;  %v5193_v42 = vsel %vm5145_vm1, %v5187_v56, %v5192_v62  ;;  %v5430_v34 = vadd.f32 %v5192_v62, %v4981_v24  ;;  %v11027_v28 = vld [vmem:[#allocation22_spill] sm:$0xff] }
 0x52b   : > { %v6253_v16 = vrot.slane %v6251_v18, 5  ;;  %v6257_v61 = vrot.slane %v6255_v31, 4  ;;  %v5822_v26 = vsel %vm5630_vm2, %v5534_v44, %v5726_v58  ;;  %v5428_v55 = vadd.f32 %v5193_v42, %v4979_v8  ;;  %v10009_v49 = vpop.f32.mrb[204].mxu1 }
 0x52c   : > { %vm5631_vm3 = vcmp.ge.f32.partialorder %v5535_v41, 0.0  ;;  %v5727_v48 = vmul.f32 0.2, %v5535_v41  ;;  %v5538_v35 = vadd.f32 %v9739_v0, %v5430_v34  ;;  %v4746_v2 = vsel %vm4696_vm0, %v4741_v40, %v4745_v29  ;;  %v10011_v57 = vpop.f32.mrb[108].mxu0  ;;  %v10017_v24 = vpop.f32.mrb[205].mxu1 }
 0x52d   : > { %v6254_v46 = vsel %vm9785_vm10, %v6249_v60, %v6253_v16  ;;  %v6258_v56 = vor.u32 %v6257_v61, %v6253_v16  ;;  %v5536_v21 = vadd.f32 %v9739_v0, %v5428_v55  ;;  %v4980_v4 = vadd.f32 %v11026_v54, %v4746_v2  ;;  %v10019_v1 = vpop.f32.mrb[109].mxu0  ;;  %v3808_v8 = vpop.f32.mrb[206].mxu1 }
 0x52e   : > { %6591 = vst [vmem:[%s9803_s9 + $0x30] sm:$0xff] %v6254_v46  ;;  %v5823_v44 = vsel %vm5631_vm3, %v5535_v41, %v5727_v48  ;;  %vm5634_vm4 = vcmp.ge.f32.partialorder %v5538_v35, 0.0  ;;  %v5730_v40 = vmul.f32 0.2, %v5538_v35  ;;  %v4982_v12 = vadd.f32 %v4745_v29, %v11027_v28  ;;  %v4321_v23 = vpop.f32.mrb[110].mxu0  ;;  %v3809_v31 = vpop.f32.mrb[207].mxu1 }
 0x52f   : > { %v6259_v62 = vrot.slane %v6258_v56, 4  ;;  %v6980_v60 = vpack.c.bf16 %v5823_v44, %v5822_v26  ;;  %vm5632_vm5 = vcmp.ge.f32.partialorder %v5536_v21, 0.0  ;;  %v5728_v18 = vmul.f32 0.2, %v5536_v21  ;;  %v4322_v58 = vpop.f32.mrb[111].mxu0 }
 0x530   : > { %v5826_v42 = vsel %vm5634_vm4, %v5538_v35, %v5730_v40  ;;  %v5195_v34 = vsel %vm5145_vm1, %v5190_v19, %v5194_v25  ;;  %v5431_v16 = vadd.f32 %v5194_v25, %v4982_v12  ;;  %v4747_v41 = vrot.slane %v9978_v6, 1 }
 0x531   : > { %v6264_v29 = vsel %vm9785_vm10, %v6259_v62, %v6263_v59  ;;  %v6266_v61 = vshrl.u32 %v6980_v60, 16  ;;  %v6269_v55 = vshll.u32 %v6980_v60, 16  ;;  %v5824_v48 = vsel %vm5632_vm5, %v5536_v21, %v5728_v18 }
 0x532   : > { %6592 = vst [vmem:[%s9803_s9 + $0x38] sm:$0xff] %v6264_v29  ;;  %v5429_v26 = vadd.f32 %v5195_v34, %v4980_v4  ;;  %v5539_v2 = vadd.f32 %v9749_v38, %v5431_v16  ;;  %v5196_v46 = vrot.slane %v9980_v53, 2  ;;  %v4750_v35 = vrot.slane %v9986_v15, 1 }
 0x533   : > { %v6268_v10 = vrot.slane %v6266_v61, 4  ;;  %v6271_v56 = vrot.slane %v6269_v55, 5  ;;  %v5199_v19 = vrot.slane %v9988_v63, 2  ;;  %v4748_v6 = vrot.slane %v9992_v37, 1  ;;  %v10037_v54 = vpop.f32.mrb[208].mxu1 }
 0x534   : > { %v5537_v25 = vadd.f32 %v9749_v38, %v5429_v26  ;;  %vm5635_vm6 = vcmp.ge.f32.partialorder %v5539_v2, 0.0  ;;  %v5731_v59 = vmul.f32 0.2, %v5539_v2  ;;  %v5197_v21 = vrot.slane %v9994_v36, 2  ;;  %v10039_v4 = vpop.f32.mrb[112].mxu0  ;;  %v10044_v63 = vpop.f32.mrb[209].mxu1 }
 0x535   : > { %v6272_v44 = vor.u32 %v6271_v56, %v6268_v10  ;;  %v4749_v53 = vsel %vm4696_vm0, %v4747_v41, %v4748_v6  ;;  %v4751_v15 = vrot.slane %v9998_v17, 1  ;;  %v5200_v40 = vrot.slane %v10000_v3, 2  ;;  %v10046_v37 = vpop.f32.mrb[113].mxu0  ;;  %v10049_v8 = vpop.f32.mrb[210].mxu1 }
 0x536   : > { %vm5633_vm7 = vcmp.ge.f32.partialorder %v5537_v25, 0.0  ;;  %v5729_v28 = vmul.f32 0.2, %v5537_v25  ;;  %v5827_v12 = vsel %vm5635_vm6, %v5539_v2, %v5731_v59  ;;  %v4983_v36 = vadd.f32 %v9447_v39, %v4749_v53  ;;  %v10051_v23 = vpop.f32.mrb[114].mxu0  ;;  %v10055_v31 = vpop.f32.mrb[211].mxu1  ;;  %v11028_v59 = vld [vmem:[#allocation23_spill] sm:$0xff] }
 0x537   : > { %v6273_v62 = vrot.slane %v6272_v44, 4  ;;  %v6982_v60 = vpack.c.bf16 %v5827_v12, %v5826_v42  ;;  %v5198_v18 = vsel %vm5145_vm1, %v5196_v46, %v5197_v21  ;;  %v4752_v17 = vsel %vm4696_vm0, %v4750_v35, %v4751_v15  ;;  %v10057_v58 = vpop.f32.mrb[115].mxu0 }
 0x538   : > { %v5825_v34 = vsel %vm5633_vm7, %v5537_v25, %v5729_v28  ;;  %v5432_v16 = vadd.f32 %v5198_v18, %v4983_v36  ;;  %v4984_v41 = vadd.f32 %v9450_v30, %v4752_v17  ;;  %v5201_v39 = vsel %vm5145_vm1, %v5199_v19, %v5200_v40 }
 0x539   : > { %v6981_v29 = vpack.c.bf16 %v5825_v34, %v5824_v48  ;;  %v6285_v61 = vshll.u32 %v6982_v60, 16  ;;  %v4753_v42 = vrot.slane %v10009_v49, 1  ;;  %v5202_v55 = vrot.slane %v10011_v57, 2 }
 0x53a   : > { %v5540_v26 = vadd.f32 %v9739_v0, %v5432_v16  ;;  %v5433_v2 = vadd.f32 %v5201_v39, %v4984_v41  ;;  %v4755_v46 = vrot.slane %v10017_v24, 1  ;;  %v5204_v35 = vrot.slane %v10019_v1, 2  ;;  %v11029_v24 = vld [vmem:[#allocation25_spill] sm:$0xff] }
 0x53b   : > { %v6275_v10 = vshll.u32 %v6981_v29, 16  ;;  %v6279_v56 = vshrl.u32 %v6981_v29, 16  ;;  %v6287_v30 = vrot.slane %v6285_v61, 5  ;;  %v4754_v25 = vsel %vm4696_vm0, %v4748_v6, %v4753_v42  ;;  %v10071_v44 = vpop.f32.mrb[212].mxu1 }
 0x53c   : > { %vm5636_vm8 = vcmp.ge.f32.partialorder %v5540_v26, 0.0  ;;  %v5732_v19 = vmul.f32 0.2, %v5540_v26  ;;  %v5541_v48 = vadd.f32 %v9749_v38, %v5433_v2  ;;  %v4985_v49 = vadd.f32 %v11028_v59, %v4754_v25  ;;  %v10073_v57 = vpop.f32.mrb[116].mxu0  ;;  %v10077_v36 = vpop.f32.mrb[213].mxu1  ;;  %v11031_v25 = vld [vmem:[#allocation26_spill] sm:$0xff] }
 0x53d   : > { %v6277_v53 = vrot.slane %v6275_v10, 5  ;;  %v6281_v28 = vrot.slane %v6279_v56, 4  ;;  %v4987_v12 = vadd.f32 %v4753_v42, %v11029_v24  ;;  %v5203_v1 = vsel %vm5145_vm1, %v5197_v21, %v5202_v55  ;;  %v10079_v6 = vpop.f32.mrb[117].mxu0  ;;  %v3826_v34 = vpop.f32.mrb[214].mxu1 }
 0x53e   : > { %v5828_v60 = vsel %vm5636_vm8, %v5540_v26, %v5732_v19  ;;  %vm5637_vm9 = vcmp.ge.f32.partialorder %v5541_v48, 0.0  ;;  %v5733_v18 = vmul.f32 0.2, %v5541_v48  ;;  %v5434_v17 = vadd.f32 %v5203_v1, %v4985_v49  ;;  %v4339_v16 = vpop.f32.mrb[118].mxu0  ;;  %v3827_v42 = vpop.f32.mrb[215].mxu1  ;;  %v11030_v26 = vld [vmem:[#allocation24_spill] sm:$0xff] }
 0x53f   : > { %v6278_v41 = vsel %vm9785_vm10, %v6273_v62, %v6277_v53  ;;  %v6282_v39 = vor.u32 %v6281_v28, %v6277_v53  ;;  %v5436_v29 = vadd.f32 %v5202_v55, %v4987_v12  ;;  %v4756_v61 = vsel %vm4696_vm0, %v4751_v15, %v4755_v46  ;;  %v4340_v2 = vpop.f32.mrb[119].mxu0 }
 0x540   : > { %6593 = vst [vmem:[%s9803_s9 + $0x40] sm:$0xff] %v6278_v41  ;;  %v5829_v21 = vsel %vm5637_vm9, %v5541_v48, %v5733_v18  ;;  %v5542_v10 = vadd.f32 %v9739_v0, %v5434_v17  ;;  %v4986_v56 = vadd.f32 %v11030_v26, %v4756_v61  ;;  %v4988_v19 = vadd.f32 %v4755_v46, %v11031_v25 }
 0x541   : > { %v6283_v59 = vrot.slane %v6282_v39, 4  ;;  %v6983_v49 = vpack.c.bf16 %v5829_v21, %v5828_v60  ;;  %v5544_v24 = vadd.f32 %v9739_v0, %v5436_v29  ;;  %v5205_v62 = vsel %vm5145_vm1, %v5200_v40, %v5204_v35 }
 0x542   : > { %vm5638_vm11 = vcmp.ge.f32.partialorder %v5542_v10, 0.0  ;;  %v5734_v15 = vmul.f32 0.2, %v5542_v10  ;;  %v5435_v55 = vadd.f32 %v5205_v62, %v4986_v56  ;;  %v5437_v53 = vadd.f32 %v5204_v35, %v4988_v19 }
 0x543   : > { %v6288_v48 = vsel %vm9785_vm10, %v6283_v59, %v6287_v30  ;;  %v6290_v28 = vshrl.u32 %v6983_v49, 16  ;;  %v6293_v12 = vshll.u32 %v6983_v49, 16  ;;  %vm5640_vm12 = vcmp.ge.f32.partialorder %v5544_v24, 0.0  ;;  %v10097_v3 = vpop.f32.mrb[216].mxu1 }
 0x544   : > { %6594 = vst [vmem:[%s9803_s9 + $0x48] sm:$0xff] %v6288_v48  ;;  %v5736_v46 = vmul.f32 0.2, %v5544_v24  ;;  %v5830_v1 = vsel %vm5638_vm11, %v5542_v10, %v5734_v15  ;;  %v5543_v60 = vadd.f32 %v9749_v38, %v5435_v55  ;;  %v5545_v18 = vadd.f32 %v9749_v38, %v5437_v53  ;;  %v10099_v40 = vpop.f32.mrb[120].mxu0  ;;  %v10103_v16 = vpop.f32.mrb[217].mxu1 }
 0x545   : > { %v6292_v17 = vrot.slane %v6290_v28, 4  ;;  %v6295_v34 = vrot.slane %v6293_v12, 5  ;;  %v4757_v35 = vrot.slane %v10037_v54, 1  ;;  %v5206_v30 = vrot.slane %v10039_v4, 2  ;;  %v10105_v41 = vpop.f32.mrb[121].mxu0  ;;  %v10107_v61 = vpop.f32.mrb[218].mxu1 }
 0x546   : > { %v5832_v39 = vsel %vm5640_vm12, %v5544_v24, %v5736_v46  ;;  %vm5639_vm13 = vcmp.ge.f32.partialorder %v5543_v60, 0.0  ;;  %vm5641_vm14 = vcmp.ge.f32.partialorder %v5545_v18, 0.0  ;;  %v5735_v29 = vmul.f32 0.2, %v5543_v60  ;;  %v10109_v42 = vpop.f32.mrb[122].mxu0  ;;  %v10113_v26 = vpop.f32.mrb[219].mxu1 }
 0x547   : > { %v6296_v2 = vor.u32 %v6295_v34, %v6292_v17  ;;  %v5737_v21 = vmul.f32 0.2, %v5545_v18  ;;  %v4760_v10 = vrot.slane %v10044_v63, 1  ;;  %v5209_v54 = vrot.slane %v10046_v37, 2  ;;  %v10115_v4 = vpop.f32.mrb[123].mxu0 }
 0x548   : > { %v5831_v56 = vsel %vm5639_vm13, %v5543_v60, %v5735_v29  ;;  %v4758_v25 = vrot.slane %v10049_v8, 1  ;;  %v5207_v19 = vrot.slane %v10051_v23, 2  ;;  %v4761_v59 = vrot.slane %v10055_v31, 1  ;;  %v11032_v29 = vld [vmem:[#allocation29_spill] sm:$0xff] }
 0x549   : > { %v6297_v49 = vrot.slane %v6296_v2, 4  ;;  %v5833_v24 = vsel %vm5641_vm14, %v5545_v18, %v5737_v21  ;;  %v6984_v62 = vpack.c.bf16 %v5831_v56, %v5830_v1  ;;  %v5210_v15 = vrot.slane %v10057_v58, 2 }
 0x54a   : > { %v6985_v55 = vpack.c.bf16 %v5833_v24, %v5832_v39  ;;  %v4759_v63 = vsel %vm4696_vm0, %v4757_v35, %v4758_v25  ;;  %v5208_v37 = vsel %vm5145_vm1, %v5206_v30, %v5207_v19  ;;  %v4762_v53 = vsel %vm4696_vm0, %v4760_v10, %v4761_v59 }
 0x54b   : > { %v6299_v48 = vshll.u32 %v6984_v62, 16  ;;  %v6303_v28 = vshrl.u32 %v6984_v62, 16  ;;  %v4989_v8 = vadd.f32 %v9473_v32, %v4759_v63  ;;  %v4990_v23 = vadd.f32 %v9476_v45, %v4762_v53  ;;  %v10129_v1 = vpop.f32.mrb[220].mxu1  ;;  %v11033_v63 = vld [vmem:[#allocation27_spill] sm:$0xff] }
 0x54c   : > { %v6309_v12 = vshll.u32 %v6985_v55, 16  ;;  %v5211_v31 = vsel %vm5145_vm1, %v5209_v54, %v5210_v15  ;;  %v4763_v46 = vrot.slane %v10071_v44, 1  ;;  %v5212_v58 = vrot.slane %v10073_v57, 2  ;;  %v10131_v60 = vpop.f32.mrb[124].mxu0  ;;  %v10133_v30 = vpop.f32.mrb[221].mxu1 }
 0x54d   : > { %v6301_v18 = vrot.slane %v6299_v48, 5  ;;  %v6305_v17 = vrot.slane %v6303_v28, 4  ;;  %v5438_v34 = vadd.f32 %v5208_v37, %v4989_v8  ;;  %v5439_v35 = vadd.f32 %v5211_v31, %v4990_v23  ;;  %v10135_v32 = vpop.f32.mrb[125].mxu0  ;;  %v3844_v2 = vpop.f32.mrb[222].mxu1 }
 0x54e   : > { %v6311_v45 = vrot.slane %v6309_v12, 5  ;;  %v4764_v39 = vsel %vm4696_vm0, %v4758_v25, %v4763_v46  ;;  %v4993_v44 = vadd.f32 %v4763_v46, %v11032_v29  ;;  %v5213_v57 = vsel %vm5145_vm1, %v5207_v19, %v5212_v58  ;;  %v4357_v21 = vpop.f32.mrb[126].mxu0  ;;  %v3845_v62 = vpop.f32.mrb[223].mxu1 }
 0x54f   : > { %v6302_v10 = vsel %vm9785_vm10, %v6297_v49, %v6301_v18  ;;  %v6306_v54 = vor.u32 %v6305_v17, %v6301_v18  ;;  %v5546_v56 = vadd.f32 %v9739_v0, %v5438_v34  ;;  %v5547_v24 = vadd.f32 %v9749_v38, %v5439_v35  ;;  %v4358_v55 = vpop.f32.mrb[127].mxu0  ;;  %v11034_v18 = vld [vmem:[#allocation28_spill] sm:$0xff]  ;;  %v11035_v17 = vld [vmem:[#allocation30_spill] sm:$0xff] }
 0x550   : > { %6595 = vst [vmem:[%s9803_s9 + $0x50] sm:$0xff] %v6302_v10  ;;  %v4991_v37 = vadd.f32 %v11033_v63, %v4764_v39  ;;  %v5442_v25 = vadd.f32 %v5212_v58, %v4993_v44  ;;  %v4765_v53 = vrot.slane %v10077_v36, 1  ;;  %v5214_v19 = vrot.slane %v10079_v6, 2 }
 0x551   : > { %v6307_v48 = vrot.slane %v6306_v54, 4  ;;  %vm5642_vm15 = vcmp.ge.f32.partialorder %v5546_v56, 0.0  ;;  %v5738_v28 = vmul.f32 0.2, %v5546_v56  ;;  %vm5643_vm2 = vcmp.ge.f32.partialorder %v5547_v24, 0.0 }
 0x552   : > { %v5739_v49 = vmul.f32 0.2, %v5547_v24  ;;  %v5440_v8 = vadd.f32 %v5213_v57, %v4991_v37  ;;  %v5550_v23 = vadd.f32 %v9739_v0, %v5442_v25  ;;  %v4766_v12 = vsel %vm4696_vm0, %v4761_v59, %v4765_v53 }
 0x553   : > { %v6312_v31 = vsel %vm9785_vm10, %v6307_v48, %v6311_v45  ;;  %v5834_v46 = vsel %vm5642_vm15, %v5546_v56, %v5738_v28  ;;  %v4992_v58 = vadd.f32 %v11034_v18, %v4766_v12  ;;  %v4994_v36 = vadd.f32 %v4765_v53, %v11035_v17  ;;  %v10156_v39 = vpop.f32.mrb[224].mxu1 }
 0x554   : > { %6596 = vst [vmem:[%s9803_s9 + $0x58] sm:$0xff] %v6312_v31  ;;  %v5835_v6 = vsel %vm5643_vm2, %v5547_v24, %v5739_v49  ;;  %v5548_v34 = vadd.f32 %v9739_v0, %v5440_v8  ;;  %vm5646_vm3 = vcmp.ge.f32.partialorder %v5550_v23, 0.0  ;;  %v5742_v35 = vmul.f32 0.2, %v5550_v23  ;;  %v10158_v29 = vpop.f32.mrb[128].mxu0  ;;  %v10162_v2 = vpop.f32.mrb[225].mxu1 }
 0x555   : > { %v6986_v44 = vpack.c.bf16 %v5835_v6, %v5834_v46  ;;  %v5215_v59 = vsel %vm5145_vm1, %v5210_v15, %v5214_v19  ;;  %v5443_v57 = vadd.f32 %v5214_v19, %v4994_v36  ;;  %v4767_v45 = vrot.slane %v10097_v3, 1  ;;  %v10164_v21 = vpop.f32.mrb[129].mxu0  ;;  %v10166_v24 = vpop.f32.mrb[226].mxu1 }
 0x556   : > { %vm5644_vm4 = vcmp.ge.f32.partialorder %v5548_v34, 0.0  ;;  %v5740_v10 = vmul.f32 0.2, %v5548_v34  ;;  %v5838_v54 = vsel %vm5646_vm3, %v5550_v23, %v5742_v35  ;;  %v5441_v56 = vadd.f32 %v5215_v59, %v4992_v58  ;;  %v10168_v62 = vpop.f32.mrb[130].mxu0  ;;  %v10172_v25 = vpop.f32.mrb[227].mxu1 }
 0x557   : > { %v6314_v55 = vshrl.u32 %v6986_v44, 16  ;;  %v6317_v63 = vshll.u32 %v6986_v44, 16  ;;  %v5551_v37 = vadd.f32 %v9749_v38, %v5443_v57  ;;  %v5216_v15 = vrot.slane %v10099_v40, 2  ;;  %v10174_v3 = vpop.f32.mrb[131].mxu0 }
 0x558   : > { %v5836_v53 = vsel %vm5644_vm4, %v5548_v34, %v5740_v10  ;;  %v5549_v19 = vadd.f32 %v9749_v38, %v5441_v56  ;;  %v4770_v48 = vrot.slane %v10103_v16, 1  ;;  %v5219_v28 = vrot.slane %v10105_v41, 2 }
 0x559   : > { %v6316_v49 = vrot.slane %v6314_v55, 4  ;;  %v6319_v8 = vrot.slane %v6317_v63, 5  ;;  %vm5647_vm5 = vcmp.ge.f32.partialorder %v5551_v37, 0.0  ;;  %v5743_v23 = vmul.f32 0.2, %v5551_v37 }
 0x55a   : > { %vm5645_vm6 = vcmp.ge.f32.partialorder %v5549_v19, 0.0  ;;  %v5741_v12 = vmul.f32 0.2, %v5549_v19  ;;  %v4768_v31 = vrot.slane %v10107_v61, 1  ;;  %v5217_v40 = vrot.slane %v10109_v42, 2 }
 0x55b   : > { %v6320_v46 = vor.u32 %v6319_v8, %v6316_v49  ;;  %v5839_v18 = vsel %vm5647_vm5, %v5551_v37, %v5743_v23  ;;  %v4771_v58 = vrot.slane %v10113_v26, 1  ;;  %v5220_v17 = vrot.slane %v10115_v4, 2  ;;  %v10185_v34 = vpop.f32.mrb[228].mxu1  ;;  %v11036_v23 = vld [vmem:[#allocation33_spill] sm:$0xff] }
 0x55c   : > { %v5837_v36 = vsel %vm5645_vm6, %v5549_v19, %v5741_v12  ;;  %v6988_v16 = vpack.c.bf16 %v5839_v18, %v5838_v54  ;;  %v4769_v41 = vsel %vm4696_vm0, %v4767_v45, %v4768_v31  ;;  %v5218_v6 = vsel %vm5145_vm1, %v5216_v15, %v5217_v40  ;;  %v10187_v35 = vpop.f32.mrb[132].mxu0  ;;  %v10191_v57 = vpop.f32.mrb[229].mxu1  ;;  %v11037_v18 = vld [vmem:[#allocation31_spill] sm:$0xff] }
 0x55d   : > { %v6321_v44 = vrot.slane %v6320_v46, 4  ;;  %v6987_v61 = vpack.c.bf16 %v5837_v36, %v5836_v53  ;;  %v4995_v42 = vadd.f32 %v9499_v22, %v4769_v41  ;;  %v4772_v59 = vsel %vm4696_vm0, %v4770_v48, %v4771_v58  ;;  %v10193_v26 = vpop.f32.mrb[133].mxu0  ;;  %v3862_v55 = vpop.f32.mrb[230].mxu1 }
 0x55e   : > { %v6333_v10 = vshll.u32 %v6988_v16, 16  ;;  %v4996_v54 = vadd.f32 %v9502_v14, %v4772_v59  ;;  %v5221_v45 = vsel %vm5145_vm1, %v5219_v28, %v5220_v17  ;;  %v4773_v56 = vrot.slane %v10129_v1, 1  ;;  %v4375_v63 = vpop.f32.mrb[134].mxu0  ;;  %v3863_v19 = vpop.f32.mrb[231].mxu1 }
 0x55f   : > { %v6323_v37 = vshll.u32 %v6987_v61, 16  ;;  %v6327_v15 = vshrl.u32 %v6987_v61, 16  ;;  %v5444_v22 = vadd.f32 %v5218_v6, %v4995_v42  ;;  %v5222_v53 = vrot.slane %v10131_v60, 2  ;;  %v4376_v48 = vpop.f32.mrb[135].mxu0  ;;  %v11038_v63 = vld [vmem:[#allocation34_spill] sm:$0xff] }
 0x560   : > { %v6335_v49 = vrot.slane %v6333_v10, 5  ;;  %v5445_v8 = vadd.f32 %v5221_v45, %v4996_v54  ;;  %v4774_v14 = vsel %vm4696_vm0, %v4768_v31, %v4773_v56  ;;  %v4999_v12 = vadd.f32 %v4773_v56, %v11036_v23  ;;  %v11039_v23 = vld [vmem:[#allocation32_spill] sm:$0xff] }
 0x561   : > { %v6325_v46 = vrot.slane %v6323_v37, 5  ;;  %v6329_v28 = vrot.slane %v6327_v15, 4  ;;  %v5552_v1 = vadd.f32 %v9739_v0, %v5444_v22  ;;  %v4997_v36 = vadd.f32 %v11037_v18, %v4774_v14 }
 0x562   : > { %v5553_v16 = vadd.f32 %v9749_v38, %v5445_v8  ;;  %v5223_v41 = vsel %vm5145_vm1, %v5217_v40, %v5222_v53  ;;  %v5448_v60 = vadd.f32 %v5222_v53, %v4999_v12  ;;  %v4775_v6 = vrot.slane %v10133_v30, 1 }
 0x563   : > { %v6326_v61 = vsel %vm9785_vm10, %v6321_v44, %v6325_v46  ;;  %v6330_v42 = vor.u32 %v6329_v28, %v6325_v46  ;;  %vm5648_vm7 = vcmp.ge.f32.partialorder %v5552_v1, 0.0  ;;  %v5744_v31 = vmul.f32 0.2, %v5552_v1  ;;  %v10212_v45 = vpop.f32.mrb[232].mxu1 }
 0x564   : > { %6597 = vst [vmem:[%s9803_s9 + $0x60] sm:$0xff] %v6326_v61  ;;  %vm5649_vm8 = vcmp.ge.f32.partialorder %v5553_v16, 0.0  ;;  %v5745_v59 = vmul.f32 0.2, %v5553_v16  ;;  %v5446_v10 = vadd.f32 %v5223_v41, %v4997_v36  ;;  %v5556_v54 = vadd.f32 %v9739_v0, %v5448_v60  ;;  %v10214_v56 = vpop.f32.mrb[136].mxu0  ;;  %v10218_v37 = vpop.f32.mrb[233].mxu1 }
 0x565   : > { %v6331_v40 = vrot.slane %v6330_v42, 4  ;;  %v5840_v55 = vsel %vm5648_vm7, %v5552_v1, %v5744_v31  ;;  %v4776_v30 = vsel %vm4696_vm0, %v4771_v58, %v4775_v6  ;;  %v5000_v44 = vadd.f32 %v4775_v6, %v11038_v63  ;;  %v10220_v15 = vpop.f32.mrb[137].mxu0  ;;  %v10223_v48 = vpop.f32.mrb[234].mxu1 }
 0x566   : > { %v5841_v22 = vsel %vm5649_vm8, %v5553_v16, %v5745_v59  ;;  %v5554_v53 = vadd.f32 %v9739_v0, %v5446_v10  ;;  %vm5652_vm9 = vcmp.ge.f32.partialorder %v5556_v54, 0.0  ;;  %v5748_v19 = vmul.f32 0.2, %v5556_v54  ;;  %v10225_v8 = vpop.f32.mrb[138].mxu0  ;;  %v10231_v28 = vpop.f32.mrb[235].mxu1 }
 0x567   : > { %v6336_v14 = vsel %vm9785_vm10, %v6331_v40, %v6335_v49  ;;  %v6989_v58 = vpack.c.bf16 %v5841_v22, %v5840_v55  ;;  %v4998_v12 = vadd.f32 %v11039_v23, %v4776_v30  ;;  %v5224_v46 = vrot.slane %v10135_v32, 2  ;;  %v10233_v1 = vpop.f32.mrb[139].mxu0 }
 0x568   : > { %6598 = vst [vmem:[%s9803_s9 + $0x68] sm:$0xff] %v6336_v14  ;;  %vm5650_vm11 = vcmp.ge.f32.partialorder %v5554_v53, 0.0  ;;  %v5746_v18 = vmul.f32 0.2, %v5554_v53  ;;  %v5844_v36 = vsel %vm5652_vm9, %v5556_v54, %v5748_v19  ;;  %v4777_v16 = vrot.slane %v10156_v39, 1 }
 0x569   : > { %v6338_v41 = vshrl.u32 %v6989_v58, 16  ;;  %v6341_v60 = vshll.u32 %v6989_v58, 16  ;;  %v5225_v49 = vsel %vm5145_vm1, %v5220_v17, %v5224_v46  ;;  %v5449_v6 = vadd.f32 %v5224_v46, %v5000_v44 }
 0x56a   : > { %v5842_v61 = vsel %vm5650_vm11, %v5554_v53, %v5746_v18  ;;  %v5447_v42 = vadd.f32 %v5225_v49, %v4998_v12  ;;  %v5226_v32 = vrot.slane %v10158_v29, 2  ;;  %v4780_v31 = vrot.slane %v10162_v2, 1 }
 0x56b   : > { %v6340_v59 = vrot.slane %v6338_v41, 4  ;;  %v6343_v10 = vrot.slane %v6341_v60, 5  ;;  %v5557_v40 = vadd.f32 %v9749_v38, %v5449_v6  ;;  %v5229_v54 = vrot.slane %v10164_v21, 2  ;;  %v10248_v30 = vpop.f32.mrb[236].mxu1 }
 0x56c   : > { %v5555_v39 = vadd.f32 %v9749_v38, %v5447_v42  ;;  %v4778_v55 = vrot.slane %v10166_v24, 1  ;;  %v5227_v4 = vrot.slane %v10168_v62, 2  ;;  %v4781_v17 = vrot.slane %v10172_v25, 1  ;;  %v10250_v63 = vpop.f32.mrb[140].mxu0  ;;  %v10253_v22 = vpop.f32.mrb[237].mxu1 }
 0x56d   : > { %v6344_v29 = vor.u32 %v6343_v10, %v6340_v59  ;;  %vm5653_vm12 = vcmp.ge.f32.partialorder %v5557_v40, 0.0  ;;  %v5749_v2 = vmul.f32 0.2, %v5557_v40  ;;  %v5230_v44 = vrot.slane %v10174_v3, 2  ;;  %v10255_v21 = vpop.f32.mrb[141].mxu0  ;;  %v3880_v19 = vpop.f32.mrb[238].mxu1 }
 0x56e   : > { %vm5651_vm13 = vcmp.ge.f32.partialorder %v5555_v39, 0.0  ;;  %v5747_v53 = vmul.f32 0.2, %v5555_v39  ;;  %v4779_v24 = vsel %vm4696_vm0, %v4777_v16, %v4778_v55  ;;  %v5228_v62 = vsel %vm5145_vm1, %v5226_v32, %v5227_v4  ;;  %v4393_v14 = vpop.f32.mrb[142].mxu0  ;;  %v3881_v18 = vpop.f32.mrb[239].mxu1 }
 0x56f   : > { %v6345_v58 = vrot.slane %v6344_v29, 4  ;;  %v5845_v23 = vsel %vm5653_vm12, %v5557_v40, %v5749_v2  ;;  %v5001_v12 = vadd.f32 %v9525_v51, %v4779_v24  ;;  %v4782_v46 = vsel %vm4696_vm0, %v4780_v31, %v4781_v17  ;;  %v4394_v41 = vpop.f32.mrb[143].mxu0 }
 0x570   : > { %v5843_v60 = vsel %vm5651_vm13, %v5555_v39, %v5747_v53  ;;  %v6991_v49 = vpack.c.bf16 %v5845_v23, %v5844_v36  ;;  %v5002_v6 = vadd.f32 %v9528_v43, %v4782_v46  ;;  %v5231_v16 = vsel %vm5145_vm1, %v5229_v54, %v5230_v44 }
 0x571   : > { %v6990_v42 = vpack.c.bf16 %v5843_v60, %v5842_v61  ;;  %v5450_v32 = vadd.f32 %v5228_v62, %v5001_v12  ;;  %v4783_v59 = vrot.slane %v10185_v34, 1  ;;  %v5232_v51 = vrot.slane %v10187_v35, 2 }
 0x572   : > { %v6357_v10 = vshll.u32 %v6991_v49, 16  ;;  %v5451_v40 = vadd.f32 %v5231_v16, %v5002_v6  ;;  %v4785_v31 = vrot.slane %v10191_v57, 1  ;;  %v5234_v29 = vrot.slane %v10193_v26, 2 }
 0x573   : > { %v6347_v39 = vshll.u32 %v6990_v42, 16  ;;  %v6351_v36 = vshrl.u32 %v6990_v42, 16  ;;  %v5558_v43 = vadd.f32 %v9739_v0, %v5450_v32  ;;  %v4784_v2 = vsel %vm4696_vm0, %v4778_v55, %v4783_v59  ;;  %v10276_v35 = vpop.f32.mrb[240].mxu1 }
 0x574   : > { %v6359_v53 = vrot.slane %v6357_v10, 5  ;;  %v5559_v61 = vadd.f32 %v9749_v38, %v5451_v40  ;;  %v5003_v54 = vadd.f32 %v9531_v27, %v4784_v2  ;;  %v5005_v34 = vadd.f32 %v4783_v59, %v9541_v47  ;;  %v10278_v24 = vpop.f32.mrb[144].mxu0  ;;  %v10280_v19 = vpop.f32.mrb[241].mxu1 }
 0x575   : > { %v6349_v57 = vrot.slane %v6347_v39, 5  ;;  %v6353_v62 = vrot.slane %v6351_v36, 4  ;;  %vm5654_vm14 = vcmp.ge.f32.partialorder %v5558_v43, 0.0  ;;  %v5750_v26 = vmul.f32 0.2, %v5558_v43  ;;  %v10283_v12 = vpop.f32.mrb[145].mxu0 }
 0x576   : > { %vm5655_vm15 = vcmp.ge.f32.partialorder %v5559_v61, 0.0  ;;  %v5751_v55 = vmul.f32 0.2, %v5559_v61  ;;  %v5233_v14 = vsel %vm5145_vm1, %v5227_v4, %v5232_v51  ;;  %v5454_v23 = vadd.f32 %v5232_v51, %v5005_v34  ;;  %v10285_v27 = vpop.f32.mrb[242].mxu1  ;;  %v10289_v60 = vpop.f32.mrb[146].mxu0 }
 0x577   : > { %v6350_v47 = vsel %vm9785_vm10, %v6345_v58, %v6349_v57  ;;  %v6354_v46 = vor.u32 %v6353_v62, %v6349_v57  ;;  %v5846_v18 = vsel %vm5654_vm14, %v5558_v43, %v5750_v26  ;;  %v5452_v41 = vadd.f32 %v5233_v14, %v5003_v54  ;;  %v10291_v49 = vpop.f32.mrb[243].mxu1  ;;  %v10299_v32 = vpop.f32.mrb[147].mxu0 }
 0x578   : > { %6599 = vst [vmem:[%s9803_s9 + $0x70] sm:$0xff] %v6350_v47  ;;  %v5847_v6 = vsel %vm5655_vm15, %v5559_v61, %v5751_v55  ;;  %v5562_v16 = vadd.f32 %v9739_v0, %v5454_v23  ;;  %v4786_v4 = vsel %vm4696_vm0, %v4781_v17, %v4785_v31  ;;  %v5006_v42 = vadd.f32 %v4785_v31, %v9544_v52 }
 0x579   : > { %v6355_v58 = vrot.slane %v6354_v46, 4  ;;  %v6992_v59 = vpack.c.bf16 %v5847_v6, %v5846_v18  ;;  %v5560_v51 = vadd.f32 %v9739_v0, %v5452_v41  ;;  %v5004_v10 = vadd.f32 %v9534_v9, %v4786_v4 }
 0x57a   : > { %vm5658_vm2 = vcmp.ge.f32.partialorder %v5562_v16, 0.0  ;;  %v5754_v40 = vmul.f32 0.2, %v5562_v16  ;;  %v5235_v39 = vsel %vm5145_vm1, %v5230_v44, %v5234_v29  ;;  %v5455_v25 = vadd.f32 %v5234_v29, %v5006_v42 }
 0x57b   : > { %v6360_v17 = vsel %vm9785_vm10, %v6355_v58, %v6359_v53  ;;  %v6362_v36 = vshrl.u32 %v6992_v59, 16  ;;  %v6365_v52 = vshll.u32 %v6992_v59, 16  ;;  %vm5656_vm3 = vcmp.ge.f32.partialorder %v5560_v51, 0.0  ;;  %v10310_v9 = vpop.f32.mrb[244].mxu1 }
 0x57c   : > { %6600 = vst [vmem:[%s9803_s9 + $0x78] sm:$0xff] %v6360_v17  ;;  %v5752_v31 = vmul.f32 0.2, %v5560_v51  ;;  %v5850_v43 = vsel %vm5658_vm2, %v5562_v16, %v5754_v40  ;;  %v5453_v2 = vadd.f32 %v5235_v39, %v5004_v10  ;;  %v5563_v61 = vadd.f32 %v9749_v38, %v5455_v25  ;;  %v10312_v54 = vpop.f32.mrb[148].mxu0  ;;  %v10316_v53 = vpop.f32.mrb[245].mxu1 }
 0x57d   : > { %v6364_v3 = vrot.slane %v6362_v36, 4  ;;  %v6367_v34 = vrot.slane %v6365_v52, 5  ;;  %v4787_v44 = vrot.slane %v10212_v45, 1  ;;  %v5236_v29 = vrot.slane %v10214_v56, 2  ;;  %v10318_v57 = vpop.f32.mrb[149].mxu0  ;;  %v3898_v14 = vpop.f32.mrb[246].mxu1 }
 0x57e   : > { %v5848_v62 = vsel %vm5656_vm3, %v5560_v51, %v5752_v31  ;;  %v5561_v26 = vadd.f32 %v9749_v38, %v5453_v2  ;;  %vm5659_vm4 = vcmp.ge.f32.partialorder %v5563_v61, 0.0  ;;  %v5755_v55 = vmul.f32 0.2, %v5563_v61  ;;  %v4411_v23 = vpop.f32.mrb[150].mxu0  ;;  %v3899_v41 = vpop.f32.mrb[247].mxu1 }
 0x57f   : > { %v6368_v47 = vor.u32 %v6367_v34, %v6364_v3  ;;  %v4790_v46 = vrot.slane %v10218_v37, 1  ;;  %v5239_v18 = vrot.slane %v10220_v15, 2  ;;  %v4788_v45 = vrot.slane %v10223_v48, 1  ;;  %v4412_v56 = vpop.f32.mrb[151].mxu0 }
 0x580   : > { %vm5657_vm5 = vcmp.ge.f32.partialorder %v5561_v26, 0.0  ;;  %v5753_v6 = vmul.f32 0.2, %v5561_v26  ;;  %v5851_v16 = vsel %vm5659_vm4, %v5563_v61, %v5755_v55  ;;  %v5237_v4 = vrot.slane %v10225_v8, 2 }
 0x581   : > { %v6369_v42 = vrot.slane %v6368_v47, 4  ;;  %v6994_v58 = vpack.c.bf16 %v5851_v16, %v5850_v43  ;;  %v4789_v59 = vsel %vm4696_vm0, %v4787_v44, %v4788_v45  ;;  %v4791_v51 = vrot.slane %v10231_v28, 1 }
 0x582   : > { %v5849_v10 = vsel %vm5657_vm5, %v5561_v26, %v5753_v6  ;;  %v5007_v37 = vadd.f32 %v9551_v5, %v4789_v59  ;;  %v5238_v15 = vsel %vm5145_vm1, %v5236_v29, %v5237_v4  ;;  %v5240_v48 = vrot.slane %v10233_v1, 2 }
 0x583   : > { %v6993_v40 = vpack.c.bf16 %v5849_v10, %v5848_v62  ;;  %v6381_v39 = vshll.u32 %v6994_v58, 16  ;;  %v4792_v25 = vsel %vm4696_vm0, %v4790_v46, %v4791_v51  ;;  %v4793_v17 = vrot.slane %v10248_v30, 1  ;;  %v10335_v31 = vpop.f32.mrb[248].mxu1 }
 0x584   : > { %v5456_v8 = vadd.f32 %v5238_v15, %v5007_v37  ;;  %v5008_v36 = vadd.f32 %v9554_v33, %v4792_v25  ;;  %v5241_v52 = vsel %vm5145_vm1, %v5239_v18, %v5240_v48  ;;  %v5242_v28 = vrot.slane %v10250_v63, 2  ;;  %v10337_v5 = vpop.f32.mrb[152].mxu0  ;;  %v10340_v3 = vpop.f32.mrb[249].mxu1  ;;  %v11040_v37 = vld [vmem:[#allocation35_spill] sm:$0xff] }
 0x585   : > { %v6371_v43 = vshll.u32 %v6993_v40, 16  ;;  %v6375_v2 = vshrl.u32 %v6993_v40, 16  ;;  %v6383_v1 = vrot.slane %v6381_v39, 5  ;;  %v4794_v61 = vsel %vm4696_vm0, %v4788_v45, %v4793_v17  ;;  %v10342_v34 = vpop.f32.mrb[153].mxu0  ;;  %v10347_v29 = vpop.f32.mrb[250].mxu1 }
 0x586   : > { %v5564_v30 = vadd.f32 %v9739_v0, %v5456_v8  ;;  %v5457_v33 = vadd.f32 %v5241_v52, %v5008_v36  ;;  %v5009_v44 = vadd.f32 %v9557_v7, %v4794_v61  ;;  %v5011_v63 = vadd.f32 %v4793_v17, %v9567_v11  ;;  %v10349_v62 = vpop.f32.mrb[154].mxu0  ;;  %v10353_v47 = vpop.f32.mrb[251].mxu1 }
 0x587   : > { %v6373_v26 = vrot.slane %v6371_v43, 5  ;;  %v6377_v55 = vrot.slane %v6375_v2, 4  ;;  %v5243_v14 = vsel %vm5145_vm1, %v5237_v4, %v5242_v28  ;;  %v4795_v23 = vrot.slane %v10253_v22, 1  ;;  %v10355_v46 = vpop.f32.mrb[155].mxu0 }
 0x588   : > { %vm5660_vm6 = vcmp.ge.f32.partialorder %v5564_v30, 0.0  ;;  %v5756_v18 = vmul.f32 0.2, %v5564_v30  ;;  %v5565_v7 = vadd.f32 %v9749_v38, %v5457_v33  ;;  %v5458_v11 = vadd.f32 %v5243_v14, %v5009_v44 }
 0x589   : > { %v6374_v45 = vsel %vm9785_vm10, %v6369_v42, %v6373_v26  ;;  %v6378_v41 = vor.u32 %v6377_v55, %v6373_v26  ;;  %v5460_v56 = vadd.f32 %v5242_v28, %v5011_v63  ;;  %v4796_v6 = vsel %vm4696_vm0, %v4791_v51, %v4795_v23 }
 0x58a   : > { %6601 = vst [vmem:[%s9803_s9 + $0x80] sm:$0xff] %v6374_v45  ;;  %v5852_v16 = vsel %vm5660_vm6, %v5564_v30, %v5756_v18  ;;  %vm5661_vm7 = vcmp.ge.f32.partialorder %v5565_v7, 0.0  ;;  %v5757_v22 = vmul.f32 0.2, %v5565_v7  ;;  %v5566_v4 = vadd.f32 %v9739_v0, %v5458_v11 }
 0x58b   : > { %v6379_v58 = vrot.slane %v6378_v41, 4  ;;  %v5568_v59 = vadd.f32 %v9739_v0, %v5460_v56  ;;  %v5010_v10 = vadd.f32 %v9560_v20, %v4796_v6  ;;  %v5012_v15 = vadd.f32 %v4795_v23, %v11040_v37  ;;  %v10367_v51 = vpop.f32.mrb[252].mxu1 }
 0x58c   : > { %v5853_v40 = vsel %vm5661_vm7, %v5565_v7, %v5757_v22  ;;  %vm5662_vm8 = vcmp.ge.f32.partialorder %v5566_v4, 0.0  ;;  %v5758_v42 = vmul.f32 0.2, %v5566_v4  ;;  %v5244_v39 = vrot.slane %v10255_v21, 2  ;;  %v10369_v25 = vpop.f32.mrb[156].mxu0  ;;  %v10373_v52 = vpop.f32.mrb[253].mxu1 }
 0x58d   : > { %v6384_v17 = vsel %vm9785_vm10, %v6379_v58, %v6383_v1  ;;  %v6995_v8 = vpack.c.bf16 %v5853_v40, %v5852_v16  ;;  %vm5664_vm9 = vcmp.ge.f32.partialorder %v5568_v59, 0.0  ;;  %v5760_v36 = vmul.f32 0.2, %v5568_v59  ;;  %v10375_v20 = vpop.f32.mrb[157].mxu0  ;;  %v3916_v61 = vpop.f32.mrb[254].mxu1 }
 0x58e   : > { %6602 = vst [vmem:[%s9803_s9 + $0x88] sm:$0xff] %v6384_v17  ;;  %v5854_v28 = vsel %vm5662_vm8, %v5566_v4, %v5758_v42  ;;  %v5245_v43 = vsel %vm5145_vm1, %v5240_v48, %v5244_v39  ;;  %v5461_v2 = vadd.f32 %v5244_v39, %v5012_v15  ;;  %v4797_v21 = vrot.slane %v10276_v35, 1  ;;  %v4429_v30 = vpop.f32.mrb[158].mxu0  ;;  %v3917_v26 = vpop.f32.mrb[255].mxu1 }
 0x58f   : > { %v6386_v33 = vshrl.u32 %v6995_v8, 16  ;;  %v6389_v44 = vshll.u32 %v6995_v8, 16  ;;  %v5856_v63 = vsel %vm5664_vm9, %v5568_v59, %v5760_v36  ;;  %v5459_v1 = vadd.f32 %v5245_v43, %v5010_v10  ;;  %v4430_v55 = vpop.f32.mrb[159].mxu0 }
 0x590   : > { %v5569_v14 = vadd.f32 %v9749_v38, %v5461_v2  ;;  %v5246_v23 = vrot.slane %v10278_v24, 2  ;;  %v4800_v18 = vrot.slane %v10280_v19, 1  ;;  %v5249_v7 = vrot.slane %v10283_v12, 2 }
 0x591   : > { %v6388_v48 = vrot.slane %v6386_v33, 4  ;;  %v6391_v11 = vrot.slane %v6389_v44, 5  ;;  %v5567_v35 = vadd.f32 %v9749_v38, %v5459_v1  ;;  %v4798_v45 = vrot.slane %v10285_v27, 1 }
 0x592   : > { %vm5665_vm11 = vcmp.ge.f32.partialorder %v5569_v14, 0.0  ;;  %v5761_v41 = vmul.f32 0.2, %v5569_v14  ;;  %v5247_v56 = vrot.slane %v10289_v60, 2  ;;  %v4801_v6 = vrot.slane %v10291_v49, 1  ;;  %v11041_v49 = vld [vmem:[#allocation36_spill] sm:$0xff] }
 0x593   : > { %v6392_v16 = vor.u32 %v6391_v11, %v6388_v48  ;;  %vm5663_vm12 = vcmp.ge.f32.partialorder %v5567_v35, 0.0  ;;  %v5759_v22 = vmul.f32 0.2, %v5567_v35  ;;  %v4799_v24 = vsel %vm4696_vm0, %v4797_v21, %v4798_v45  ;;  %v10392_v59 = vpop.f32.mrb[4].mxu1  ;;  %v11043_v48 = vld [vmem:[#allocation37_spill] sm:$0xff] }
 0x594   : > { %v5857_v19 = vsel %vm5665_vm11, %v5569_v14, %v5761_v41  ;;  %v5013_v12 = vadd.f32 %v9577_v50, %v4799_v24  ;;  %v5248_v4 = vsel %vm5145_vm1, %v5246_v23, %v5247_v56  ;;  %v4802_v58 = vsel %vm4696_vm0, %v4800_v18, %v4801_v6  ;;  %v10394_v27 = vpop.f32.mrb[160].mxu0  ;;  %v10397_v40 = vpop.f32.mrb[5].mxu1  ;;  %v11042_v14 = vld [vmem:[#allocation39_spill] sm:$0xff] }
 0x595   : > { %v6393_v10 = vrot.slane %v6392_v16, 4  ;;  %v5855_v60 = vsel %vm5663_vm12, %v5567_v35, %v5759_v22  ;;  %v6997_v37 = vpack.c.bf16 %v5857_v19, %v5856_v63  ;;  %v5014_v15 = vadd.f32 %v11041_v49, %v4802_v58  ;;  %v10399_v42 = vpop.f32.mrb[161].mxu0  ;;  %v10403_v36 = vpop.f32.mrb[6].mxu1 }
 0x596   : > { %v6996_v39 = vpack.c.bf16 %v5855_v60, %v5854_v28  ;;  %v5462_v17 = vadd.f32 %v5248_v4, %v5013_v12  ;;  %v5250_v50 = vrot.slane %v10299_v32, 2  ;;  %v4803_v8 = vrot.slane %v10310_v9, 1  ;;  %v10405_v43 = vpop.f32.mrb[162].mxu0  ;;  %v10410_v33 = vpop.f32.mrb[7].mxu1 }
 0x597   : > { %v6405_v2 = vshll.u32 %v6997_v37, 16  ;;  %v5252_v21 = vrot.slane %v10312_v54, 2  ;;  %v4805_v61 = vrot.slane %v10316_v53, 1  ;;  %v5254_v30 = vrot.slane %v10318_v57, 2  ;;  %v10412_v44 = vpop.f32.mrb[163].mxu0 }
 0x598   : > { %v6395_v28 = vshll.u32 %v6996_v39, 16  ;;  %v6399_v63 = vshrl.u32 %v6996_v39, 16  ;;  %v5570_v32 = vadd.f32 %v9739_v0, %v5462_v17  ;;  %v5251_v9 = vsel %vm5145_vm1, %v5249_v7, %v5250_v50 }
 0x599   : > { %v6407_v1 = vrot.slane %v6405_v2, 5  ;;  %v5463_v26 = vadd.f32 %v5251_v9, %v5014_v15  ;;  %v4804_v55 = vsel %vm4696_vm0, %v4798_v45, %v4803_v8  ;;  %v5017_v54 = vadd.f32 %v4803_v8, %v11042_v14  ;;  %v11045_v15 = vld [vmem:[#allocation40_spill] sm:$0xff] }
 0x59a   : > { %v6397_v53 = vrot.slane %v6395_v28, 5  ;;  %v6401_v23 = vrot.slane %v6399_v63, 4  ;;  %vm5666_vm13 = vcmp.ge.f32.partialorder %v5570_v32, 0.0  ;;  %v5762_v57 = vmul.f32 0.2, %v5570_v32 }
 0x59b   : > { %v5571_v18 = vadd.f32 %v9749_v38, %v5463_v26  ;;  %v5015_v11 = vadd.f32 %v11043_v48, %v4804_v55  ;;  %v5253_v35 = vsel %vm5145_vm1, %v5247_v56, %v5252_v21  ;;  %v5466_v41 = vadd.f32 %v5252_v21, %v5017_v54  ;;  %v10424_v24 = vpop.f32.mrb[12].mxu1 }
 0x59c   : > { %v6398_v7 = vsel %vm9785_vm10, %v6393_v10, %v6397_v53  ;;  %v6402_v16 = vor.u32 %v6401_v23, %v6397_v53  ;;  %v5858_v22 = vsel %vm5666_vm13, %v5570_v32, %v5762_v57  ;;  %v4806_v45 = vsel %vm4696_vm0, %v4801_v6, %v4805_v61  ;;  %v10426_v19 = vpop.f32.mrb[164].mxu0  ;;  %v10430_v60 = vpop.f32.mrb[13].mxu1  ;;  %v11044_v10 = vld [vmem:[#allocation38_spill] sm:$0xff] }
 0x59d   : > { %6603 = vst [vmem:[%s9803_s9 + $0x90] sm:$0xff] %v6398_v7  ;;  %vm5667_vm14 = vcmp.ge.f32.partialorder %v5571_v18, 0.0  ;;  %v5763_v12 = vmul.f32 0.2, %v5571_v18  ;;  %v5464_v4 = vadd.f32 %v5253_v35, %v5015_v11  ;;  %v5574_v58 = vadd.f32 %v9739_v0, %v5466_v41  ;;  %v10432_v56 = vpop.f32.mrb[165].mxu0  ;;  %v3934_v17 = vpop.f32.mrb[14].mxu1 }
 0x59e   : > { %v6403_v37 = vrot.slane %v6402_v16, 4  ;;  %v5016_v49 = vadd.f32 %v11044_v10, %v4806_v45  ;;  %v5018_v6 = vadd.f32 %v4805_v61, %v11045_v15  ;;  %v5255_v39 = vsel %vm5145_vm1, %v5250_v50, %v5254_v30  ;;  %v4447_v8 = vpop.f32.mrb[166].mxu0  ;;  %v3935_v63 = vpop.f32.mrb[15].mxu1 }
 0x59f   : > { %v5859_v2 = vsel %vm5667_vm14, %v5571_v18, %v5763_v12  ;;  %v5572_v21 = vadd.f32 %v9739_v0, %v5464_v4  ;;  %vm5670_vm15 = vcmp.ge.f32.partialorder %v5574_v58, 0.0  ;;  %v5766_v28 = vmul.f32 0.2, %v5574_v58  ;;  %v4448_v32 = vpop.f32.mrb[167].mxu0  ;;  %v11046_v8 = vld [vmem:[#allocation41_spill] sm:$0xff] }
 0x5a0   : > { %v6408_v9 = vsel %vm9785_vm10, %v6403_v37, %v6407_v1  ;;  %v6998_v26 = vpack.c.bf16 %v5859_v2, %v5858_v22  ;;  %v5465_v55 = vadd.f32 %v5255_v39, %v5016_v49  ;;  %v5467_v14 = vadd.f32 %v5254_v30, %v5018_v6 }
 0x5a1   : > { %6604 = vst [vmem:[%s9803_s9 + $0x98] sm:$0xff] %v6408_v9  ;;  %vm5668_vm2 = vcmp.ge.f32.partialorder %v5572_v21, 0.0  ;;  %v5764_v61 = vmul.f32 0.2, %v5572_v21  ;;  %v5862_v54 = vsel %vm5670_vm15, %v5574_v58, %v5766_v28  ;;  %v4807_v50 = vrot.slane %v10335_v31, 1  ;;  %v11047_v9 = vld [vmem:[#allocation45_spill] sm:$0xff] }
 0x5a2   : > { %v6410_v53 = vshrl.u32 %v6998_v26, 16  ;;  %v6413_v23 = vshll.u32 %v6998_v26, 16  ;;  %v5573_v57 = vadd.f32 %v9749_v38, %v5465_v55  ;;  %v5575_v18 = vadd.f32 %v9749_v38, %v5467_v14 }
 0x5a3   : > { %v5860_v48 = vsel %vm5668_vm2, %v5572_v21, %v5764_v61  ;;  %v5256_v11 = vrot.slane %v10337_v5, 2  ;;  %v4810_v1 = vrot.slane %v10340_v3, 1  ;;  %v5259_v35 = vrot.slane %v10342_v34, 2  ;;  %v10447_v7 = vpop.f32.mrb[20].mxu1 }
 0x5a4   : > { %v6412_v30 = vrot.slane %v6410_v53, 4  ;;  %v6415_v41 = vrot.slane %v6413_v23, 5  ;;  %vm5669_vm3 = vcmp.ge.f32.partialorder %v5573_v57, 0.0  ;;  %vm5671_vm4 = vcmp.ge.f32.partialorder %v5575_v18, 0.0  ;;  %v10449_v31 = vpop.f32.mrb[168].mxu0  ;;  %v10456_v58 = vpop.f32.mrb[21].mxu1 }
 0x5a5   : > { %v5765_v16 = vmul.f32 0.2, %v5573_v57  ;;  %v5767_v22 = vmul.f32 0.2, %v5575_v18  ;;  %v4808_v45 = vrot.slane %v10347_v29, 1  ;;  %v5257_v12 = vrot.slane %v10349_v62, 2 }
 0x5a6   : > { %v6416_v4 = vor.u32 %v6415_v41, %v6412_v30  ;;  %v4811_v5 = vrot.slane %v10353_v47, 1  ;;  %v5260_v3 = vrot.slane %v10355_v46, 2  ;;  %v4813_v34 = vrot.slane %v10367_v51, 1  ;;  %v10458_v37 = vpop.f32.mrb[169].mxu0  ;;  %v10462_v29 = vpop.f32.mrb[22].mxu1  ;;  %v11049_v23 = vld [vmem:[#allocation43_spill] sm:$0xff] }
 0x5a7   : > { %v5861_v10 = vsel %vm5669_vm3, %v5573_v57, %v5765_v16  ;;  %v5863_v49 = vsel %vm5671_vm4, %v5575_v18, %v5767_v22  ;;  %v4809_v15 = vsel %vm4696_vm0, %v4807_v50, %v4808_v45  ;;  %v5258_v6 = vsel %vm5145_vm1, %v5256_v11, %v5257_v12  ;;  %v10464_v62 = vpop.f32.mrb[170].mxu0  ;;  %v10467_v51 = vpop.f32.mrb[23].mxu1  ;;  %v11048_v50 = vld [vmem:[#allocation42_spill] sm:$0xff] }
 0x5a8   : > { %v6417_v39 = vrot.slane %v6416_v4, 4  ;;  %v6999_v47 = vpack.c.bf16 %v5861_v10, %v5860_v48  ;;  %v7000_v17 = vpack.c.bf16 %v5863_v49, %v5862_v54  ;;  %v5019_v2 = vadd.f32 %v11046_v8, %v4809_v15  ;;  %v10469_v21 = vpop.f32.mrb[171].mxu0 }
 0x5a9   : > { %v4812_v28 = vsel %vm4696_vm0, %v4810_v1, %v4811_v5  ;;  %v5261_v63 = vsel %vm5145_vm1, %v5259_v35, %v5260_v3  ;;  %v4814_v32 = vsel %vm4696_vm0, %v4808_v45, %v4813_v34  ;;  %v5023_v26 = vadd.f32 %v4813_v34, %v11047_v9 }
 0x5aa   : > { %v6419_v55 = vshll.u32 %v6999_v47, 16  ;;  %v6423_v14 = vshrl.u32 %v6999_v47, 16  ;;  %v6429_v61 = vshll.u32 %v7000_v17, 16  ;;  %v5468_v54 = vadd.f32 %v5258_v6, %v5019_v2  ;;  %v11050_v2 = vld [vmem:[#allocation44_spill] sm:$0xff] }
 0x5ab   : > { %v5020_v53 = vadd.f32 %v11048_v50, %v4812_v28  ;;  %v5021_v57 = vadd.f32 %v11049_v23, %v4814_v32  ;;  %v5262_v18 = vrot.slane %v10369_v25, 2  ;;  %v4815_v48 = vrot.slane %v10373_v52, 1  ;;  %v10482_v41 = vpop.f32.mrb[28].mxu1 }
 0x5ac   : > { %v6421_v11 = vrot.slane %v6419_v55, 5  ;;  %v6425_v1 = vrot.slane %v6423_v14, 4  ;;  %v6431_v30 = vrot.slane %v6429_v61, 5  ;;  %v5576_v35 = vadd.f32 %v9739_v0, %v5468_v54  ;;  %v10484_v16 = vpop.f32.mrb[172].mxu0  ;;  %v10488_v10 = vpop.f32.mrb[29].mxu1 }
 0x5ad   : > { %v5469_v22 = vadd.f32 %v5261_v63, %v5020_v53  ;;  %v5263_v45 = vsel %vm5145_vm1, %v5257_v12, %v5262_v18  ;;  %v5472_v4 = vadd.f32 %v5262_v18, %v5023_v26  ;;  %v4816_v34 = vsel %vm4696_vm0, %v4811_v5, %v4815_v48  ;;  %v10490_v25 = vpop.f32.mrb[173].mxu0  ;;  %v3952_v6 = vpop.f32.mrb[30].mxu1  ;;  %v11051_v26 = vld [vmem:[#allocation46_spill] sm:$0xff] }
 0x5ae   : > { %v6422_v52 = vsel %vm9785_vm10, %v6417_v39, %v6421_v11  ;;  %v6426_v49 = vor.u32 %v6425_v1, %v6421_v11  ;;  %vm5672_vm5 = vcmp.ge.f32.partialorder %v5576_v35, 0.0  ;;  %v5768_v15 = vmul.f32 0.2, %v5576_v35  ;;  %v4465_v47 = vpop.f32.mrb[174].mxu0  ;;  %v3953_v28 = vpop.f32.mrb[31].mxu1 }
 0x5af   : > { %6605 = vst [vmem:[%s9803_s9 + $0xa0] sm:$0xff] %v6422_v52  ;;  %v5577_v17 = vadd.f32 %v9749_v38, %v5469_v22  ;;  %v5470_v8 = vadd.f32 %v5263_v45, %v5021_v57  ;;  %v5580_v12 = vadd.f32 %v9739_v0, %v5472_v4  ;;  %v5022_v5 = vadd.f32 %v11050_v2, %v4816_v34  ;;  %v4466_v63 = vpop.f32.mrb[175].mxu0 }
 0x5b0   : > { %v6427_v32 = vrot.slane %v6426_v49, 4  ;;  %v5864_v9 = vsel %vm5672_vm5, %v5576_v35, %v5768_v15  ;;  %v5024_v39 = vadd.f32 %v4815_v48, %v11051_v26  ;;  %v5264_v55 = vrot.slane %v10375_v20, 2 }
 0x5b1   : > { %vm5673_vm6 = vcmp.ge.f32.partialorder %v5577_v17, 0.0  ;;  %v5769_v14 = vmul.f32 0.2, %v5577_v17  ;;  %v5578_v61 = vadd.f32 %v9739_v0, %v5470_v8  ;;  %vm5676_vm7 = vcmp.ge.f32.partialorder %v5580_v12, 0.0 }
 0x5b2   : > { %v6432_v54 = vsel %vm9785_vm10, %v6427_v32, %v6431_v30  ;;  %v5772_v50 = vmul.f32 0.2, %v5580_v12  ;;  %v5265_v53 = vsel %vm5145_vm1, %v5260_v3, %v5264_v55  ;;  %v5473_v23 = vadd.f32 %v5264_v55, %v5024_v39 }
 0x5b3   : > { %6606 = vst [vmem:[%s9803_s9 + $0xa8] sm:$0xff] %v6432_v54  ;;  %v5865_v57 = vsel %vm5673_vm6, %v5577_v17, %v5769_v14  ;;  %vm5674_vm8 = vcmp.ge.f32.partialorder %v5578_v61, 0.0  ;;  %v5770_v18 = vmul.f32 0.2, %v5578_v61  ;;  %v5471_v48 = vadd.f32 %v5265_v53, %v5022_v5  ;;  %v10509_v22 = vpop.f32.mrb[36].mxu1 }
 0x5b4   : > { %v7001_v20 = vpack.c.bf16 %v5865_v57, %v5864_v9  ;;  %v5868_v11 = vsel %vm5676_vm7, %v5580_v12, %v5772_v50  ;;  %v5581_v1 = vadd.f32 %v9749_v38, %v5473_v23  ;;  %v4817_v35 = vrot.slane %v10392_v59, 1  ;;  %v10511_v30 = vpop.f32.mrb[176].mxu0  ;;  %v10516_v34 = vpop.f32.mrb[37].mxu1 }
 0x5b5   : > { %v5866_v45 = vsel %vm5674_vm8, %v5578_v61, %v5770_v18  ;;  %v5579_v46 = vadd.f32 %v9749_v38, %v5471_v48  ;;  %v5266_v3 = vrot.slane %v10394_v27, 2  ;;  %v4820_v4 = vrot.slane %v10397_v40, 1  ;;  %v10518_v52 = vpop.f32.mrb[177].mxu0  ;;  %v10520_v59 = vpop.f32.mrb[38].mxu1 }
 0x5b6   : > { %v6434_v49 = vshrl.u32 %v7001_v20, 16  ;;  %v6437_v15 = vshll.u32 %v7001_v20, 16  ;;  %vm5677_vm9 = vcmp.ge.f32.partialorder %v5581_v1, 0.0  ;;  %v5773_v6 = vmul.f32 0.2, %v5581_v1  ;;  %v10524_v12 = vpop.f32.mrb[178].mxu0 }
 0x5b7   : > { %vm5675_vm11 = vcmp.ge.f32.partialorder %v5579_v46, 0.0  ;;  %v5771_v47 = vmul.f32 0.2, %v5579_v46  ;;  %v5269_v17 = vrot.slane %v10399_v42, 2  ;;  %v4818_v8 = vrot.slane %v10403_v36, 1  ;;  %v10527_v28 = vpop.f32.mrb[39].mxu1 }
 0x5b8   : > { %v6436_v27 = vrot.slane %v6434_v49, 4  ;;  %v6439_v40 = vrot.slane %v6437_v15, 5  ;;  %v5869_v2 = vsel %vm5677_vm9, %v5581_v1, %v5773_v6  ;;  %v5267_v5 = vrot.slane %v10405_v43, 2  ;;  %v10529_v63 = vpop.f32.mrb[179].mxu0  ;;  %v11052_v36 = vld [vmem:[#allocation47_spill] sm:$0xff]  ;;  %v11053_v1 = vld [vmem:[#allocation48_spill] sm:$0xff] }
 0x5b9   : > { %v5867_v32 = vsel %vm5675_vm11, %v5579_v46, %v5771_v47  ;;  %v7003_v9 = vpack.c.bf16 %v5869_v2, %v5868_v11  ;;  %v4819_v26 = vsel %vm4696_vm0, %v4817_v35, %v4818_v8  ;;  %v4821_v39 = vrot.slane %v10410_v33, 1  ;;  %v11054_v15 = vld [vmem:[#allocation49_spill] sm:$0xff]  ;;  %v11055_v2 = vld [vmem:[#allocation51_spill] sm:$0xff] }
 0x5ba   : > { %v6440_v42 = vor.u32 %v6439_v40, %v6436_v27  ;;  %v7002_v55 = vpack.c.bf16 %v5867_v32, %v5866_v45  ;;  %v5025_v14 = vadd.f32 %v11052_v36, %v4819_v26  ;;  %v5268_v61 = vsel %vm5145_vm1, %v5266_v3, %v5267_v5 }
 0x5bb   : > { %v6453_v54 = vshll.u32 %v7003_v9, 16  ;;  %v4822_v50 = vsel %vm4696_vm0, %v4820_v4, %v4821_v39  ;;  %v5270_v43 = vrot.slane %v10412_v44, 2  ;;  %v4823_v53 = vrot.slane %v10424_v24, 1  ;;  %v10538_v20 = vpop.f32.mrb[44].mxu1 }
 0x5bc   : > { %v6441_v23 = vrot.slane %v6440_v42, 4  ;;  %v6443_v57 = vshll.u32 %v7002_v55, 16  ;;  %v6447_v18 = vshrl.u32 %v7002_v55, 16  ;;  %v5474_v48 = vadd.f32 %v5268_v61, %v5025_v14  ;;  %v10540_v33 = vpop.f32.mrb[180].mxu0  ;;  %v10545_v3 = vpop.f32.mrb[45].mxu1 }
 0x5bd   : > { %v6455_v11 = vrot.slane %v6453_v54, 5  ;;  %v5026_v35 = vadd.f32 %v11053_v1, %v4822_v50  ;;  %v5271_v45 = vsel %vm5145_vm1, %v5269_v17, %v5270_v43  ;;  %v4824_v46 = vsel %vm4696_vm0, %v4818_v8, %v4823_v53  ;;  %v10547_v44 = vpop.f32.mrb[181].mxu0  ;;  %v3970_v47 = vpop.f32.mrb[46].mxu1  ;;  %v11057_v1 = vld [vmem:[#allocation52_spill] sm:$0xff] }
 0x5be   : > { %v6445_v24 = vrot.slane %v6443_v57, 5  ;;  %v6449_v4 = vrot.slane %v6447_v18, 4  ;;  %v5582_v49 = vadd.f32 %v9739_v0, %v5474_v48  ;;  %v5027_v6 = vadd.f32 %v11054_v15, %v4824_v46  ;;  %v4483_v27 = vpop.f32.mrb[182].mxu0  ;;  %v3971_v9 = vpop.f32.mrb[47].mxu1  ;;  %v11056_v57 = vld [vmem:[#allocation50_spill] sm:$0xff] }
 0x5bf   : > { %v5475_v40 = vadd.f32 %v5271_v45, %v5026_v35  ;;  %v5029_v32 = vadd.f32 %v4823_v53, %v11055_v2  ;;  %v5272_v17 = vrot.slane %v10426_v19, 2  ;;  %v4825_v8 = vrot.slane %v10430_v60, 1  ;;  %v4484_v26 = vpop.f32.mrb[183].mxu0 }
 0x5c0   : > { %v6446_v42 = vsel %vm9785_vm10, %v6441_v23, %v6445_v24  ;;  %v6450_v55 = vor.u32 %v6449_v4, %v6445_v24  ;;  %vm5678_vm12 = vcmp.ge.f32.partialorder %v5582_v49, 0.0  ;;  %v5774_v36 = vmul.f32 0.2, %v5582_v49 }
 0x5c1   : > { %6607 = vst [vmem:[%s9803_s9 + $0xb0] sm:$0xff] %v6446_v42  ;;  %v5583_v14 = vadd.f32 %v9749_v38, %v5475_v40  ;;  %v5273_v61 = vsel %vm5145_vm1, %v5267_v5, %v5272_v17  ;;  %v5478_v54 = vadd.f32 %v5272_v17, %v5029_v32  ;;  %v4826_v50 = vsel %vm4696_vm0, %v4821_v39, %v4825_v8 }
 0x5c2   : > { %v6451_v19 = vrot.slane %v6450_v55, 4  ;;  %v5870_v53 = vsel %vm5678_vm12, %v5582_v49, %v5774_v36  ;;  %v5476_v60 = vadd.f32 %v5273_v61, %v5027_v6  ;;  %v5028_v18 = vadd.f32 %v11056_v57, %v4826_v50 }
 0x5c3   : > { %vm5679_vm13 = vcmp.ge.f32.partialorder %v5583_v14, 0.0  ;;  %v5775_v48 = vmul.f32 0.2, %v5583_v14  ;;  %v5586_v23 = vadd.f32 %v9739_v0, %v5478_v54  ;;  %v5030_v35 = vadd.f32 %v4825_v8, %v11057_v1  ;;  %v10568_v24 = vpop.f32.mrb[52].mxu1 }
 0x5c4   : > { %v6456_v45 = vsel %vm9785_vm10, %v6451_v19, %v6455_v11  ;;  %v5584_v5 = vadd.f32 %v9739_v0, %v5476_v60  ;;  %v5274_v46 = vrot.slane %v10432_v56, 2  ;;  %v4827_v39 = vrot.slane %v10447_v7, 1  ;;  %v10574_v47 = vpop.f32.mrb[53].mxu1 }
 0x5c5   : > { %6608 = vst [vmem:[%s9803_s9 + $0xb8] sm:$0xff] %v6456_v45  ;;  %v5871_v4 = vsel %vm5679_vm13, %v5583_v14, %v5775_v48  ;;  %vm5682_vm14 = vcmp.ge.f32.partialorder %v5586_v23, 0.0  ;;  %v5778_v49 = vmul.f32 0.2, %v5586_v23  ;;  %v5276_v15 = vrot.slane %v10449_v31, 2  ;;  %v10572_v6 = vpop.f32.mrb[184].mxu0 }
 0x5c6   : > { %v7004_v27 = vpack.c.bf16 %v5871_v4, %v5870_v53  ;;  %vm5680_vm15 = vcmp.ge.f32.partialorder %v5584_v5, 0.0  ;;  %v5776_v11 = vmul.f32 0.2, %v5584_v5  ;;  %v5275_v40 = vsel %vm5145_vm1, %v5270_v43, %v5274_v46  ;;  %v10577_v56 = vpop.f32.mrb[185].mxu0  ;;  %v10579_v7 = vpop.f32.mrb[54].mxu1  ;;  %v11058_v45 = vld [vmem:[#allocation53_spill] sm:$0xff] }
 0x5c7   : > { %v5874_v2 = vsel %vm5682_vm14, %v5586_v23, %v5778_v49  ;;  %v5477_v32 = vadd.f32 %v5275_v40, %v5028_v18  ;;  %v5479_v17 = vadd.f32 %v5274_v46, %v5030_v35  ;;  %v4830_v8 = vrot.slane %v10456_v58, 1  ;;  %v10582_v9 = vpop.f32.mrb[186].mxu0  ;;  %v10584_v31 = vpop.f32.mrb[55].mxu1 }
 0x5c8   : > { %v6458_v26 = vshrl.u32 %v7004_v27, 16  ;;  %v6461_v42 = vshll.u32 %v7004_v27, 16  ;;  %v5872_v55 = vsel %vm5680_vm15, %v5584_v5, %v5776_v11  ;;  %v5279_v36 = vrot.slane %v10458_v37, 2  ;;  %v10587_v14 = vpop.f32.mrb[187].mxu0 }
 0x5c9   : > { %v5585_v43 = vadd.f32 %v9749_v38, %v5477_v32  ;;  %v5587_v61 = vadd.f32 %v9749_v38, %v5479_v17  ;;  %v4828_v54 = vrot.slane %v10462_v29, 1  ;;  %v5277_v50 = vrot.slane %v10464_v62, 2 }
 0x5ca   : > { %v6460_v58 = vrot.slane %v6458_v26, 4  ;;  %v6463_v19 = vrot.slane %v6461_v42, 5  ;;  %v4831_v53 = vrot.slane %v10467_v51, 1  ;;  %v5280_v60 = vrot.slane %v10469_v21, 2  ;;  %v11059_v51 = vld [vmem:[#allocation54_spill] sm:$0xff] }
 0x5cb   : > { %vm5681_vm2 = vcmp.ge.f32.partialorder %v5585_v43, 0.0  ;;  %vm5683_vm3 = vcmp.ge.f32.partialorder %v5587_v61, 0.0  ;;  %v5777_v57 = vmul.f32 0.2, %v5585_v43  ;;  %v5779_v37 = vmul.f32 0.2, %v5587_v61 }
 0x5cc   : > { %v6464_v18 = vor.u32 %v6463_v19, %v6460_v58  ;;  %v4829_v48 = vsel %vm4696_vm0, %v4827_v39, %v4828_v54  ;;  %v5278_v23 = vsel %vm5145_vm1, %v5276_v15, %v5277_v50  ;;  %v4832_v1 = vsel %vm4696_vm0, %v4830_v8, %v4831_v53  ;;  %v10598_v29 = vpop.f32.mrb[60].mxu1 }
 0x5cd   : > { %v5873_v62 = vsel %vm5681_vm2, %v5585_v43, %v5777_v57  ;;  %v5875_v35 = vsel %vm5683_vm3, %v5587_v61, %v5779_v37  ;;  %v5031_v5 = vadd.f32 %v11058_v45, %v4829_v48  ;;  %v5032_v46 = vadd.f32 %v11059_v51, %v4832_v1  ;;  %v10602_v4 = vpop.f32.mrb[188].mxu0  ;;  %v10604_v49 = vpop.f32.mrb[61].mxu1  ;;  %v11060_v48 = vld [vmem:[#allocation57_spill] sm:$0xff] }
 0x5ce   : > { %v6465_v27 = vrot.slane %v6464_v18, 4  ;;  %v7005_v11 = vpack.c.bf16 %v5873_v62, %v5872_v55  ;;  %v7006_v40 = vpack.c.bf16 %v5875_v35, %v5874_v2  ;;  %v5281_v39 = vsel %vm5145_vm1, %v5279_v36, %v5280_v60  ;;  %v10609_v15 = vpop.f32.mrb[189].mxu0  ;;  %v3988_v32 = vpop.f32.mrb[62].mxu1  ;;  %v11061_v62 = vld [vmem:[#allocation55_spill] sm:$0xff] }
 0x5cf   : > { %v5480_v17 = vadd.f32 %v5278_v23, %v5031_v5  ;;  %v5481_v8 = vadd.f32 %v5281_v39, %v5032_v46  ;;  %v4833_v26 = vrot.slane %v10482_v41, 1  ;;  %v5282_v42 = vrot.slane %v10484_v16, 2  ;;  %v4501_v43 = vpop.f32.mrb[190].mxu0  ;;  %v3989_v61 = vpop.f32.mrb[63].mxu1 }
 0x5d0   : > { %v6467_v58 = vshll.u32 %v7005_v11, 16  ;;  %v6471_v19 = vshrl.u32 %v7005_v11, 16  ;;  %v6477_v57 = vshll.u32 %v7006_v40, 16  ;;  %v4835_v2 = vrot.slane %v10488_v10, 1  ;;  %v4502_v55 = vpop.f32.mrb[191].mxu0  ;;  %v11062_v43 = vld [vmem:[#allocation56_spill] sm:$0xff] }
 0x5d1   : > { %v5588_v37 = vadd.f32 %v9739_v0, %v5480_v17  ;;  %v5589_v36 = vadd.f32 %v9749_v38, %v5481_v8  ;;  %v4834_v18 = vsel %vm4696_vm0, %v4828_v54, %v4833_v26  ;;  %v5035_v23 = vadd.f32 %v4833_v26, %v11060_v48 }
 0x5d2   : > { %v6469_v41 = vrot.slane %v6467_v58, 5  ;;  %v6473_v1 = vrot.slane %v6471_v19, 4  ;;  %v6479_v16 = vrot.slane %v6477_v57, 5  ;;  %v5033_v35 = vadd.f32 %v11061_v62, %v4834_v18 }
 0x5d3   : > { %vm5684_vm4 = vcmp.ge.f32.partialorder %v5588_v37, 0.0  ;;  %v5780_v45 = vmul.f32 0.2, %v5588_v37  ;;  %vm5685_vm5 = vcmp.ge.f32.partialorder %v5589_v36, 0.0  ;;  %v5781_v5 = vmul.f32 0.2, %v5589_v36 }
 0x5d4   : > { %v6470_v10 = vsel %vm9785_vm10, %v6465_v27, %v6469_v41  ;;  %v6474_v51 = vor.u32 %v6473_v1, %v6469_v41  ;;  %v5283_v46 = vsel %vm5145_vm1, %v5277_v50, %v5282_v42  ;;  %v5484_v11 = vadd.f32 %v5282_v42, %v5035_v23  ;;  %v11063_v27 = vld [vmem:[#allocation58_spill] sm:$0xff] }
 0x5d5   : > { %6609 = vst [vmem:[%s9803_s9 + $0xc0] sm:$0xff] %v6470_v10  ;;  %v5876_v54 = vsel %vm5684_vm4, %v5588_v37, %v5780_v45  ;;  %v5877_v40 = vsel %vm5685_vm5, %v5589_v36, %v5781_v5  ;;  %v5482_v39 = vadd.f32 %v5283_v46, %v5033_v35  ;;  %v4836_v32 = vsel %vm4696_vm0, %v4831_v53, %v4835_v2 }
 0x5d6   : > { %v6475_v17 = vrot.slane %v6474_v51, 4  ;;  %v7007_v8 = vpack.c.bf16 %v5877_v40, %v5876_v54  ;;  %v5592_v26 = vadd.f32 %v9739_v0, %v5484_v11  ;;  %v5034_v61 = vadd.f32 %v11062_v43, %v4836_v32  ;;  %v11065_v32 = vld [vmem:[#allocation60_spill] sm:$0xff] }
 0x5d7   : > { %v5590_v58 = vadd.f32 %v9739_v0, %v5482_v39  ;;  %v5036_v19 = vadd.f32 %v4835_v2, %v11063_v27  ;;  %v5284_v50 = vrot.slane %v10490_v25, 2  ;;  %v4837_v42 = vrot.slane %v10509_v22, 1  ;;  %v11064_v39 = vld [vmem:[#allocation59_spill] sm:$0xff] }
 0x5d8   : > { %v6480_v57 = vsel %vm9785_vm10, %v6475_v17, %v6479_v16  ;;  %v6482_v55 = vshrl.u32 %v7007_v8, 16  ;;  %v6485_v37 = vshll.u32 %v7007_v8, 16  ;;  %vm5688_vm6 = vcmp.ge.f32.partialorder %v5592_v26, 0.0 }
 0x5d9   : > { %6610 = vst [vmem:[%s9803_s9 + $0xc8] sm:$0xff] %v6480_v57  ;;  %vm5686_vm7 = vcmp.ge.f32.partialorder %v5590_v58, 0.0  ;;  %v5782_v53 = vmul.f32 0.2, %v5590_v58  ;;  %v5784_v36 = vmul.f32 0.2, %v5592_v26  ;;  %v5285_v18 = vsel %vm5145_vm1, %v5280_v60, %v5284_v50 }
 0x5da   : > { %v6484_v48 = vrot.slane %v6482_v55, 4  ;;  %v6487_v2 = vrot.slane %v6485_v37, 5  ;;  %v5483_v23 = vadd.f32 %v5285_v18, %v5034_v61  ;;  %v5485_v25 = vadd.f32 %v5284_v50, %v5036_v19  ;;  %v11066_v55 = vld [vmem:[#allocation63_spill] sm:$0xff] }
 0x5db   : > { %v5878_v41 = vsel %vm5686_vm7, %v5590_v58, %v5782_v53  ;;  %v5880_v22 = vsel %vm5688_vm6, %v5592_v26, %v5784_v36  ;;  %v5286_v1 = vrot.slane %v10511_v30, 2  ;;  %v4840_v16 = vrot.slane %v10516_v34, 1 }
 0x5dc   : > { %v6488_v62 = vor.u32 %v6487_v2, %v6484_v48  ;;  %v5591_v35 = vadd.f32 %v9749_v38, %v5483_v23  ;;  %v5593_v45 = vadd.f32 %v9749_v38, %v5485_v25  ;;  %v5289_v5 = vrot.slane %v10518_v52, 2 }
 0x5dd   : > { %v4838_v21 = vrot.slane %v10520_v59, 1  ;;  %v5287_v60 = vrot.slane %v10524_v12, 2  ;;  %v4841_v10 = vrot.slane %v10527_v28, 1  ;;  %v5290_v51 = vrot.slane %v10529_v63, 2 }
 0x5de   : > { %v6489_v46 = vrot.slane %v6488_v62, 4  ;;  %vm5687_vm8 = vcmp.ge.f32.partialorder %v5591_v35, 0.0  ;;  %vm5689_vm9 = vcmp.ge.f32.partialorder %v5593_v45, 0.0  ;;  %v5783_v30 = vmul.f32 0.2, %v5591_v35 }
 0x5df   : > { %v5785_v34 = vmul.f32 0.2, %v5593_v45  ;;  %v4839_v11 = vsel %vm4696_vm0, %v4837_v42, %v4838_v21  ;;  %v5288_v54 = vsel %vm5145_vm1, %v5286_v1, %v5287_v60  ;;  %v4842_v40 = vsel %vm4696_vm0, %v4840_v16, %v4841_v10 }
 0x5e0   : > { %v5879_v52 = vsel %vm5687_vm8, %v5591_v35, %v5783_v30  ;;  %v5037_v59 = vadd.f32 %v11064_v39, %v4839_v11  ;;  %v5038_v12 = vadd.f32 %v11065_v32, %v4842_v40  ;;  %v5291_v28 = vsel %vm5145_vm1, %v5289_v5, %v5290_v51 }
 0x5e1   : > { %v5881_v17 = vsel %vm5689_vm9, %v5593_v45, %v5785_v34  ;;  %v7008_v8 = vpack.c.bf16 %v5879_v52, %v5878_v41  ;;  %v4843_v26 = vrot.slane %v10538_v20, 1  ;;  %v5292_v43 = vrot.slane %v10540_v33, 2  ;;  %v11067_v20 = vld [vmem:[#allocation61_spill] sm:$0xff] }
 0x5e2   : > { %v7009_v61 = vpack.c.bf16 %v5881_v17, %v5880_v22  ;;  %v5486_v58 = vadd.f32 %v5288_v54, %v5037_v59  ;;  %v5487_v27 = vadd.f32 %v5291_v28, %v5038_v12  ;;  %v4845_v19 = vrot.slane %v10545_v3, 1  ;;  %v11069_v54 = vld [vmem:[#allocation62_spill] sm:$0xff] }
 0x5e3   : > { %v6491_v50 = vshll.u32 %v7008_v8, 16  ;;  %v6495_v42 = vshrl.u32 %v7008_v8, 16  ;;  %v4844_v57 = vsel %vm4696_vm0, %v4838_v21, %v4843_v26  ;;  %v5041_v37 = vadd.f32 %v4843_v26, %v11066_v55  ;;  %v11068_v21 = vld [vmem:[#allocation64_spill] sm:$0xff] }
 0x5e4   : > { %v6501_v53 = vshll.u32 %v7009_v61, 16  ;;  %v5594_v36 = vadd.f32 %v9739_v0, %v5486_v58  ;;  %v5595_v18 = vadd.f32 %v9749_v38, %v5487_v27  ;;  %v5039_v48 = vadd.f32 %v11067_v20, %v4844_v57 }
 0x5e5   : > { %v6493_v33 = vrot.slane %v6491_v50, 5  ;;  %v6497_v2 = vrot.slane %v6495_v42, 4  ;;  %v5293_v23 = vsel %vm5145_vm1, %v5287_v60, %v5292_v43  ;;  %v5490_v25 = vadd.f32 %v5292_v43, %v5041_v37 }
 0x5e6   : > { %v6503_v3 = vrot.slane %v6501_v53, 5  ;;  %vm5690_vm11 = vcmp.ge.f32.partialorder %v5594_v36, 0.0  ;;  %v5786_v41 = vmul.f32 0.2, %v5594_v36  ;;  %vm5691_vm12 = vcmp.ge.f32.partialorder %v5595_v18, 0.0 }
 0x5e7   : > { %v6494_v22 = vsel %vm9785_vm10, %v6489_v46, %v6493_v33  ;;  %v6498_v1 = vor.u32 %v6497_v2, %v6493_v33  ;;  %v5787_v16 = vmul.f32 0.2, %v5595_v18  ;;  %v5488_v62 = vadd.f32 %v5293_v23, %v5039_v48  ;;  %v11070_v48 = vld [vmem:[#allocation65_spill] sm:$0xff] }
 0x5e8   : > { %6611 = vst [vmem:[%s9803_s9 + $0xd0] sm:$0xff] %v6494_v22  ;;  %v5882_v35 = vsel %vm5690_vm11, %v5594_v36, %v5786_v41  ;;  %v5598_v45 = vadd.f32 %v9739_v0, %v5490_v25  ;;  %v4846_v5 = vsel %vm4696_vm0, %v4841_v10, %v4845_v19  ;;  %v5042_v60 = vadd.f32 %v4845_v19, %v11068_v21  ;;  %v11072_v22 = vld [vmem:[#allocation67_spill] sm:$0xff] }
 0x5e9   : > { %v6499_v30 = vrot.slane %v6498_v1, 4  ;;  %v5883_v34 = vsel %vm5691_vm12, %v5595_v18, %v5787_v16  ;;  %v5596_v11 = vadd.f32 %v9739_v0, %v5488_v62  ;;  %v5040_v40 = vadd.f32 %v11069_v54, %v4846_v5  ;;  %v11073_v16 = vld [vmem:[#allocation69_spill] sm:$0xff] }
 0x5ea   : > { %v7010_v52 = vpack.c.bf16 %v5883_v34, %v5882_v35  ;;  %vm5694_vm13 = vcmp.ge.f32.partialorder %v5598_v45, 0.0  ;;  %v5790_v46 = vmul.f32 0.2, %v5598_v45  ;;  %v5294_v39 = vrot.slane %v10547_v44, 2 }
 0x5eb   : > { %v6504_v59 = vsel %vm9785_vm10, %v6499_v30, %v6503_v3  ;;  %vm5692_vm14 = vcmp.ge.f32.partialorder %v5596_v11, 0.0  ;;  %v5788_v32 = vmul.f32 0.2, %v5596_v11  ;;  %v4847_v10 = vrot.slane %v10568_v24, 1 }
 0x5ec   : > { %6612 = vst [vmem:[%s9803_s9 + $0xd8] sm:$0xff] %v6504_v59  ;;  %v6506_v12 = vshrl.u32 %v7010_v52, 16  ;;  %v6509_v28 = vshll.u32 %v7010_v52, 16  ;;  %v5886_v17 = vsel %vm5694_vm13, %v5598_v45, %v5790_v46  ;;  %v5295_v8 = vsel %vm5145_vm1, %v5290_v51, %v5294_v39 }
 0x5ed   : > { %v5884_v26 = vsel %vm5692_vm14, %v5596_v11, %v5788_v32  ;;  %v5489_v43 = vadd.f32 %v5295_v8, %v5040_v40  ;;  %v5491_v61 = vadd.f32 %v5294_v39, %v5042_v60  ;;  %v5296_v44 = vrot.slane %v10572_v6, 2 }
 0x5ee   : > { %v6508_v58 = vrot.slane %v6506_v12, 4  ;;  %v6511_v27 = vrot.slane %v6509_v28, 5  ;;  %v4850_v19 = vrot.slane %v10574_v47, 1  ;;  %v5299_v50 = vrot.slane %v10577_v56, 2 }
 0x5ef   : > { %v5597_v24 = vadd.f32 %v9749_v38, %v5489_v43  ;;  %v5599_v42 = vadd.f32 %v9749_v38, %v5491_v61  ;;  %v4848_v57 = vrot.slane %v10579_v7, 1  ;;  %v5297_v63 = vrot.slane %v10582_v9, 2 }
 0x5f0   : > { %v6512_v51 = vor.u32 %v6511_v27, %v6508_v58  ;;  %v4851_v55 = vrot.slane %v10584_v31, 1  ;;  %v5300_v37 = vrot.slane %v10587_v14, 2  ;;  %v4853_v6 = vrot.slane %v10598_v29, 1  ;;  %v11071_v31 = vld [vmem:[#allocation66_spill] sm:$0xff]  ;;  %v11075_v58 = vld [vmem:[#allocation68_spill] sm:$0xff] }
 0x5f1   : > { %vm5693_vm15 = vcmp.ge.f32.partialorder %v5597_v24, 0.0  ;;  %vm5695_vm2 = vcmp.ge.f32.partialorder %v5599_v42, 0.0  ;;  %v5789_v47 = vmul.f32 0.2, %v5597_v24  ;;  %v5791_v53 = vmul.f32 0.2, %v5599_v42 }
 0x5f2   : > { %v6513_v56 = vrot.slane %v6512_v51, 4  ;;  %v4849_v36 = vsel %vm4696_vm0, %v4847_v10, %v4848_v57  ;;  %v5298_v18 = vsel %vm5145_vm1, %v5296_v44, %v5297_v63  ;;  %v4852_v7 = vsel %vm4696_vm0, %v4850_v19, %v4851_v55 }
 0x5f3   : > { %v5885_v20 = vsel %vm5693_vm15, %v5597_v24, %v5789_v47  ;;  %v5887_v9 = vsel %vm5695_vm2, %v5599_v42, %v5791_v53  ;;  %v5043_v33 = vadd.f32 %v11070_v48, %v4849_v36  ;;  %v5044_v2 = vadd.f32 %v11071_v31, %v4852_v7 }
 0x5f4   : > { %v7011_v14 = vpack.c.bf16 %v5885_v20, %v5884_v26  ;;  %v7012_v23 = vpack.c.bf16 %v5887_v9, %v5886_v17  ;;  %v5301_v29 = vsel %vm5145_vm1, %v5299_v50, %v5300_v37  ;;  %v4854_v25 = vsel %vm4696_vm0, %v4848_v57, %v4853_v6  ;;  %v11074_v17 = vld [vmem:[#allocation70_spill] sm:$0xff] }
 0x5f5   : > { %v5492_v3 = vadd.f32 %v5298_v18, %v5043_v33  ;;  %v5493_v41 = vadd.f32 %v5301_v29, %v5044_v2  ;;  %v5045_v1 = vadd.f32 %v11072_v22, %v4854_v25  ;;  %v5047_v62 = vadd.f32 %v4853_v6, %v11073_v16 }
 0x5f6   : > { %v6515_v35 = vshll.u32 %v7011_v14, 16  ;;  %v6519_v45 = vshrl.u32 %v7011_v14, 16  ;;  %v6525_v5 = vshll.u32 %v7012_v23, 16  ;;  %v5302_v21 = vrot.slane %v10602_v4, 2 }
 0x5f7   : > { %v5600_v60 = vadd.f32 %v9739_v0, %v5492_v3  ;;  %v5601_v30 = vadd.f32 %v9749_v38, %v5493_v41  ;;  %v4855_v34 = vrot.slane %v10604_v49, 1  ;;  %v5304_v11 = vrot.slane %v10609_v15, 2 }
 0x5f8   : > { %v6517_v54 = vrot.slane %v6515_v35, 5  ;;  %v6521_v40 = vrot.slane %v6519_v45, 4  ;;  %v6527_v52 = vrot.slane %v6525_v5, 5  ;;  %v5303_v46 = vsel %vm5145_vm1, %v5297_v63, %v5302_v21 }
 0x5f9   : > { %vm5696_vm3 = vcmp.ge.f32.partialorder %v5600_v60, 0.0  ;;  %v5792_v39 = vmul.f32 0.2, %v5600_v60  ;;  %vm5697_vm4 = vcmp.ge.f32.partialorder %v5601_v30, 0.0  ;;  %v5793_v59 = vmul.f32 0.2, %v5601_v30 }
 0x5fa   : > { %v6518_v4 = vsel %vm9785_vm10, %v6513_v56, %v6517_v54  ;;  %v6522_v32 = vor.u32 %v6521_v40, %v6517_v54  ;;  %v5494_v10 = vadd.f32 %v5303_v46, %v5045_v1  ;;  %v5496_v12 = vadd.f32 %v5302_v21, %v5047_v62 }
 0x5fb   : > { %6613 = vst [vmem:[%s9803_s9 + $0xe0] sm:$0xff] %v6518_v4  ;;  %v5888_v49 = vsel %vm5696_vm3, %v5600_v60, %v5792_v39  ;;  %v5889_v28 = vsel %vm5697_vm4, %v5601_v30, %v5793_v59  ;;  %v4856_v15 = vsel %vm4696_vm0, %v4851_v55, %v4855_v34  ;;  %v5048_v8 = vadd.f32 %v4855_v34, %v11074_v17 }
 0x5fc   : > { %v6523_v26 = vrot.slane %v6522_v32, 4  ;;  %v7013_v43 = vpack.c.bf16 %v5889_v28, %v5888_v49  ;;  %v5602_v61 = vadd.f32 %v9739_v0, %v5494_v10  ;;  %v5604_v44 = vadd.f32 %v9739_v0, %v5496_v12 }
 0x5fd   : > { %v5046_v27 = vadd.f32 %v11075_v58, %v4856_v15  ;;  %v5305_v19 = vsel %vm5145_vm1, %v5300_v37, %v5304_v11  ;;  %v5497_v50 = vadd.f32 %v5304_v11, %v5048_v8 }
 0x5fe   : > { %v6528_v24 = vsel %vm9785_vm10, %v6523_v26, %v6527_v52  ;;  %v6530_v42 = vshrl.u32 %v7013_v43, 16  ;;  %v6533_v57 = vshll.u32 %v7013_v43, 16  ;;  %vm5700_vm0 = vcmp.ge.f32.partialorder %v5604_v44, 0.0 }
 0x5ff   : > { %6614 = vst [vmem:[%s9803_s9 + $0xe8] sm:$0xff] %v6528_v24  ;;  %v5794_v63 = vmul.f32 0.2, %v5602_v61  ;;  %v5796_v51 = vmul.f32 0.2, %v5604_v44  ;;  %v5495_v55 = vadd.f32 %v5305_v19, %v5046_v27  ;;  %vm5698_vm5 = vcmp.ge.f32.partialorder %v5602_v61, 0.0 }
 0x600   : > { %v5605_v6 = vadd.f32 %v9749_v38, %v5497_v50  ;;  %v6532_v47 = vrot.slane %v6530_v42, 4  ;;  %v6535_v53 = vrot.slane %v6533_v57, 5 }
 0x601   : > { %v5603_v0 = vadd.f32 %v9749_v38, %v5495_v55  ;;  %v5892_v56 = vsel %vm5700_vm0, %v5604_v44, %v5796_v51  ;;  %v5890_v36 = vsel %vm5698_vm5, %v5602_v61, %v5794_v63 }
 0x602   : > { %vm5701_vm1 = vcmp.ge.f32.partialorder %v5605_v6, 0.0  ;;  %v5797_v37 = vmul.f32 0.2, %v5605_v6  ;;  %v6536_v48 = vor.u32 %v6535_v53, %v6532_v47 }
 0x603   : > { %vm5699_vm6 = vcmp.ge.f32.partialorder %v5603_v0, 0.0  ;;  %v5795_v18 = vmul.f32 0.2, %v5603_v0 }
 0x604   : > { %v5893_v7 = vsel %vm5701_vm1, %v5605_v6, %v5797_v37  ;;  %v6537_v38 = vrot.slane %v6536_v48, 4 }
 0x605   : > { %v5891_v20 = vsel %vm5699_vm6, %v5603_v0, %v5795_v18  ;;  %v7015_v9 = vpack.c.bf16 %v5893_v7, %v5892_v56 }
 0x606   : > { %v7014_v33 = vpack.c.bf16 %v5891_v20, %v5890_v36 }
 0x607   : > { %v6549_v29 = vshll.u32 %v7015_v9, 16 }
 0x608   : > { %v6539_v31 = vshll.u32 %v7014_v33, 16  ;;  %v6543_v2 = vshrl.u32 %v7014_v33, 16 }
 0x609   : > { %v6551_v22 = vrot.slane %v6549_v29, 5 }
 0x60a   : > { %v6541_v14 = vrot.slane %v6539_v31, 5  ;;  %v6545_v23 = vrot.slane %v6543_v2, 4 }
 0x60c   : > { %v6542_v25 = vsel %vm9785_vm10, %v6537_v38, %v6541_v14  ;;  %v6546_v3 = vor.u32 %v6545_v23, %v6541_v14 }
 0x60d   : > { %6615 = vst [vmem:[%s9803_s9 + $0xf0] sm:$0xff] %v6542_v25 }
 0x60e   : > { %v6547_v41 = vrot.slane %v6546_v3, 4 }
 0x610   : > { %v6552_v1 = vsel %vm9785_vm10, %v6547_v41, %v6551_v22 }
 0x611   : > { %6616 = vst [vmem:[%s9803_s9 + $0xf8] sm:$0xff] %v6552_v1 }
 0x612   : > { %8089 = shalt.err (!%p8086_p5)
}
 0x613   : > { %s8090_s29 = scalar_lea.hbm %s10725_s7, 4096  ;;  %s8094_s20 = scalar_lea.hbm %s10782_s3, 8192 }
 0x614   : > { %p8091_p9 = scmp.ne.s32.totalorder %s10725_s7, %s8090_s29  ;;  %p8095_p3 = scmp.lt.u32.totalorder %s10725_s7, %s10782_s3 }
 0x615   : > { %p8096_p7 = scmp.lt.u32.totalorder %s8094_s20, %s8090_s29  ;;  %p8098_p4 = scmp.lt.u32.totalorder %s8090_s29, %s10725_s7 }
 0x616   : > { %p8092_p1 = pnand %p8091_p9, %p8290_p10 }
 0x617   : > { %p8097_p13 = por %p8096_p7, %p8095_p3 }
 0x618   : > { %p8093_p2 = pneg %p8092_p1 }
 0x619   : > { %p8099_p6 = por %p8098_p4, %p8097_p13 }
 0x61b   : > { %p8100_p8 = pnand %p8099_p6, %p8093_p2 }
 0x61d   : > { %8103 = shalt.err (!%p8100_p8)
}
 0x61e   : > { %s8172_s9 = smov 128   ;;  %s8173_s10 = smov 8  }
 0x61f   : > { %7679 = dma.vmem_to_hbm [thread:$0]  (%p8290_p10), %s10727_s11, 4096, %s10725_s7, %s6618_s15, %s8172_s9, %s8172_s9, %s8173_s10  }
 0x620 PF: > { %s6648_s18 = sand.u32 1, %s8142_s12   ;;  %p11076_p12 = scmp.ne.s32.totalorder %s10795_s23, 0 }
 0x621   : > { %p11077_p11 = scmp.ge.s32.totalorder %s8162_s17, 2  ;;  %s6649_s26 = scalar_lea.sflag [#allocation5], %s6648_s18 }
 0x623   : > { %p7690_p0 = pnand %p11077_p11, %p11076_p12 }
 0x625   : > { %8137 = dma.done.wait (!%p7690_p0), %s6649_s26, 4096  }
 0x626   : > { %8139 = vsyncadd (!%p7690_p0), %s6649_s26, 4294963200  ;;  %s20_s17 = sadd.s32 1, %s8162_s17   ;;  %s11078_s12 = smov %s8146_s13 }
 0x627   : > { %p17_p5 = scmp.ge.s32.totalorder %s20_s17, 4   ;;  %s11079_s13 = smov %s8150_s14 }
 0x628   : > { %s11080_s14 = smov %s8299_s5  ;;  %s11081_s15 = smov %s8158_s16 }
 0x629   : > { %s11082_s16 = smov %s11084_s28  ;;  %19 = sbr.rel (!%p17_p5) target bundleno = 7 (0x7), region = 88 }
 0x630   :  { %6654 = vsyncpa [#allocation4], 1 }
 0x631   :  { %6656 = vsyncpa [#allocation4 + $0x1], 1 }
 0x632   :  { %6657 = vsyncpa [#allocation7], 1 }
 0x633   :  { %6658 = vsyncpa [#allocation5], 1 }
 0x634   :  { %6660 = vsyncpa [#allocation5 + $0x1], 1 }

</bundles_post_ra>
